<compile_context>
chip_gen: v7x
topology: tpu7x:2x2x1
jax: 0.10.0
libtpu: 0.0.40
codegen_flags: <defaults>
</compile_context>

<pallas_src>
import jax
import jax.numpy as jnp
from jax import lax
from jax.experimental import pallas as pl
from jax.experimental.pallas import tpu as pltpu


def _make_up_kernel(H1, Ho, Wo, Wp, Mw, Mscr, C, Cr, C2, Co):
    """Build the fused Up-block kernel for fixed static shapes."""
    Ccat = Cr + C2

    def kernel(x1e_ref, x2p_ref, wup_ref, bup_ref, wr_ref, br_ref,
               wc_ref, bc_ref, mask_ref, o_ref, upad_ref, cat_ref):
        cdt = upad_ref.dtype

        # ---- stage 1: ConvTranspose2d(k=2, s=2) as ONE MXU matmul ----------
        # x1e rows are (y, X) with only the (X % 2) input-channel block
        # populated; result columns are (ky, cout): column block ky holds the
        # pixels of upsampled image row Y = 2*y + ky.
        u_all = (jnp.dot(x1e_ref[0], wup_ref[...],
                         preferred_element_type=jnp.float32) + bup_ref[...])

        # ---- zero ONLY the halo of the padded upsampled image --------------
        upad_ref[0:Wp + 1, :] = jnp.zeros((Wp + 1, C), cdt)
        ubot = Ho * Wp + Wo + 1
        upad_ref[ubot:Mscr, :] = jnp.zeros((Mscr - ubot, C), cdt)
        for yp in range(1, Ho):                 # 2-row gap between data rows
            g = yp * Wp + Wo + 1
            upad_ref[g:g + 2, :] = jnp.zeros((2, C), cdt)

        # ---- scatter upsampled rows into the zero-padded flat layout -------
        for y in range(H1):
            for ky in range(2):
                dst = (1 + 2 * y + ky) * Wp + 1
                upad_ref[dst:dst + Wo, :] = (
                    u_all[y * Wo:(y + 1) * Wo, ky * C:(ky + 1) * C].astype(cdt))

        # ---- concat buffer: x2 half is one contiguous pre-padded copy ------
        cat_ref[:, Cr:Ccat] = x2p_ref[0]
        cat_ref[0:Wp + 1, 0:Cr] = jnp.zeros((Wp + 1, Cr), cdt)
        cbot = (Ho + 1) * Wp + 1
        cat_ref[cbot:Mscr, 0:Cr] = jnp.zeros((Mscr - cbot, Cr), cdt)

        # ---- conv #1 (reduce_dim): 9 shifted-slice MXU matmuls -------------
        acc = jnp.zeros((Mw, Cr), jnp.float32)
        for t in range(9):
            off = (t // 3) * Wp + (t % 3)
            acc = acc + jnp.dot(upad_ref[off:off + Mw, :], wr_ref[t],
                                preferred_element_type=jnp.float32)
        # Bias, then zero the 2 wrap columns: after the Wp+1 row shift below
        # they become the zero border / row gaps of the padded x1_reduced.
        acc = (acc + br_ref[...]) * mask_ref[...]
        cat_ref[Wp + 1:Wp + 1 + Mw, 0:Cr] = acc.astype(cdt)

        # ---- conv #2 (self.conv on fused concat): 9 K=32 MXU matmuls -------
        acc2 = jnp.zeros((Mw, Co), jnp.float32)
        for t in range(9):
            off = (t // 3) * Wp + (t % 3)
            acc2 = acc2 + jnp.dot(cat_ref[off:off + Mw, :], wc_ref[t],
                                  preferred_element_type=jnp.float32)
        o_ref[0] = (acc2 + bc_ref[...]).astype(o_ref.dtype)

    return kernel


def up_forward(x1, x2, w_up, b_up, w_reduce, b_reduce, w_conv, b_conv,
               compute_dtype=jnp.float32):
    """Forward pass of `Up` (NCHW in / NCHW out, matching the PyTorch module)."""
    B, C, H1, W1 = x1.shape
    Cr = w_reduce.shape[0]                 # dim // 2
    Co = w_conv.shape[0]                   # dim // 2
    C2 = x2.shape[1]                       # dim // 2
    Ccat = Cr + C2
    assert w_conv.shape[1] == Ccat
    Ho, Wo = 2 * H1, 2 * W1
    assert x2.shape == (B, C2, Ho, Wo)
    Wp = Wo + 2                            # zero-padded image width
    Mw = Ho * Wp                           # widened (padded-width) output rows
    Mscr = (Ho + 2) * Wp + 8               # padded rows (+slack so taps stay in-bounds)
    cdt = compute_dtype

    # Phase-expanded x1: row (y, X) holds x1[y, X//2] in the (X % 2) channel
    # block, so the whole ConvTranspose2d(k=2,s=2) is one (H1*Wo,2C)@(2C,2C)
    # matmul whose output rows are already in upsampled-row order (no HBM
    # intermediate, no de-interleave transpose).
    x1n = jnp.transpose(x1, (0, 2, 3, 1))                       # (B,H1,W1,C)
    z = jnp.zeros_like(x1n)
    x1e = jnp.stack([jnp.concatenate([x1n, z], -1),
                     jnp.concatenate([z, x1n], -1)], axis=3)    # (B,H1,W1,2,2C)
    x1e = x1e.reshape(B, H1 * Wo, 2 * C).astype(cdt)

    # x2 pre-padded (pad fused with the NCHW->NHWC transpose): placed in the
    # concat buffer with a single block copy in-kernel.
    x2n = jnp.transpose(x2, (0, 2, 3, 1))
    x2p = jnp.pad(x2n, ((0, 0), (1, 1), (1, 1), (0, 0)))
    x2p = x2p.reshape(B, (Ho + 2) * Wp, C2)
    x2p = jnp.pad(x2p, ((0, 0), (0, Mscr - (Ho + 2) * Wp), (0, 0))).astype(cdt)

    # Weights: ConvTranspose (cin,cout,ky,kx) -> [kx*C+cin, ky*C+cout]; the two
    # 3x3 convs as 9 taps of (cin, cout), with self.conv's taps over the
    # concatenated (x1_reduced | x2) input channels (concat fused, no HBM cat).
    wup = jnp.transpose(w_up, (3, 0, 2, 1)).reshape(2 * C, 2 * C).astype(cdt)
    bup = jnp.tile(b_up, 2).reshape(1, 2 * C).astype(jnp.float32)
    wr_taps = jnp.transpose(w_reduce, (2, 3, 1, 0)).reshape(9, C, Cr).astype(cdt)
    br = b_reduce.reshape(1, Cr).astype(jnp.float32)
    wc_taps = jnp.transpose(w_conv, (2, 3, 1, 0)).reshape(9, Ccat, Co).astype(cdt)
    bc = b_conv.reshape(1, Co).astype(jnp.float32)
    # Wrap-column mask (hoisted out of the kernel), f32 on the VPU.
    mask = jnp.tile((jnp.arange(Wp) < Wo).astype(jnp.float32), Ho).reshape(Mw, 1)

    kernel = _make_up_kernel(H1, Ho, Wo, Wp, Mw, Mscr, C, Cr, C2, Co)

    # VMEM limit derived from actual block + scratch sizes (double-buffered I/O).
    esz = jnp.dtype(cdt).itemsize
    in_block = ((H1 * Wo * 2 * C + Mscr * C2
                 + 4 * C * C + 9 * C * Cr + 9 * Ccat * Co) * esz
                + (2 * C + Cr + Co + Mw) * 4)
    out_block = Mw * Co * 4
    scratch = Mscr * (C + Ccat) * esz
    vmem_limit = int(min(100 << 20,
                         2 * (2 * in_block + 2 * out_block + scratch) + (16 << 20)))

    flops = 2 * B * (H1 * Wo * 2 * C * 2 * C + Mw * 9 * (C * Cr + Ccat * Co))
    bytes_accessed = int(B * (H1 * Wo * 2 * C + Mscr * C2) * esz
                         + B * Mw * Co * 4
                         + (4 * C * C + 9 * C * Cr + 9 * Ccat * Co) * esz)

    out_wide = pl.pallas_call(
        kernel,
        out_shape=jax.ShapeDtypeStruct((B, Mw, Co), jnp.float32),
        grid_spec=pltpu.PrefetchScalarGridSpec(
            num_scalar_prefetch=0,
            grid=(B,),
            in_specs=[
                pl.BlockSpec((1, H1 * Wo, 2 * C), lambda b: (b, 0, 0)),   # x1e
                pl.BlockSpec((1, Mscr, C2), lambda b: (b, 0, 0)),         # x2 (padded)
                pl.BlockSpec((2 * C, 2 * C), lambda b: (0, 0)),           # wup
                pl.BlockSpec((1, 2 * C), lambda b: (0, 0)),               # bup
                pl.BlockSpec((9, C, Cr), lambda b: (0, 0, 0)),            # wr taps
                pl.BlockSpec((1, Cr), lambda b: (0, 0)),                  # br
                pl.BlockSpec((9, Ccat, Co), lambda b: (0, 0, 0)),         # wc taps
                pl.BlockSpec((1, Co), lambda b: (0, 0)),                  # bc
                pl.BlockSpec((Mw, 1), lambda b: (0, 0)),                  # wrap mask
            ],
            out_specs=pl.BlockSpec((1, Mw, Co), lambda b: (b, 0, 0)),
            scratch_shapes=[
                pltpu.VMEM((Mscr, C), cdt),       # zero-padded upsampled x1
                pltpu.VMEM((Mscr, Ccat), cdt),    # zero-padded (x1_reduced | x2)
            ],
        ),
        compiler_params=pltpu.CompilerParams(
            dimension_semantics=("parallel",),    # batch -> both v7x TCs
            vmem_limit_bytes=vmem_limit,
        ),
        cost_estimate=pl.CostEstimate(
            flops=flops, transcendentals=0, bytes_accessed=bytes_accessed),
    )(x1e, x2p, wup, bup, wr_taps, br, wc_taps, bc, mask)

    # Drop the 2 widened (wrap) columns; return NCHW like the PyTorch module.
    out_nhwc = out_wide.reshape(B, Ho, Wp, Co)[:, :, :Wo, :]
    return jnp.transpose(out_nhwc, (0, 3, 1, 2))


if __name__ == "__main__":
    # Small shapes consistent with the module: dim=32, x1 (2,32,8,8), x2 (2,16,16,16).
    B, dim, H1, W1 = 2, 32, 8, 8
    key = jax.random.PRNGKey(0)
    ks = jax.random.split(key, 8)
    x1 = jax.random.normal(ks[0], (B, dim, H1, W1), jnp.float32)
    x2 = jax.random.normal(ks[1], (B, dim // 2, 2 * H1, 2 * W1), jnp.float32)
    w_up = jax.random.normal(ks[2], (dim, dim, 2, 2), jnp.float32) / (4 * dim) ** 0.5
    b_up = 0.02 * jax.random.normal(ks[3], (dim,), jnp.float32)
    w_reduce = jax.random.normal(ks[4], (dim // 2, dim, 3, 3), jnp.float32) / (9 * dim) ** 0.5
    b_reduce = 0.02 * jax.random.normal(ks[5], (dim // 2,), jnp.float32)
    w_conv = jax.random.normal(ks[6], (dim // 2, dim, 3, 3), jnp.float32) / (9 * dim) ** 0.5
    b_conv = 0.02 * jax.random.normal(ks[7], (dim // 2,), jnp.float32)

    fwd = jax.jit(up_forward, static_argnames=("compute_dtype",))
    out = jax.block_until_ready(
        fwd(x1, x2, w_up, b_up, w_reduce, b_reduce, w_conv, b_conv))

    # ---- pure-JAX reference (independent formulation via lax convs) ----
    hi = lax.Precision.HIGHEST
    up = jnp.einsum("bchw,codk->bohdwk", x1, w_up, precision=hi)
    up = up.reshape(B, dim, 2 * H1, 2 * W1) + b_up[None, :, None, None]
    dn = ("NCHW", "OIHW", "NCHW")
    x1r = lax.conv_general_dilated(up, w_reduce, (1, 1), ((1, 1), (1, 1)),
                                   dimension_numbers=dn, precision=hi)
    x1r = x1r + b_reduce[None, :, None, None]
    cat = jnp.concatenate([x1r, x2], axis=1)
    ref = lax.conv_general_dilated(cat, w_conv, (1, 1), ((1, 1), (1, 1)),
                                   dimension_numbers=dn, precision=hi)
    ref = ref + b_conv[None, :, None, None]

    assert out.shape == (B, dim // 2, 2 * H1, 2 * W1), out.shape
    assert jnp.allclose(out, ref, atol=2e-3, rtol=2e-3), \
        float(jnp.max(jnp.abs(out - ref)))
    print("KERNEL_OK")
</pallas_src>

<mosaic_0001>
module attributes {stable_mosaic.version = 11 : i64} {
  func.func @kernel(%arg0: i32, %arg1: memref<1x128x64xf32, #tpu.memory_space<vmem>>, %arg2: memref<1x332x16xf32, #tpu.memory_space<vmem>>, %arg3: memref<64x64xf32, #tpu.memory_space<vmem>>, %arg4: memref<1x64xf32, #tpu.memory_space<vmem>>, %arg5: memref<9x32x16xf32, #tpu.memory_space<vmem>>, %arg6: memref<1x16xf32, #tpu.memory_space<vmem>>, %arg7: memref<9x32x16xf32, #tpu.memory_space<vmem>>, %arg8: memref<1x16xf32, #tpu.memory_space<vmem>>, %arg9: memref<288x1xf32, #tpu.memory_space<vmem>>, %arg10: memref<1x288x16xf32, #tpu.memory_space<vmem>>, %arg11: memref<332x32xf32, #tpu.memory_space<vmem>>, %arg12: memref<332x32xf32, #tpu.memory_space<vmem>>) attributes {dimension_semantics = [#tpu.dimension_semantics<parallel>], iteration_bounds = array<i64: 2>, scalar_prefetch = 0 : i64, scratch_operands = 2 : i64, tpu.core_type = #tpu.core_type<tc>, window_params = [{transform_indices = @transform_0, window_bounds = array<i64: 1, 128, 64>}, {transform_indices = @transform_1, window_bounds = array<i64: 1, 332, 16>}, {pipeline_mode = #tpu.pipeline_mode<synchronous>, transform_indices = @transform_2, window_bounds = array<i64: 64, 64>}, {pipeline_mode = #tpu.pipeline_mode<synchronous>, transform_indices = @transform_3, window_bounds = array<i64: 1, 64>}, {pipeline_mode = #tpu.pipeline_mode<synchronous>, transform_indices = @transform_4, window_bounds = array<i64: 9, 32, 16>}, {pipeline_mode = #tpu.pipeline_mode<synchronous>, transform_indices = @transform_5, window_bounds = array<i64: 1, 16>}, {pipeline_mode = #tpu.pipeline_mode<synchronous>, transform_indices = @transform_6, window_bounds = array<i64: 9, 32, 16>}, {pipeline_mode = #tpu.pipeline_mode<synchronous>, transform_indices = @transform_7, window_bounds = array<i64: 1, 16>}, {pipeline_mode = #tpu.pipeline_mode<synchronous>, transform_indices = @transform_8, window_bounds = array<i64: 288, 1>}, {transform_indices = @transform_9, window_bounds = array<i64: 1, 288, 16>}]} {
    %c0 = arith.constant 0 : index
    %c0_0 = arith.constant 0 : index
    %c0_1 = arith.constant 0 : index
    %0 = vector.load %arg1[%c0, %c0_0, %c0_1] : memref<1x128x64xf32, #tpu.memory_space<vmem>>, vector<1x128x64xf32>
    %1 = vector.shape_cast %0 : vector<1x128x64xf32> to vector<128x64xf32>
    %c0_2 = arith.constant 0 : index
    %c0_3 = arith.constant 0 : index
    %2 = vector.load %arg3[%c0_2, %c0_3] : memref<64x64xf32, #tpu.memory_space<vmem>>, vector<64x64xf32>
    %cst = arith.constant dense<0.000000e+00> : vector<128x64xf32>
    %3 = tpu.matmul %1, %2, %cst {dimension_numbers = #tpu.dot_dimension_numbers<[1], [0], [0], [1], [0, 0, 1, 1], [], []>} : vector<128x64xf32>, vector<64x64xf32>, vector<128x64xf32> -> vector<128x64xf32>
    %c0_4 = arith.constant 0 : index
    %c0_5 = arith.constant 0 : index
    %4 = vector.load %arg4[%c0_4, %c0_5] : memref<1x64xf32, #tpu.memory_space<vmem>>, vector<1x64xf32>
    %5 = vector.broadcast %4 : vector<1x64xf32> to vector<128x64xf32>
    %6 = arith.addf %3, %5 : vector<128x64xf32>
    %cst_6 = arith.constant 0.000000e+00 : f32
    %7 = vector.broadcast %cst_6 : f32 to vector<19x32xf32>
    %c0_7 = arith.constant 0 : index
    %c0_8 = arith.constant 0 : index
    %8 = vector.load %arg11[%c0_7, %c0_8] : memref<332x32xf32, #tpu.memory_space<vmem>>, vector<19x32xf32>
    tpu.vector_store %arg11[%c0_7, %c0_8], %7 {strides = array<i32>} : memref<332x32xf32, #tpu.memory_space<vmem>>, vector<19x32xf32>,
    %cst_9 = arith.constant 0.000000e+00 : f32
    %9 = vector.broadcast %cst_9 : f32 to vector<27x32xf32>
    %c305 = arith.constant 305 : index
    %c0_10 = arith.constant 0 : index
    %10 = vector.load %arg11[%c305, %c0_10] : memref<332x32xf32, #tpu.memory_space<vmem>>, vector<27x32xf32>
    tpu.vector_store %arg11[%c305, %c0_10], %9 {strides = array<i32>} : memref<332x32xf32, #tpu.memory_space<vmem>>, vector<27x32xf32>,
    %cst_11 = arith.constant 0.000000e+00 : f32
    %11 = vector.broadcast %cst_11 : f32 to vector<2x32xf32>
    %c35 = arith.constant 35 : index
    %c0_12 = arith.constant 0 : index
    %12 = vector.load %arg11[%c35, %c0_12] : memref<332x32xf32, #tpu.memory_space<vmem>>, vector<2x32xf32>
    tpu.vector_store %arg11[%c35, %c0_12], %11 {strides = array<i32>} : memref<332x32xf32, #tpu.memory_space<vmem>>, vector<2x32xf32>,
    %cst_13 = arith.constant 0.000000e+00 : f32
    %13 = vector.broadcast %cst_13 : f32 to vector<2x32xf32>
    %c53 = arith.constant 53 : index
    %c0_14 = arith.constant 0 : index
    %14 = vector.load %arg11[%c53, %c0_14] : memref<332x32xf32, #tpu.memory_space<vmem>>, vector<2x32xf32>
    tpu.vector_store %arg11[%c53, %c0_14], %13 {strides = array<i32>} : memref<332x32xf32, #tpu.memory_space<vmem>>, vector<2x32xf32>,
    %cst_15 = arith.constant 0.000000e+00 : f32
    %15 = vector.broadcast %cst_15 : f32 to vector<2x32xf32>
    %c71 = arith.constant 71 : index
    %c0_16 = arith.constant 0 : index
    %16 = vector.load %arg11[%c71, %c0_16] : memref<332x32xf32, #tpu.memory_space<vmem>>, vector<2x32xf32>
    tpu.vector_store %arg11[%c71, %c0_16], %15 {strides = array<i32>} : memref<332x32xf32, #tpu.memory_space<vmem>>, vector<2x32xf32>,
    %cst_17 = arith.constant 0.000000e+00 : f32
    %17 = vector.broadcast %cst_17 : f32 to vector<2x32xf32>
    %c89 = arith.constant 89 : index
    %c0_18 = arith.constant 0 : index
    %18 = vector.load %arg11[%c89, %c0_18] : memref<332x32xf32, #tpu.memory_space<vmem>>, vector<2x32xf32>
    tpu.vector_store %arg11[%c89, %c0_18], %17 {strides = array<i32>} : memref<332x32xf32, #tpu.memory_space<vmem>>, vector<2x32xf32>,
    %cst_19 = arith.constant 0.000000e+00 : f32
    %19 = vector.broadcast %cst_19 : f32 to vector<2x32xf32>
    %c107 = arith.constant 107 : index
    %c0_20 = arith.constant 0 : index
    %20 = vector.load %arg11[%c107, %c0_20] : memref<332x32xf32, #tpu.memory_space<vmem>>, vector<2x32xf32>
    tpu.vector_store %arg11[%c107, %c0_20], %19 {strides = array<i32>} : memref<332x32xf32, #tpu.memory_space<vmem>>, vector<2x32xf32>,
    %cst_21 = arith.constant 0.000000e+00 : f32
    %21 = vector.broadcast %cst_21 : f32 to vector<2x32xf32>
    %c125 = arith.constant 125 : index
    %c0_22 = arith.constant 0 : index
    %22 = vector.load %arg11[%c125, %c0_22] : memref<332x32xf32, #tpu.memory_space<vmem>>, vector<2x32xf32>
    tpu.vector_store %arg11[%c125, %c0_22], %21 {strides = array<i32>} : memref<332x32xf32, #tpu.memory_space<vmem>>, vector<2x32xf32>,
    %cst_23 = arith.constant 0.000000e+00 : f32
    %23 = vector.broadcast %cst_23 : f32 to vector<2x32xf32>
    %c143 = arith.constant 143 : index
    %c0_24 = arith.constant 0 : index
    %24 = vector.load %arg11[%c143, %c0_24] : memref<332x32xf32, #tpu.memory_space<vmem>>, vector<2x32xf32>
    tpu.vector_store %arg11[%c143, %c0_24], %23 {strides = array<i32>} : memref<332x32xf32, #tpu.memory_space<vmem>>, vector<2x32xf32>,
    %cst_25 = arith.constant 0.000000e+00 : f32
    %25 = vector.broadcast %cst_25 : f32 to vector<2x32xf32>
    %c161 = arith.constant 161 : index
    %c0_26 = arith.constant 0 : index
    %26 = vector.load %arg11[%c161, %c0_26] : memref<332x32xf32, #tpu.memory_space<vmem>>, vector<2x32xf32>
    tpu.vector_store %arg11[%c161, %c0_26], %25 {strides = array<i32>} : memref<332x32xf32, #tpu.memory_space<vmem>>, vector<2x32xf32>,
    %cst_27 = arith.constant 0.000000e+00 : f32
    %27 = vector.broadcast %cst_27 : f32 to vector<2x32xf32>
    %c179 = arith.constant 179 : index
    %c0_28 = arith.constant 0 : index
    %28 = vector.load %arg11[%c179, %c0_28] : memref<332x32xf32, #tpu.memory_space<vmem>>, vector<2x32xf32>
    tpu.vector_store %arg11[%c179, %c0_28], %27 {strides = array<i32>} : memref<332x32xf32, #tpu.memory_space<vmem>>, vector<2x32xf32>,
    %cst_29 = arith.constant 0.000000e+00 : f32
    %29 = vector.broadcast %cst_29 : f32 to vector<2x32xf32>
    %c197 = arith.constant 197 : index
    %c0_30 = arith.constant 0 : index
    %30 = vector.load %arg11[%c197, %c0_30] : memref<332x32xf32, #tpu.memory_space<vmem>>, vector<2x32xf32>
    tpu.vector_store %arg11[%c197, %c0_30], %29 {strides = array<i32>} : memref<332x32xf32, #tpu.memory_space<vmem>>, vector<2x32xf32>,
    %cst_31 = arith.constant 0.000000e+00 : f32
    %31 = vector.broadcast %cst_31 : f32 to vector<2x32xf32>
    %c215 = arith.constant 215 : index
    %c0_32 = arith.constant 0 : index
    %32 = vector.load %arg11[%c215, %c0_32] : memref<332x32xf32, #tpu.memory_space<vmem>>, vector<2x32xf32>
    tpu.vector_store %arg11[%c215, %c0_32], %31 {strides = array<i32>} : memref<332x32xf32, #tpu.memory_space<vmem>>, vector<2x32xf32>,
    %cst_33 = arith.constant 0.000000e+00 : f32
    %33 = vector.broadcast %cst_33 : f32 to vector<2x32xf32>
    %c233 = arith.constant 233 : index
    %c0_34 = arith.constant 0 : index
    %34 = vector.load %arg11[%c233, %c0_34] : memref<332x32xf32, #tpu.memory_space<vmem>>, vector<2x32xf32>
    tpu.vector_store %arg11[%c233, %c0_34], %33 {strides = array<i32>} : memref<332x32xf32, #tpu.memory_space<vmem>>, vector<2x32xf32>,
    %cst_35 = arith.constant 0.000000e+00 : f32
    %35 = vector.broadcast %cst_35 : f32 to vector<2x32xf32>
    %c251 = arith.constant 251 : index
    %c0_36 = arith.constant 0 : index
    %36 = vector.load %arg11[%c251, %c0_36] : memref<332x32xf32, #tpu.memory_space<vmem>>, vector<2x32xf32>
    tpu.vector_store %arg11[%c251, %c0_36], %35 {strides = array<i32>} : memref<332x32xf32, #tpu.memory_space<vmem>>, vector<2x32xf32>,
    %cst_37 = arith.constant 0.000000e+00 : f32
    %37 = vector.broadcast %cst_37 : f32 to vector<2x32xf32>
    %c269 = arith.constant 269 : index
    %c0_38 = arith.constant 0 : index
    %38 = vector.load %arg11[%c269, %c0_38] : memref<332x32xf32, #tpu.memory_space<vmem>>, vector<2x32xf32>
    tpu.vector_store %arg11[%c269, %c0_38], %37 {strides = array<i32>} : memref<332x32xf32, #tpu.memory_space<vmem>>, vector<2x32xf32>,
    %cst_39 = arith.constant 0.000000e+00 : f32
    %39 = vector.broadcast %cst_39 : f32 to vector<2x32xf32>
    %c287 = arith.constant 287 : index
    %c0_40 = arith.constant 0 : index
    %40 = vector.load %arg11[%c287, %c0_40] : memref<332x32xf32, #tpu.memory_space<vmem>>, vector<2x32xf32>
    tpu.vector_store %arg11[%c287, %c0_40], %39 {strides = array<i32>} : memref<332x32xf32, #tpu.memory_space<vmem>>, vector<2x32xf32>,
    %41 = vector.extract_strided_slice %6 {offsets = [0, 0], sizes = [16, 32], strides = [1, 1]} : vector<128x64xf32> to vector<16x32xf32>
    %c19 = arith.constant 19 : index
    %c0_41 = arith.constant 0 : index
    %42 = vector.load %arg11[%c19, %c0_41] : memref<332x32xf32, #tpu.memory_space<vmem>>, vector<16x32xf32>
    tpu.vector_store %arg11[%c19, %c0_41], %41 {strides = array<i32>} : memref<332x32xf32, #tpu.memory_space<vmem>>, vector<16x32xf32>,
    %43 = vector.extract_strided_slice %6 {offsets = [0, 32], sizes = [16, 32], strides = [1, 1]} : vector<128x64xf32> to vector<16x32xf32>
    %c37 = arith.constant 37 : index
    %c0_42 = arith.constant 0 : index
    %44 = vector.load %arg11[%c37, %c0_42] : memref<332x32xf32, #tpu.memory_space<vmem>>, vector<16x32xf32>
    tpu.vector_store %arg11[%c37, %c0_42], %43 {strides = array<i32>} : memref<332x32xf32, #tpu.memory_space<vmem>>, vector<16x32xf32>,
    %45 = vector.extract_strided_slice %6 {offsets = [16, 0], sizes = [16, 32], strides = [1, 1]} : vector<128x64xf32> to vector<16x32xf32>
    %c55 = arith.constant 55 : index
    %c0_43 = arith.constant 0 : index
    %46 = vector.load %arg11[%c55, %c0_43] : memref<332x32xf32, #tpu.memory_space<vmem>>, vector<16x32xf32>
    tpu.vector_store %arg11[%c55, %c0_43], %45 {strides = array<i32>} : memref<332x32xf32, #tpu.memory_space<vmem>>, vector<16x32xf32>,
    %47 = vector.extract_strided_slice %6 {offsets = [16, 32], sizes = [16, 32], strides = [1, 1]} : vector<128x64xf32> to vector<16x32xf32>
    %c73 = arith.constant 73 : index
    %c0_44 = arith.constant 0 : index
    %48 = vector.load %arg11[%c73, %c0_44] : memref<332x32xf32, #tpu.memory_space<vmem>>, vector<16x32xf32>
    tpu.vector_store %arg11[%c73, %c0_44], %47 {strides = array<i32>} : memref<332x32xf32, #tpu.memory_space<vmem>>, vector<16x32xf32>,
    %49 = vector.extract_strided_slice %6 {offsets = [32, 0], sizes = [16, 32], strides = [1, 1]} : vector<128x64xf32> to vector<16x32xf32>
    %c91 = arith.constant 91 : index
    %c0_45 = arith.constant 0 : index
    %50 = vector.load %arg11[%c91, %c0_45] : memref<332x32xf32, #tpu.memory_space<vmem>>, vector<16x32xf32>
    tpu.vector_store %arg11[%c91, %c0_45], %49 {strides = array<i32>} : memref<332x32xf32, #tpu.memory_space<vmem>>, vector<16x32xf32>,
    %51 = vector.extract_strided_slice %6 {offsets = [32, 32], sizes = [16, 32], strides = [1, 1]} : vector<128x64xf32> to vector<16x32xf32>
    %c109 = arith.constant 109 : index
    %c0_46 = arith.constant 0 : index
    %52 = vector.load %arg11[%c109, %c0_46] : memref<332x32xf32, #tpu.memory_space<vmem>>, vector<16x32xf32>
    tpu.vector_store %arg11[%c109, %c0_46], %51 {strides = array<i32>} : memref<332x32xf32, #tpu.memory_space<vmem>>, vector<16x32xf32>,
    %53 = vector.extract_strided_slice %6 {offsets = [48, 0], sizes = [16, 32], strides = [1, 1]} : vector<128x64xf32> to vector<16x32xf32>
    %c127 = arith.constant 127 : index
    %c0_47 = arith.constant 0 : index
    %54 = vector.load %arg11[%c127, %c0_47] : memref<332x32xf32, #tpu.memory_space<vmem>>, vector<16x32xf32>
    tpu.vector_store %arg11[%c127, %c0_47], %53 {strides = array<i32>} : memref<332x32xf32, #tpu.memory_space<vmem>>, vector<16x32xf32>,
    %55 = vector.extract_strided_slice %6 {offsets = [48, 32], sizes = [16, 32], strides = [1, 1]} : vector<128x64xf32> to vector<16x32xf32>
    %c145 = arith.constant 145 : index
    %c0_48 = arith.constant 0 : index
    %56 = vector.load %arg11[%c145, %c0_48] : memref<332x32xf32, #tpu.memory_space<vmem>>, vector<16x32xf32>
    tpu.vector_store %arg11[%c145, %c0_48], %55 {strides = array<i32>} : memref<332x32xf32, #tpu.memory_space<vmem>>, vector<16x32xf32>,
    %57 = vector.extract_strided_slice %6 {offsets = [64, 0], sizes = [16, 32], strides = [1, 1]} : vector<128x64xf32> to vector<16x32xf32>
    %c163 = arith.constant 163 : index
    %c0_49 = arith.constant 0 : index
    %58 = vector.load %arg11[%c163, %c0_49] : memref<332x32xf32, #tpu.memory_space<vmem>>, vector<16x32xf32>
    tpu.vector_store %arg11[%c163, %c0_49], %57 {strides = array<i32>} : memref<332x32xf32, #tpu.memory_space<vmem>>, vector<16x32xf32>,
    %59 = vector.extract_strided_slice %6 {offsets = [64, 32], sizes = [16, 32], strides = [1, 1]} : vector<128x64xf32> to vector<16x32xf32>
    %c181 = arith.constant 181 : index
    %c0_50 = arith.constant 0 : index
    %60 = vector.load %arg11[%c181, %c0_50] : memref<332x32xf32, #tpu.memory_space<vmem>>, vector<16x32xf32>
    tpu.vector_store %arg11[%c181, %c0_50], %59 {strides = array<i32>} : memref<332x32xf32, #tpu.memory_space<vmem>>, vector<16x32xf32>,
    %61 = vector.extract_strided_slice %6 {offsets = [80, 0], sizes = [16, 32], strides = [1, 1]} : vector<128x64xf32> to vector<16x32xf32>
    %c199 = arith.constant 199 : index
    %c0_51 = arith.constant 0 : index
    %62 = vector.load %arg11[%c199, %c0_51] : memref<332x32xf32, #tpu.memory_space<vmem>>, vector<16x32xf32>
    tpu.vector_store %arg11[%c199, %c0_51], %61 {strides = array<i32>} : memref<332x32xf32, #tpu.memory_space<vmem>>, vector<16x32xf32>,
    %63 = vector.extract_strided_slice %6 {offsets = [80, 32], sizes = [16, 32], strides = [1, 1]} : vector<128x64xf32> to vector<16x32xf32>
    %c217 = arith.constant 217 : index
    %c0_52 = arith.constant 0 : index
    %64 = vector.load %arg11[%c217, %c0_52] : memref<332x32xf32, #tpu.memory_space<vmem>>, vector<16x32xf32>
    tpu.vector_store %arg11[%c217, %c0_52], %63 {strides = array<i32>} : memref<332x32xf32, #tpu.memory_space<vmem>>, vector<16x32xf32>,
    %65 = vector.extract_strided_slice %6 {offsets = [96, 0], sizes = [16, 32], strides = [1, 1]} : vector<128x64xf32> to vector<16x32xf32>
    %c235 = arith.constant 235 : index
    %c0_53 = arith.constant 0 : index
    %66 = vector.load %arg11[%c235, %c0_53] : memref<332x32xf32, #tpu.memory_space<vmem>>, vector<16x32xf32>
    tpu.vector_store %arg11[%c235, %c0_53], %65 {strides = array<i32>} : memref<332x32xf32, #tpu.memory_space<vmem>>, vector<16x32xf32>,
    %67 = vector.extract_strided_slice %6 {offsets = [96, 32], sizes = [16, 32], strides = [1, 1]} : vector<128x64xf32> to vector<16x32xf32>
    %c253 = arith.constant 253 : index
    %c0_54 = arith.constant 0 : index
    %68 = vector.load %arg11[%c253, %c0_54] : memref<332x32xf32, #tpu.memory_space<vmem>>, vector<16x32xf32>
    tpu.vector_store %arg11[%c253, %c0_54], %67 {strides = array<i32>} : memref<332x32xf32, #tpu.memory_space<vmem>>, vector<16x32xf32>,
    %69 = vector.extract_strided_slice %6 {offsets = [112, 0], sizes = [16, 32], strides = [1, 1]} : vector<128x64xf32> to vector<16x32xf32>
    %c271 = arith.constant 271 : index
    %c0_55 = arith.constant 0 : index
    %70 = vector.load %arg11[%c271, %c0_55] : memref<332x32xf32, #tpu.memory_space<vmem>>, vector<16x32xf32>
    tpu.vector_store %arg11[%c271, %c0_55], %69 {strides = array<i32>} : memref<332x32xf32, #tpu.memory_space<vmem>>, vector<16x32xf32>,
    %71 = vector.extract_strided_slice %6 {offsets = [112, 32], sizes = [16, 32], strides = [1, 1]} : vector<128x64xf32> to vector<16x32xf32>
    %c289 = arith.constant 289 : index
    %c0_56 = arith.constant 0 : index
    %72 = vector.load %arg11[%c289, %c0_56] : memref<332x32xf32, #tpu.memory_space<vmem>>, vector<16x32xf32>
    tpu.vector_store %arg11[%c289, %c0_56], %71 {strides = array<i32>} : memref<332x32xf32, #tpu.memory_space<vmem>>, vector<16x32xf32>,
    %c0_57 = arith.constant 0 : index
    %c0_58 = arith.constant 0 : index
    %c0_59 = arith.constant 0 : index
    %73 = vector.load %arg2[%c0_57, %c0_58, %c0_59] : memref<1x332x16xf32, #tpu.memory_space<vmem>>, vector<1x332x16xf32>
    %74 = vector.shape_cast %73 : vector<1x332x16xf32> to vector<332x16xf32>
    %c0_60 = arith.constant 0 : index
    %c16 = arith.constant 16 : index
    %75 = vector.load %arg12[%c0_60, %c16] : memref<332x32xf32, #tpu.memory_space<vmem>>, vector<332x16xf32>
    tpu.vector_store %arg12[%c0_60, %c16], %74 {strides = array<i32>} : memref<332x32xf32, #tpu.memory_space<vmem>>, vector<332x16xf32>,
    %cst_61 = arith.constant 0.000000e+00 : f32
    %76 = vector.broadcast %cst_61 : f32 to vector<19x16xf32>
    %c0_62 = arith.constant 0 : index
    %c0_63 = arith.constant 0 : index
    %77 = vector.load %arg12[%c0_62, %c0_63] : memref<332x32xf32, #tpu.memory_space<vmem>>, vector<19x16xf32>
    tpu.vector_store %arg12[%c0_62, %c0_63], %76 {strides = array<i32>} : memref<332x32xf32, #tpu.memory_space<vmem>>, vector<19x16xf32>,
    %cst_64 = arith.constant 0.000000e+00 : f32
    %78 = vector.broadcast %cst_64 : f32 to vector<25x16xf32>
    %c307 = arith.constant 307 : index
    %c0_65 = arith.constant 0 : index
    %79 = vector.load %arg12[%c307, %c0_65] : memref<332x32xf32, #tpu.memory_space<vmem>>, vector<25x16xf32>
    tpu.vector_store %arg12[%c307, %c0_65], %78 {strides = array<i32>} : memref<332x32xf32, #tpu.memory_space<vmem>>, vector<25x16xf32>,
    %cst_66 = arith.constant 0.000000e+00 : f32
    %80 = vector.broadcast %cst_66 : f32 to vector<288x16xf32>
    %c0_67 = arith.constant 0 : index
    %c0_68 = arith.constant 0 : index
    %81 = vector.load %arg11[%c0_67, %c0_68] : memref<332x32xf32, #tpu.memory_space<vmem>>, vector<288x32xf32>
    %c0_69 = arith.constant 0 : index
    %c0_70 = arith.constant 0 : index
    %c0_71 = arith.constant 0 : index
    %82 = vector.load %arg5[%c0_69, %c0_70, %c0_71] : memref<9x32x16xf32, #tpu.memory_space<vmem>>, vector<1x32x16xf32>
    %83 = vector.shape_cast %82 : vector<1x32x16xf32> to vector<32x16xf32>
    %cst_72 = arith.constant dense<0.000000e+00> : vector<288x16xf32>
    %84 = tpu.matmul %81, %83, %cst_72 {dimension_numbers = #tpu.dot_dimension_numbers<[1], [0], [0], [1], [0, 0, 1, 1], [], []>} : vector<288x32xf32>, vector<32x16xf32>, vector<288x16xf32> -> vector<288x16xf32>
    %85 = arith.addf %80, %84 : vector<288x16xf32>
    %c1 = arith.constant 1 : index
    %c0_73 = arith.constant 0 : index
    %86 = vector.load %arg11[%c1, %c0_73] : memref<332x32xf32, #tpu.memory_space<vmem>>, vector<288x32xf32>
    %c1_74 = arith.constant 1 : index
    %c0_75 = arith.constant 0 : index
    %c0_76 = arith.constant 0 : index
    %87 = vector.load %arg5[%c1_74, %c0_75, %c0_76] : memref<9x32x16xf32, #tpu.memory_space<vmem>>, vector<1x32x16xf32>
    %88 = vector.shape_cast %87 : vector<1x32x16xf32> to vector<32x16xf32>
    %cst_77 = arith.constant dense<0.000000e+00> : vector<288x16xf32>
    %89 = tpu.matmul %86, %88, %cst_77 {dimension_numbers = #tpu.dot_dimension_numbers<[1], [0], [0], [1], [0, 0, 1, 1], [], []>} : vector<288x32xf32>, vector<32x16xf32>, vector<288x16xf32> -> vector<288x16xf32>
    %90 = arith.addf %85, %89 : vector<288x16xf32>
    %c2 = arith.constant 2 : index
    %c0_78 = arith.constant 0 : index
    %91 = vector.load %arg11[%c2, %c0_78] : memref<332x32xf32, #tpu.memory_space<vmem>>, vector<288x32xf32>
    %c2_79 = arith.constant 2 : index
    %c0_80 = arith.constant 0 : index
    %c0_81 = arith.constant 0 : index
    %92 = vector.load %arg5[%c2_79, %c0_80, %c0_81] : memref<9x32x16xf32, #tpu.memory_space<vmem>>, vector<1x32x16xf32>
    %93 = vector.shape_cast %92 : vector<1x32x16xf32> to vector<32x16xf32>
    %cst_82 = arith.constant dense<0.000000e+00> : vector<288x16xf32>
    %94 = tpu.matmul %91, %93, %cst_82 {dimension_numbers = #tpu.dot_dimension_numbers<[1], [0], [0], [1], [0, 0, 1, 1], [], []>} : vector<288x32xf32>, vector<32x16xf32>, vector<288x16xf32> -> vector<288x16xf32>
    %95 = arith.addf %90, %94 : vector<288x16xf32>
    %c18 = arith.constant 18 : index
    %c0_83 = arith.constant 0 : index
    %96 = vector.load %arg11[%c18, %c0_83] : memref<332x32xf32, #tpu.memory_space<vmem>>, vector<288x32xf32>
    %c3 = arith.constant 3 : index
    %c0_84 = arith.constant 0 : index
    %c0_85 = arith.constant 0 : index
    %97 = vector.load %arg5[%c3, %c0_84, %c0_85] : memref<9x32x16xf32, #tpu.memory_space<vmem>>, vector<1x32x16xf32>
    %98 = vector.shape_cast %97 : vector<1x32x16xf32> to vector<32x16xf32>
    %cst_86 = arith.constant dense<0.000000e+00> : vector<288x16xf32>
    %99 = tpu.matmul %96, %98, %cst_86 {dimension_numbers = #tpu.dot_dimension_numbers<[1], [0], [0], [1], [0, 0, 1, 1], [], []>} : vector<288x32xf32>, vector<32x16xf32>, vector<288x16xf32> -> vector<288x16xf32>
    %100 = arith.addf %95, %99 : vector<288x16xf32>
    %c19_87 = arith.constant 19 : index
    %c0_88 = arith.constant 0 : index
    %101 = vector.load %arg11[%c19_87, %c0_88] : memref<332x32xf32, #tpu.memory_space<vmem>>, vector<288x32xf32>
    %c4 = arith.constant 4 : index
    %c0_89 = arith.constant 0 : index
    %c0_90 = arith.constant 0 : index
    %102 = vector.load %arg5[%c4, %c0_89, %c0_90] : memref<9x32x16xf32, #tpu.memory_space<vmem>>, vector<1x32x16xf32>
    %103 = vector.shape_cast %102 : vector<1x32x16xf32> to vector<32x16xf32>
    %cst_91 = arith.constant dense<0.000000e+00> : vector<288x16xf32>
    %104 = tpu.matmul %101, %103, %cst_91 {dimension_numbers = #tpu.dot_dimension_numbers<[1], [0], [0], [1], [0, 0, 1, 1], [], []>} : vector<288x32xf32>, vector<32x16xf32>, vector<288x16xf32> -> vector<288x16xf32>
    %105 = arith.addf %100, %104 : vector<288x16xf32>
    %c20 = arith.constant 20 : index
    %c0_92 = arith.constant 0 : index
    %106 = vector.load %arg11[%c20, %c0_92] : memref<332x32xf32, #tpu.memory_space<vmem>>, vector<288x32xf32>
    %c5 = arith.constant 5 : index
    %c0_93 = arith.constant 0 : index
    %c0_94 = arith.constant 0 : index
    %107 = vector.load %arg5[%c5, %c0_93, %c0_94] : memref<9x32x16xf32, #tpu.memory_space<vmem>>, vector<1x32x16xf32>
    %108 = vector.shape_cast %107 : vector<1x32x16xf32> to vector<32x16xf32>
    %cst_95 = arith.constant dense<0.000000e+00> : vector<288x16xf32>
    %109 = tpu.matmul %106, %108, %cst_95 {dimension_numbers = #tpu.dot_dimension_numbers<[1], [0], [0], [1], [0, 0, 1, 1], [], []>} : vector<288x32xf32>, vector<32x16xf32>, vector<288x16xf32> -> vector<288x16xf32>
    %110 = arith.addf %105, %109 : vector<288x16xf32>
    %c36 = arith.constant 36 : index
    %c0_96 = arith.constant 0 : index
    %111 = vector.load %arg11[%c36, %c0_96] : memref<332x32xf32, #tpu.memory_space<vmem>>, vector<288x32xf32>
    %c6 = arith.constant 6 : index
    %c0_97 = arith.constant 0 : index
    %c0_98 = arith.constant 0 : index
    %112 = vector.load %arg5[%c6, %c0_97, %c0_98] : memref<9x32x16xf32, #tpu.memory_space<vmem>>, vector<1x32x16xf32>
    %113 = vector.shape_cast %112 : vector<1x32x16xf32> to vector<32x16xf32>
    %cst_99 = arith.constant dense<0.000000e+00> : vector<288x16xf32>
    %114 = tpu.matmul %111, %113, %cst_99 {dimension_numbers = #tpu.dot_dimension_numbers<[1], [0], [0], [1], [0, 0, 1, 1], [], []>} : vector<288x32xf32>, vector<32x16xf32>, vector<288x16xf32> -> vector<288x16xf32>
    %115 = arith.addf %110, %114 : vector<288x16xf32>
    %c37_100 = arith.constant 37 : index
    %c0_101 = arith.constant 0 : index
    %116 = vector.load %arg11[%c37_100, %c0_101] : memref<332x32xf32, #tpu.memory_space<vmem>>, vector<288x32xf32>
    %c7 = arith.constant 7 : index
    %c0_102 = arith.constant 0 : index
    %c0_103 = arith.constant 0 : index
    %117 = vector.load %arg5[%c7, %c0_102, %c0_103] : memref<9x32x16xf32, #tpu.memory_space<vmem>>, vector<1x32x16xf32>
    %118 = vector.shape_cast %117 : vector<1x32x16xf32> to vector<32x16xf32>
    %cst_104 = arith.constant dense<0.000000e+00> : vector<288x16xf32>
    %119 = tpu.matmul %116, %118, %cst_104 {dimension_numbers = #tpu.dot_dimension_numbers<[1], [0], [0], [1], [0, 0, 1, 1], [], []>} : vector<288x32xf32>, vector<32x16xf32>, vector<288x16xf32> -> vector<288x16xf32>
    %120 = arith.addf %115, %119 : vector<288x16xf32>
    %c38 = arith.constant 38 : index
    %c0_105 = arith.constant 0 : index
    %121 = vector.load %arg11[%c38, %c0_105] : memref<332x32xf32, #tpu.memory_space<vmem>>, vector<288x32xf32>
    %c8 = arith.constant 8 : index
    %c0_106 = arith.constant 0 : index
    %c0_107 = arith.constant 0 : index
    %122 = vector.load %arg5[%c8, %c0_106, %c0_107] : memref<9x32x16xf32, #tpu.memory_space<vmem>>, vector<1x32x16xf32>
    %123 = vector.shape_cast %122 : vector<1x32x16xf32> to vector<32x16xf32>
    %cst_108 = arith.constant dense<0.000000e+00> : vector<288x16xf32>
    %124 = tpu.matmul %121, %123, %cst_108 {dimension_numbers = #tpu.dot_dimension_numbers<[1], [0], [0], [1], [0, 0, 1, 1], [], []>} : vector<288x32xf32>, vector<32x16xf32>, vector<288x16xf32> -> vector<288x16xf32>
    %125 = arith.addf %120, %124 : vector<288x16xf32>
    %c0_109 = arith.constant 0 : index
    %c0_110 = arith.constant 0 : index
    %126 = vector.load %arg6[%c0_109, %c0_110] : memref<1x16xf32, #tpu.memory_space<vmem>>, vector<1x16xf32>
    %127 = vector.broadcast %126 : vector<1x16xf32> to vector<288x16xf32>
    %128 = arith.addf %125, %127 : vector<288x16xf32>
    %c0_111 = arith.constant 0 : index
    %c0_112 = arith.constant 0 : index
    %129 = vector.load %arg9[%c0_111, %c0_112] : memref<288x1xf32, #tpu.memory_space<vmem>>, vector<288x1xf32>
    %130 = vector.broadcast %129 : vector<288x1xf32> to vector<288x16xf32>
    %131 = arith.mulf %128, %130 : vector<288x16xf32>
    %c19_113 = arith.constant 19 : index
    %c0_114 = arith.constant 0 : index
    %132 = vector.load %arg12[%c19_113, %c0_114] : memref<332x32xf32, #tpu.memory_space<vmem>>, vector<288x16xf32>
    tpu.vector_store %arg12[%c19_113, %c0_114], %131 {strides = array<i32>} : memref<332x32xf32, #tpu.memory_space<vmem>>, vector<288x16xf32>,
    %cst_115 = arith.constant 0.000000e+00 : f32
    %133 = vector.broadcast %cst_115 : f32 to vector<288x16xf32>
    %c0_116 = arith.constant 0 : index
    %c0_117 = arith.constant 0 : index
    %134 = vector.load %arg12[%c0_116, %c0_117] : memref<332x32xf32, #tpu.memory_space<vmem>>, vector<288x32xf32>
    %c0_118 = arith.constant 0 : index
    %c0_119 = arith.constant 0 : index
    %c0_120 = arith.constant 0 : index
    %135 = vector.load %arg7[%c0_118, %c0_119, %c0_120] : memref<9x32x16xf32, #tpu.memory_space<vmem>>, vector<1x32x16xf32>
    %136 = vector.shape_cast %135 : vector<1x32x16xf32> to vector<32x16xf32>
    %cst_121 = arith.constant dense<0.000000e+00> : vector<288x16xf32>
    %137 = tpu.matmul %134, %136, %cst_121 {dimension_numbers = #tpu.dot_dimension_numbers<[1], [0], [0], [1], [0, 0, 1, 1], [], []>} : vector<288x32xf32>, vector<32x16xf32>, vector<288x16xf32> -> vector<288x16xf32>
    %138 = arith.addf %133, %137 : vector<288x16xf32>
    %c1_122 = arith.constant 1 : index
    %c0_123 = arith.constant 0 : index
    %139 = vector.load %arg12[%c1_122, %c0_123] : memref<332x32xf32, #tpu.memory_space<vmem>>, vector<288x32xf32>
    %c1_124 = arith.constant 1 : index
    %c0_125 = arith.constant 0 : index
    %c0_126 = arith.constant 0 : index
    %140 = vector.load %arg7[%c1_124, %c0_125, %c0_126] : memref<9x32x16xf32, #tpu.memory_space<vmem>>, vector<1x32x16xf32>
    %141 = vector.shape_cast %140 : vector<1x32x16xf32> to vector<32x16xf32>
    %cst_127 = arith.constant dense<0.000000e+00> : vector<288x16xf32>
    %142 = tpu.matmul %139, %141, %cst_127 {dimension_numbers = #tpu.dot_dimension_numbers<[1], [0], [0], [1], [0, 0, 1, 1], [], []>} : vector<288x32xf32>, vector<32x16xf32>, vector<288x16xf32> -> vector<288x16xf32>
    %143 = arith.addf %138, %142 : vector<288x16xf32>
    %c2_128 = arith.constant 2 : index
    %c0_129 = arith.constant 0 : index
    %144 = vector.load %arg12[%c2_128, %c0_129] : memref<332x32xf32, #tpu.memory_space<vmem>>, vector<288x32xf32>
    %c2_130 = arith.constant 2 : index
    %c0_131 = arith.constant 0 : index
    %c0_132 = arith.constant 0 : index
    %145 = vector.load %arg7[%c2_130, %c0_131, %c0_132] : memref<9x32x16xf32, #tpu.memory_space<vmem>>, vector<1x32x16xf32>
    %146 = vector.shape_cast %145 : vector<1x32x16xf32> to vector<32x16xf32>
    %cst_133 = arith.constant dense<0.000000e+00> : vector<288x16xf32>
    %147 = tpu.matmul %144, %146, %cst_133 {dimension_numbers = #tpu.dot_dimension_numbers<[1], [0], [0], [1], [0, 0, 1, 1], [], []>} : vector<288x32xf32>, vector<32x16xf32>, vector<288x16xf32> -> vector<288x16xf32>
    %148 = arith.addf %143, %147 : vector<288x16xf32>
    %c18_134 = arith.constant 18 : index
    %c0_135 = arith.constant 0 : index
    %149 = vector.load %arg12[%c18_134, %c0_135] : memref<332x32xf32, #tpu.memory_space<vmem>>, vector<288x32xf32>
    %c3_136 = arith.constant 3 : index
    %c0_137 = arith.constant 0 : index
    %c0_138 = arith.constant 0 : index
    %150 = vector.load %arg7[%c3_136, %c0_137, %c0_138] : memref<9x32x16xf32, #tpu.memory_space<vmem>>, vector<1x32x16xf32>
    %151 = vector.shape_cast %150 : vector<1x32x16xf32> to vector<32x16xf32>
    %cst_139 = arith.constant dense<0.000000e+00> : vector<288x16xf32>
    %152 = tpu.matmul %149, %151, %cst_139 {dimension_numbers = #tpu.dot_dimension_numbers<[1], [0], [0], [1], [0, 0, 1, 1], [], []>} : vector<288x32xf32>, vector<32x16xf32>, vector<288x16xf32> -> vector<288x16xf32>
    %153 = arith.addf %148, %152 : vector<288x16xf32>
    %c19_140 = arith.constant 19 : index
    %c0_141 = arith.constant 0 : index
    %154 = vector.load %arg12[%c19_140, %c0_141] : memref<332x32xf32, #tpu.memory_space<vmem>>, vector<288x32xf32>
    %c4_142 = arith.constant 4 : index
    %c0_143 = arith.constant 0 : index
    %c0_144 = arith.constant 0 : index
    %155 = vector.load %arg7[%c4_142, %c0_143, %c0_144] : memref<9x32x16xf32, #tpu.memory_space<vmem>>, vector<1x32x16xf32>
    %156 = vector.shape_cast %155 : vector<1x32x16xf32> to vector<32x16xf32>
    %cst_145 = arith.constant dense<0.000000e+00> : vector<288x16xf32>
    %157 = tpu.matmul %154, %156, %cst_145 {dimension_numbers = #tpu.dot_dimension_numbers<[1], [0], [0], [1], [0, 0, 1, 1], [], []>} : vector<288x32xf32>, vector<32x16xf32>, vector<288x16xf32> -> vector<288x16xf32>
    %158 = arith.addf %153, %157 : vector<288x16xf32>
    %c20_146 = arith.constant 20 : index
    %c0_147 = arith.constant 0 : index
    %159 = vector.load %arg12[%c20_146, %c0_147] : memref<332x32xf32, #tpu.memory_space<vmem>>, vector<288x32xf32>
    %c5_148 = arith.constant 5 : index
    %c0_149 = arith.constant 0 : index
    %c0_150 = arith.constant 0 : index
    %160 = vector.load %arg7[%c5_148, %c0_149, %c0_150] : memref<9x32x16xf32, #tpu.memory_space<vmem>>, vector<1x32x16xf32>
    %161 = vector.shape_cast %160 : vector<1x32x16xf32> to vector<32x16xf32>
    %cst_151 = arith.constant dense<0.000000e+00> : vector<288x16xf32>
    %162 = tpu.matmul %159, %161, %cst_151 {dimension_numbers = #tpu.dot_dimension_numbers<[1], [0], [0], [1], [0, 0, 1, 1], [], []>} : vector<288x32xf32>, vector<32x16xf32>, vector<288x16xf32> -> vector<288x16xf32>
    %163 = arith.addf %158, %162 : vector<288x16xf32>
    %c36_152 = arith.constant 36 : index
    %c0_153 = arith.constant 0 : index
    %164 = vector.load %arg12[%c36_152, %c0_153] : memref<332x32xf32, #tpu.memory_space<vmem>>, vector<288x32xf32>
    %c6_154 = arith.constant 6 : index
    %c0_155 = arith.constant 0 : index
    %c0_156 = arith.constant 0 : index
    %165 = vector.load %arg7[%c6_154, %c0_155, %c0_156] : memref<9x32x16xf32, #tpu.memory_space<vmem>>, vector<1x32x16xf32>
    %166 = vector.shape_cast %165 : vector<1x32x16xf32> to vector<32x16xf32>
    %cst_157 = arith.constant dense<0.000000e+00> : vector<288x16xf32>
    %167 = tpu.matmul %164, %166, %cst_157 {dimension_numbers = #tpu.dot_dimension_numbers<[1], [0], [0], [1], [0, 0, 1, 1], [], []>} : vector<288x32xf32>, vector<32x16xf32>, vector<288x16xf32> -> vector<288x16xf32>
    %168 = arith.addf %163, %167 : vector<288x16xf32>
    %c37_158 = arith.constant 37 : index
    %c0_159 = arith.constant 0 : index
    %169 = vector.load %arg12[%c37_158, %c0_159] : memref<332x32xf32, #tpu.memory_space<vmem>>, vector<288x32xf32>
    %c7_160 = arith.constant 7 : index
    %c0_161 = arith.constant 0 : index
    %c0_162 = arith.constant 0 : index
    %170 = vector.load %arg7[%c7_160, %c0_161, %c0_162] : memref<9x32x16xf32, #tpu.memory_space<vmem>>, vector<1x32x16xf32>
    %171 = vector.shape_cast %170 : vector<1x32x16xf32> to vector<32x16xf32>
    %cst_163 = arith.constant dense<0.000000e+00> : vector<288x16xf32>
    %172 = tpu.matmul %169, %171, %cst_163 {dimension_numbers = #tpu.dot_dimension_numbers<[1], [0], [0], [1], [0, 0, 1, 1], [], []>} : vector<288x32xf32>, vector<32x16xf32>, vector<288x16xf32> -> vector<288x16xf32>
    %173 = arith.addf %168, %172 : vector<288x16xf32>
    %c38_164 = arith.constant 38 : index
    %c0_165 = arith.constant 0 : index
    %174 = vector.load %arg12[%c38_164, %c0_165] : memref<332x32xf32, #tpu.memory_space<vmem>>, vector<288x32xf32>
    %c8_166 = arith.constant 8 : index
    %c0_167 = arith.constant 0 : index
    %c0_168 = arith.constant 0 : index
    %175 = vector.load %arg7[%c8_166, %c0_167, %c0_168] : memref<9x32x16xf32, #tpu.memory_space<vmem>>, vector<1x32x16xf32>
    %176 = vector.shape_cast %175 : vector<1x32x16xf32> to vector<32x16xf32>
    %cst_169 = arith.constant dense<0.000000e+00> : vector<288x16xf32>
    %177 = tpu.matmul %174, %176, %cst_169 {dimension_numbers = #tpu.dot_dimension_numbers<[1], [0], [0], [1], [0, 0, 1, 1], [], []>} : vector<288x32xf32>, vector<32x16xf32>, vector<288x16xf32> -> vector<288x16xf32>
    %178 = arith.addf %173, %177 : vector<288x16xf32>
    %c0_170 = arith.constant 0 : index
    %c0_171 = arith.constant 0 : index
    %179 = vector.load %arg8[%c0_170, %c0_171] : memref<1x16xf32, #tpu.memory_space<vmem>>, vector<1x16xf32>
    %180 = vector.broadcast %179 : vector<1x16xf32> to vector<288x16xf32>
    %181 = arith.addf %178, %180 : vector<288x16xf32>
    %c0_172 = arith.constant 0 : index
    %c0_173 = arith.constant 0 : index
    %c0_174 = arith.constant 0 : index
    %182 = vector.load %arg10[%c0_172, %c0_173, %c0_174] : memref<1x288x16xf32, #tpu.memory_space<vmem>>, vector<1x288x16xf32>
    %183 = vector.shape_cast %182 : vector<1x288x16xf32> to vector<288x16xf32>
    %184 = vector.shape_cast %181 : vector<288x16xf32> to vector<1x288x16xf32>
    tpu.vector_store %arg10[%c0_172, %c0_173, %c0_174], %184 {strides = array<i32>} : memref<1x288x16xf32, #tpu.memory_space<vmem>>, vector<1x288x16xf32>,
    return
  }
  func.func @transform_0(%arg0: i32) -> (i32, i32, i32) {
    %c0_i32 = arith.constant 0 : i32
    %c0_i32_0 = arith.constant 0 : i32
    %c0_i32_1 = arith.constant 0 : i32
    return %arg0, %c0_i32, %c0_i32_0 : i32, i32, i32
  }
  func.func @transform_1(%arg0: i32) -> (i32, i32, i32) {
    %c0_i32 = arith.constant 0 : i32
    %c0_i32_0 = arith.constant 0 : i32
    %c0_i32_1 = arith.constant 0 : i32
    return %arg0, %c0_i32, %c0_i32_0 : i32, i32, i32
  }
  func.func @transform_2(%arg0: i32) -> (i32, i32) {
    %c0_i32 = arith.constant 0 : i32
    %c0_i32_0 = arith.constant 0 : i32
    %c0_i32_1 = arith.constant 0 : i32
    return %c0_i32, %c0_i32_0 : i32, i32
  }
  func.func @transform_3(%arg0: i32) -> (i32, i32) {
    %c0_i32 = arith.constant 0 : i32
    %c0_i32_0 = arith.constant 0 : i32
    %c0_i32_1 = arith.constant 0 : i32
    return %c0_i32, %c0_i32_0 : i32, i32
  }
  func.func @transform_4(%arg0: i32) -> (i32, i32, i32) {
    %c0_i32 = arith.constant 0 : i32
    %c0_i32_0 = arith.constant 0 : i32
    %c0_i32_1 = arith.constant 0 : i32
    %c0_i32_2 = arith.constant 0 : i32
    return %c0_i32, %c0_i32_0, %c0_i32_1 : i32, i32, i32
  }
  func.func @transform_5(%arg0: i32) -> (i32, i32) {
    %c0_i32 = arith.constant 0 : i32
    %c0_i32_0 = arith.constant 0 : i32
    %c0_i32_1 = arith.constant 0 : i32
    return %c0_i32, %c0_i32_0 : i32, i32
  }
  func.func @transform_6(%arg0: i32) -> (i32, i32, i32) {
    %c0_i32 = arith.constant 0 : i32
    %c0_i32_0 = arith.constant 0 : i32
    %c0_i32_1 = arith.constant 0 : i32
    %c0_i32_2 = arith.constant 0 : i32
    return %c0_i32, %c0_i32_0, %c0_i32_1 : i32, i32, i32
  }
  func.func @transform_7(%arg0: i32) -> (i32, i32) {
    %c0_i32 = arith.constant 0 : i32
    %c0_i32_0 = arith.constant 0 : i32
    %c0_i32_1 = arith.constant 0 : i32
    return %c0_i32, %c0_i32_0 : i32, i32
  }
  func.func @transform_8(%arg0: i32) -> (i32, i32) {
    %c0_i32 = arith.constant 0 : i32
    %c0_i32_0 = arith.constant 0 : i32
    %c0_i32_1 = arith.constant 0 : i32
    return %c0_i32, %c0_i32_0 : i32, i32
  }
  func.func @transform_9(%arg0: i32) -> (i32, i32, i32) {
    %c0_i32 = arith.constant 0 : i32
    %c0_i32_0 = arith.constant 0 : i32
    %c0_i32_1 = arith.constant 0 : i32
    return %arg0, %c0_i32, %c0_i32_0 : i32, i32, i32
  }
}

</mosaic_0001>

<bundles_post_ra>
// kernel: tile.18
= control target key start
LH: loop header
LB: loop body
LE: loop exit
PB: predicated region body
PF: predicated region fallthrough
CT: control target
= control target key end

     0   :  { %s28_s0 = inlined_call_operand.vmem [shape: f32[18], index: 0, kind: input, shape index: {}]   ;;  %s29_s1 = inlined_call_operand.vmem [shape: f32[16,18], index: 1, kind: output, shape index: {}]  }
   0x1   :  { %v4_v0 = vld [vmem:[%s28_s0] ss:$0 sm:$0xff] }
   0x2   :  { %5 = vst [vmem:[%s29_s1] sm:$0xff] %v4_v0  ;;  %8 = vst [vmem:[%s29_s1 + $0x8] sm:$0xff] %v4_v0 }

// kernel: tile.0
= control target key start
LH: loop header
LB: loop body
LE: loop exit
PB: predicated region body
PF: predicated region fallthrough
CT: control target
= control target key end

     0   :  { %s607_s10 = smov 126   ;;  %s608_s11 = smov 127   ;;  %vm3_vm0 = vcmask 7168   ;;  %s1250_s0 = inlined_call_operand.vmem [shape: f32[16,18], index: 0, kind: input, shape index: {}]   ;;  %s1251_s1 = inlined_call_operand.vmem [shape: f32[288,1], index: 1, kind: output, shape index: {}]  }
   0x1   :  { %v35_v0 = vld.sshfl [vmem:[%s1250_s0] sm:$0xff pattern:$0x6d4b2907]   ;;  %v450_v2 = vld.sshfl [vmem:[%s1250_s0 + $0x1] sm:$0xff pattern:$0xd4b2907e]  }
   0x2   :  { %v640_v1 = vld.sshfl [vmem:[%s1250_s0] sm:$0xff pattern:$0xf6d4b290]   ;;  %36 = vrot.lane.b32.xlu1 %v35_v0, %s607_s10  ;;  %v649_v3 = vld.sshfl [vmem:[%s1250_s0 + $0x1] sm:$0xff pattern:$0x6d4b2907]  }
   0x3   :  { %11 = vrot.lane.b32.xlu0 %v640_v1, %s608_s11  ;;  %s609_s16 = smov 125   ;;  %v468_v4 = vld.sshfl [vmem:[%s1250_s0 + $0x1] sm:$0xff pattern:$0x4b2907e5]   ;;  %s610_s21 = smov 124  }
   0x4   :  { %v85_v5 = vld.sshfl [vmem:[%s1250_s0] sm:$0xff pattern:$0xd4b2907e]   ;;  %s611_s22 = smov 123   ;;  %s612_s27 = smov 122  }
   0x5   :  { %v486_v6 = vld.sshfl [vmem:[%s1250_s0 + $0x1] sm:$0xff pattern:$0xb2907e5c]   ;;  %v135_v7 = vld.sshfl [vmem:[%s1250_s0] sm:$0xff pattern:$0x4b2907e5]  }
   0x6   :  { %49 = vrot.lane.b32.xlu1 %v450_v2, %s607_s10  ;;  %s613_s28 = smov 121   ;;  %v504_v8 = vld.sshfl [vmem:[%s1250_s0 + $0x1] sm:$0xff pattern:$0x2907e5c3]   ;;  %s614_s4 = smov 120  }
   0x7   :  { %24 = vrot.lane.b32.xlu0 %v649_v3, %s608_s11  ;;  %v185_v9 = vld.sshfl [vmem:[%s1250_s0] sm:$0xff pattern:$0xb2907e5c]   ;;  %s615_s5 = smov 119   ;;  %s616_s10 = smov 118  }
   0x8   :  { %v522_v10 = vld.sshfl [vmem:[%s1250_s0 + $0x1] sm:$0xff pattern:$0x907e5c3a]   ;;  %v235_v11 = vld.sshfl [vmem:[%s1250_s0] sm:$0xff pattern:$0x2907e5c3]  }
   0x9   :  { %s617_s11 = smov 117   ;;  %v540_v12 = vld.sshfl [vmem:[%s1250_s0 + $0x1] sm:$0xff pattern:$0x7e5c3a1]   ;;  %s619_s17 = smov 115  }
   0xa   :  { %74 = vrot.lane.b32.xlu1 %v450_v2, %s609_s16  ;;  %v285_v13 = vld.sshfl [vmem:[%s1250_s0] sm:$0xff pattern:$0x907e5c3a]   ;;  %s620_s29 = smov 114   ;;  %s621_s30 = smov 113  }
   0xb   :  { %61 = vrot.lane.b32.xlu0 %v35_v0, %s609_s16  ;;  %s618_s16 = smov 116   ;;  %v558_v14 = vld.sshfl [vmem:[%s1250_s0 + $0x2] sm:$0xff pattern:$0x6d4b2907]   ;;  %s622_s2 = smov 112  }
   0xc   :  { %v335_v15 = vld.sshfl [vmem:[%s1250_s0] sm:$0xff pattern:$0x7e5c3a1]   ;;  %s623_s3 = smov 111  }
   0xd   :  { %v2_v16 = vld [vmem:[%s1250_s0] sm:$0xff]   ;;  %v435_v17 = vld [vmem:[%s1250_s0 + $0x8] sm:$0xff]  }
   0xe   :  { %99 = vrot.lane.b32.xlu1 %v468_v4, %s610_s21  ;;  %4 = vst.msk [vmem:[%s1251_s1] ss:$18 sm:$0xff] %vm3_vm0, %v2_v16   ;;  %436 = vst.msk [vmem:[%s1251_s1 + $0x90] ss:$18 sm:$0xff] %vm3_vm0, %v435_v17  }
   0xf   :  { %86 = vrot.lane.b32.xlu0 %v85_v5, %s610_s21 }
  0x12   :  { %124 = vrot.lane.b32.xlu1 %v468_v4, %s611_s22 }
  0x13   :  { %111 = vrot.lane.b32.xlu0 %v85_v5, %s611_s22 }
  0x16   :  { %149 = vrot.lane.b32.xlu1 %v486_v6, %s612_s27 }
  0x17   :  { %136 = vrot.lane.b32.xlu0 %v135_v7, %s612_s27 }
  0x1a   :  { %174 = vrot.lane.b32.xlu1 %v486_v6, %s613_s28 }
  0x1b   :  { %161 = vrot.lane.b32.xlu0 %v135_v7, %s613_s28 }
  0x1e   :  { %199 = vrot.lane.b32.xlu1 %v504_v8, %s614_s4 }
  0x1f   :  { %186 = vrot.lane.b32.xlu0 %v185_v9, %s614_s4 }
  0x22   :  { %224 = vrot.lane.b32.xlu1 %v504_v8, %s615_s5 }
  0x23   :  { %211 = vrot.lane.b32.xlu0 %v185_v9, %s615_s5 }
  0x26   :  { %249 = vrot.lane.b32.xlu1 %v522_v10, %s616_s10 }
  0x27   :  { %236 = vrot.lane.b32.xlu0 %v235_v11, %s616_s10 }
  0x2a   :  { %274 = vrot.lane.b32.xlu1 %v522_v10, %s617_s11 }
  0x2b   :  { %261 = vrot.lane.b32.xlu0 %v235_v11, %s617_s11 }
  0x2e   :  { %299 = vrot.lane.b32.xlu1 %v540_v12, %s618_s16 }
  0x2f   :  { %286 = vrot.lane.b32.xlu0 %v285_v13, %s618_s16 }
  0x32   :  { %324 = vrot.lane.b32.xlu1 %v540_v12, %s619_s17 }
  0x33   :  { %311 = vrot.lane.b32.xlu0 %v285_v13, %s619_s17 }
  0x36   :  { %349 = vrot.lane.b32.xlu1 %v558_v14, %s620_s29 }
  0x37   :  { %336 = vrot.lane.b32.xlu0 %v335_v15, %s620_s29 }
  0x3a   :  { %374 = vrot.lane.b32.xlu1 %v558_v14, %s621_s30 }
  0x3b   :  { %361 = vrot.lane.b32.xlu0 %v335_v15, %s621_s30 }
  0x3e   :  { %399 = vrot.lane.b32.xlu1 %v640_v1, %s622_s2 }
  0x3f   :  { %387 = vrot.lane.b32.xlu0 %v649_v3, %s622_s2 }
  0x42   :  { %424 = vrot.lane.b32.xlu1 %v640_v1, %s623_s3 }
  0x43   :  { %412 = vrot.lane.b32.xlu0 %v649_v3, %s623_s3 }
  0x74   :  { %v37_v18 = vpop.permute.xlu1 %36  }
  0x75   :  { %v12_v19 = vpop.permute.xlu0 %11   ;;  %446 = vst.msk [vmem:[%s1251_s1 + $0x80] ss:$-126 sm:$0x3] %vm3_vm0, %v37_v18   ;;  %447 = vst.msk [vmem:[%s1251_s1 + $0x1a0] ss:$-126 sm:$0xc] %vm3_vm0, %v37_v18  }
  0x76   :  { %448 = vst.msk [vmem:[%s1251_s1 + $0x2c0] ss:$-126 sm:$0x30] %vm3_vm0, %v37_v18   ;;  %449 = vst.msk [vmem:[%s1251_s1 + $0x3e0] ss:$-126 sm:$0xc0] %vm3_vm0, %v37_v18  }
  0x77   :  { %437 = vst.msk [vmem:[%s1251_s1 + $0x1] ss:$162 sm:$0x3] %vm3_vm0, %v12_v19   ;;  %438 = vst.msk [vmem:[%s1251_s1 - $0x11f] ss:$162 sm:$0xc] %vm3_vm0, %v12_v19  }
  0x78   :  { %439 = vst.msk [vmem:[%s1251_s1 - $0x23f] ss:$162 sm:$0x30] %vm3_vm0, %v12_v19   ;;  %440 = vst.msk [vmem:[%s1251_s1 - $0x35f] ss:$162 sm:$0xc0] %vm3_vm0, %v12_v19   ;;  %v50_v20 = vpop.permute.xlu1 %49  }
  0x79   :  { %v25_v21 = vpop.permute.xlu0 %24   ;;  %451 = vst.msk [vmem:[%s1251_s1 + $0x110] ss:$-126 sm:$0x7] %vm3_vm0, %v50_v20   ;;  %452 = vst.msk [vmem:[%s1251_s1 + $0x230] ss:$-126 sm:$0x18] %vm3_vm0, %v50_v20  }
  0x7a   :  { %453 = vst.msk [vmem:[%s1251_s1 + $0x350] ss:$-126 sm:$0x60] %vm3_vm0, %v50_v20   ;;  %454 = vst.msk [vmem:[%s1251_s1 + $0xf7] sm:$0x80] %vm3_vm0, %v50_v20  }
  0x7b   :  { %442 = vst.msk [vmem:[%s1251_s1 + $0x91] ss:$-126 sm:$0x3] %vm3_vm0, %v25_v21   ;;  %443 = vst.msk [vmem:[%s1251_s1 + $0x1b1] ss:$-126 sm:$0xc] %vm3_vm0, %v25_v21  }
  0x7c   :  { %444 = vst.msk [vmem:[%s1251_s1 + $0x2d1] ss:$-126 sm:$0x30] %vm3_vm0, %v25_v21   ;;  %445 = vst.msk [vmem:[%s1251_s1 + $0x3f1] ss:$-126 sm:$0xc0] %vm3_vm0, %v25_v21   ;;  %v75_v22 = vpop.permute.xlu1 %74  }
  0x7d   :  { %v62_v23 = vpop.permute.xlu0 %61   ;;  %460 = vst.msk [vmem:[%s1251_s1 + $0x111] ss:$-126 sm:$0x7] %vm3_vm0, %v75_v22   ;;  %461 = vst.msk [vmem:[%s1251_s1 + $0x231] ss:$-126 sm:$0x18] %vm3_vm0, %v75_v22  }
  0x7e   :  { %462 = vst.msk [vmem:[%s1251_s1 + $0x351] ss:$-126 sm:$0x60] %vm3_vm0, %v75_v22   ;;  %463 = vst.msk [vmem:[%s1251_s1 + $0xf8] sm:$0x80] %vm3_vm0, %v75_v22  }
  0x7f   :  { %455 = vst.msk [vmem:[%s1251_s1 + $0x81] ss:$-126 sm:$0x3] %vm3_vm0, %v62_v23   ;;  %456 = vst.msk [vmem:[%s1251_s1 + $0x1a1] ss:$-126 sm:$0xc] %vm3_vm0, %v62_v23  }
  0x80   :  { %457 = vst.msk [vmem:[%s1251_s1 + $0x2c1] ss:$-126 sm:$0x30] %vm3_vm0, %v62_v23   ;;  %458 = vst.msk [vmem:[%s1251_s1 + $0x3e1] ss:$-126 sm:$0xc0] %vm3_vm0, %v62_v23   ;;  %v100_v24 = vpop.permute.xlu1 %99  }
  0x81   :  { %v87_v25 = vpop.permute.xlu0 %86   ;;  %469 = vst.msk [vmem:[%s1251_s1 + $0x70] ss:$162 sm:$0x3] %vm3_vm0, %v100_v24   ;;  %470 = vst.msk [vmem:[%s1251_s1 + $0x190] ss:$-126 sm:$0xc] %vm3_vm0, %v100_v24  }
  0x82   :  { %471 = vst.msk [vmem:[%s1251_s1 + $0x2b0] ss:$-126 sm:$0x30] %vm3_vm0, %v100_v24   ;;  %472 = vst.msk [vmem:[%s1251_s1 + $0x3d0] ss:$-126 sm:$0xc0] %vm3_vm0, %v100_v24  }
  0x83   :  { %464 = vst.msk [vmem:[%s1251_s1 + $0x100] ss:$-126 sm:$0x7] %vm3_vm0, %v87_v25   ;;  %465 = vst.msk [vmem:[%s1251_s1 + $0x220] ss:$-126 sm:$0x18] %vm3_vm0, %v87_v25  }
  0x84   :  { %466 = vst.msk [vmem:[%s1251_s1 + $0x340] ss:$-126 sm:$0x60] %vm3_vm0, %v87_v25   ;;  %467 = vst.msk [vmem:[%s1251_s1 + $0xe7] sm:$0x80] %vm3_vm0, %v87_v25   ;;  %v125_v26 = vpop.permute.xlu1 %124  }
  0x85   :  { %v112_v27 = vpop.permute.xlu0 %111   ;;  %478 = vst.msk [vmem:[%s1251_s1 + $0x71] ss:$162 sm:$0x3] %vm3_vm0, %v125_v26   ;;  %479 = vst.msk [vmem:[%s1251_s1 + $0x191] ss:$-126 sm:$0xc] %vm3_vm0, %v125_v26  }
  0x86   :  { %480 = vst.msk [vmem:[%s1251_s1 + $0x2b1] ss:$-126 sm:$0x30] %vm3_vm0, %v125_v26   ;;  %481 = vst.msk [vmem:[%s1251_s1 + $0x3d1] ss:$-126 sm:$0xc0] %vm3_vm0, %v125_v26  }
  0x87   :  { %473 = vst.msk [vmem:[%s1251_s1 + $0x101] ss:$-126 sm:$0x7] %vm3_vm0, %v112_v27   ;;  %474 = vst.msk [vmem:[%s1251_s1 + $0x221] ss:$-126 sm:$0x18] %vm3_vm0, %v112_v27  }
  0x88   :  { %475 = vst.msk [vmem:[%s1251_s1 + $0x341] ss:$-126 sm:$0x60] %vm3_vm0, %v112_v27   ;;  %476 = vst.msk [vmem:[%s1251_s1 + $0xe8] sm:$0x80] %vm3_vm0, %v112_v27   ;;  %v150_v28 = vpop.permute.xlu1 %149  }
  0x89   :  { %v137_v29 = vpop.permute.xlu0 %136   ;;  %487 = vst.msk [vmem:[%s1251_s1 + $0xf0] ss:$-126 sm:$0x3] %vm3_vm0, %v150_v28   ;;  %488 = vst.msk [vmem:[%s1251_s1 + $0x210] ss:$-126 sm:$0x1c] %vm3_vm0, %v150_v28  }
  0x8a   :  { %489 = vst.msk [vmem:[%s1251_s1 + $0x330] ss:$-126 sm:$0x60] %vm3_vm0, %v150_v28   ;;  %490 = vst.msk [vmem:[%s1251_s1 + $0xd7] sm:$0x80] %vm3_vm0, %v150_v28  }
  0x8b   :  { %482 = vst.msk [vmem:[%s1251_s1 + $0x60] ss:$162 sm:$0x3] %vm3_vm0, %v137_v29   ;;  %483 = vst.msk [vmem:[%s1251_s1 + $0x180] ss:$-126 sm:$0xc] %vm3_vm0, %v137_v29  }
  0x8c   :  { %484 = vst.msk [vmem:[%s1251_s1 + $0x2a0] ss:$-126 sm:$0x30] %vm3_vm0, %v137_v29   ;;  %485 = vst.msk [vmem:[%s1251_s1 + $0x3c0] ss:$-126 sm:$0xc0] %vm3_vm0, %v137_v29   ;;  %v175_v30 = vpop.permute.xlu1 %174  }
  0x8d   :  { %v162_v31 = vpop.permute.xlu0 %161   ;;  %496 = vst.msk [vmem:[%s1251_s1 + $0xf1] ss:$-126 sm:$0x3] %vm3_vm0, %v175_v30   ;;  %497 = vst.msk [vmem:[%s1251_s1 + $0x211] ss:$-126 sm:$0x1c] %vm3_vm0, %v175_v30  }
  0x8e   :  { %498 = vst.msk [vmem:[%s1251_s1 + $0x331] ss:$-126 sm:$0x60] %vm3_vm0, %v175_v30   ;;  %499 = vst.msk [vmem:[%s1251_s1 + $0xd8] sm:$0x80] %vm3_vm0, %v175_v30  }
  0x8f   :  { %491 = vst.msk [vmem:[%s1251_s1 + $0x61] ss:$162 sm:$0x3] %vm3_vm0, %v162_v31   ;;  %492 = vst.msk [vmem:[%s1251_s1 + $0x181] ss:$-126 sm:$0xc] %vm3_vm0, %v162_v31  }
  0x90   :  { %493 = vst.msk [vmem:[%s1251_s1 + $0x2a1] ss:$-126 sm:$0x30] %vm3_vm0, %v162_v31   ;;  %494 = vst.msk [vmem:[%s1251_s1 + $0x3c1] ss:$-126 sm:$0xc0] %vm3_vm0, %v162_v31   ;;  %v200_v32 = vpop.permute.xlu1 %199  }
  0x91   :  { %v187_v33 = vpop.permute.xlu0 %186   ;;  %505 = vst.msk [vmem:[%s1251_s1 + $0x50] ss:$162 sm:$0x3] %vm3_vm0, %v200_v32   ;;  %506 = vst.msk [vmem:[%s1251_s1 - $0xd0] ss:$162 sm:$0xc] %vm3_vm0, %v200_v32  }
  0x92   :  { %507 = vst.msk [vmem:[%s1251_s1 + $0x290] ss:$-126 sm:$0x30] %vm3_vm0, %v200_v32   ;;  %508 = vst.msk [vmem:[%s1251_s1 + $0x3b0] ss:$-126 sm:$0xc0] %vm3_vm0, %v200_v32  }
  0x93   :  { %500 = vst.msk [vmem:[%s1251_s1 + $0xe0] ss:$-126 sm:$0x3] %vm3_vm0, %v187_v33   ;;  %501 = vst.msk [vmem:[%s1251_s1 + $0x200] ss:$-126 sm:$0x1c] %vm3_vm0, %v187_v33  }
  0x94   :  { %502 = vst.msk [vmem:[%s1251_s1 + $0x320] ss:$-126 sm:$0x60] %vm3_vm0, %v187_v33   ;;  %503 = vst.msk [vmem:[%s1251_s1 + $0xc7] sm:$0x80] %vm3_vm0, %v187_v33   ;;  %v225_v34 = vpop.permute.xlu1 %224  }
  0x95   :  { %v212_v35 = vpop.permute.xlu0 %211   ;;  %514 = vst.msk [vmem:[%s1251_s1 + $0x51] ss:$162 sm:$0x3] %vm3_vm0, %v225_v34   ;;  %515 = vst.msk [vmem:[%s1251_s1 - $0xcf] ss:$162 sm:$0xc] %vm3_vm0, %v225_v34  }
  0x96   :  { %516 = vst.msk [vmem:[%s1251_s1 + $0x291] ss:$-126 sm:$0x30] %vm3_vm0, %v225_v34   ;;  %517 = vst.msk [vmem:[%s1251_s1 + $0x3b1] ss:$-126 sm:$0xc0] %vm3_vm0, %v225_v34  }
  0x97   :  { %509 = vst.msk [vmem:[%s1251_s1 + $0xe1] ss:$-126 sm:$0x3] %vm3_vm0, %v212_v35   ;;  %510 = vst.msk [vmem:[%s1251_s1 + $0x201] ss:$-126 sm:$0x1c] %vm3_vm0, %v212_v35  }
  0x98   :  { %511 = vst.msk [vmem:[%s1251_s1 + $0x321] ss:$-126 sm:$0x60] %vm3_vm0, %v212_v35   ;;  %512 = vst.msk [vmem:[%s1251_s1 + $0xc8] sm:$0x80] %vm3_vm0, %v212_v35   ;;  %v250_v36 = vpop.permute.xlu1 %249  }
  0x99   :  { %v237_v37 = vpop.permute.xlu0 %236   ;;  %523 = vst.msk [vmem:[%s1251_s1 + $0xd0] ss:$-126 sm:$0x3] %vm3_vm0, %v250_v36   ;;  %524 = vst.msk [vmem:[%s1251_s1 + $0x1f0] ss:$-126 sm:$0xc] %vm3_vm0, %v250_v36  }
  0x9a   :  { %525 = vst.msk [vmem:[%s1251_s1 + $0x310] ss:$-126 sm:$0x70] %vm3_vm0, %v250_v36   ;;  %526 = vst.msk [vmem:[%s1251_s1 + $0xb7] sm:$0x80] %vm3_vm0, %v250_v36  }
  0x9b   :  { %518 = vst.msk [vmem:[%s1251_s1 + $0x40] ss:$162 sm:$0x3] %vm3_vm0, %v237_v37   ;;  %519 = vst.msk [vmem:[%s1251_s1 - $0xe0] ss:$162 sm:$0xc] %vm3_vm0, %v237_v37  }
  0x9c   :  { %520 = vst.msk [vmem:[%s1251_s1 + $0x280] ss:$-126 sm:$0x30] %vm3_vm0, %v237_v37   ;;  %521 = vst.msk [vmem:[%s1251_s1 + $0x3a0] ss:$-126 sm:$0xc0] %vm3_vm0, %v237_v37   ;;  %v275_v38 = vpop.permute.xlu1 %274  }
  0x9d   :  { %v262_v39 = vpop.permute.xlu0 %261   ;;  %532 = vst.msk [vmem:[%s1251_s1 + $0xd1] ss:$-126 sm:$0x3] %vm3_vm0, %v275_v38   ;;  %533 = vst.msk [vmem:[%s1251_s1 + $0x1f1] ss:$-126 sm:$0xc] %vm3_vm0, %v275_v38  }
  0x9e   :  { %534 = vst.msk [vmem:[%s1251_s1 + $0x311] ss:$-126 sm:$0x70] %vm3_vm0, %v275_v38   ;;  %535 = vst.msk [vmem:[%s1251_s1 + $0xb8] sm:$0x80] %vm3_vm0, %v275_v38  }
  0x9f   :  { %527 = vst.msk [vmem:[%s1251_s1 + $0x41] ss:$162 sm:$0x3] %vm3_vm0, %v262_v39   ;;  %528 = vst.msk [vmem:[%s1251_s1 - $0xdf] ss:$162 sm:$0xc] %vm3_vm0, %v262_v39  }
  0xa0   :  { %529 = vst.msk [vmem:[%s1251_s1 + $0x281] ss:$-126 sm:$0x30] %vm3_vm0, %v262_v39   ;;  %530 = vst.msk [vmem:[%s1251_s1 + $0x3a1] ss:$-126 sm:$0xc0] %vm3_vm0, %v262_v39   ;;  %v300_v40 = vpop.permute.xlu1 %299  }
  0xa1   :  { %v287_v41 = vpop.permute.xlu0 %286   ;;  %541 = vst.msk [vmem:[%s1251_s1 + $0x30] ss:$162 sm:$0x3] %vm3_vm0, %v300_v40   ;;  %542 = vst.msk [vmem:[%s1251_s1 - $0xf0] ss:$162 sm:$0xc] %vm3_vm0, %v300_v40  }
  0xa2   :  { %543 = vst.msk [vmem:[%s1251_s1 - $0x210] ss:$162 sm:$0x30] %vm3_vm0, %v300_v40   ;;  %544 = vst.msk [vmem:[%s1251_s1 + $0x390] ss:$-126 sm:$0xc0] %vm3_vm0, %v300_v40  }
  0xa3   :  { %536 = vst.msk [vmem:[%s1251_s1 + $0xc0] ss:$-126 sm:$0x3] %vm3_vm0, %v287_v41   ;;  %537 = vst.msk [vmem:[%s1251_s1 + $0x1e0] ss:$-126 sm:$0xc] %vm3_vm0, %v287_v41  }
  0xa4   :  { %538 = vst.msk [vmem:[%s1251_s1 + $0x300] ss:$-126 sm:$0x70] %vm3_vm0, %v287_v41   ;;  %539 = vst.msk [vmem:[%s1251_s1 + $0xa7] sm:$0x80] %vm3_vm0, %v287_v41   ;;  %v325_v42 = vpop.permute.xlu1 %324  }
  0xa5   :  { %v312_v43 = vpop.permute.xlu0 %311   ;;  %550 = vst.msk [vmem:[%s1251_s1 + $0x31] ss:$162 sm:$0x3] %vm3_vm0, %v325_v42   ;;  %551 = vst.msk [vmem:[%s1251_s1 - $0xef] ss:$162 sm:$0xc] %vm3_vm0, %v325_v42  }
  0xa6   :  { %552 = vst.msk [vmem:[%s1251_s1 - $0x20f] ss:$162 sm:$0x30] %vm3_vm0, %v325_v42   ;;  %553 = vst.msk [vmem:[%s1251_s1 + $0x391] ss:$-126 sm:$0xc0] %vm3_vm0, %v325_v42  }
  0xa7   :  { %545 = vst.msk [vmem:[%s1251_s1 + $0xc1] ss:$-126 sm:$0x3] %vm3_vm0, %v312_v43   ;;  %546 = vst.msk [vmem:[%s1251_s1 + $0x1e1] ss:$-126 sm:$0xc] %vm3_vm0, %v312_v43  }
  0xa8   :  { %547 = vst.msk [vmem:[%s1251_s1 + $0x301] ss:$-126 sm:$0x70] %vm3_vm0, %v312_v43   ;;  %548 = vst.msk [vmem:[%s1251_s1 + $0xa8] sm:$0x80] %vm3_vm0, %v312_v43   ;;  %v350_v44 = vpop.permute.xlu1 %349  }
  0xa9   :  { %v337_v45 = vpop.permute.xlu0 %336   ;;  %559 = vst.msk [vmem:[%s1251_s1 + $0xb0] ss:$-126 sm:$0x3] %vm3_vm0, %v350_v44   ;;  %560 = vst.msk [vmem:[%s1251_s1 + $0x1d0] ss:$-126 sm:$0xc] %vm3_vm0, %v350_v44  }
  0xaa   :  { %561 = vst.msk [vmem:[%s1251_s1 + $0x2f0] ss:$-126 sm:$0x30] %vm3_vm0, %v350_v44   ;;  %562 = vst.msk [vmem:[%s1251_s1 + $0x410] ss:$-126 sm:$0xc0] %vm3_vm0, %v350_v44  }
  0xab   :  { %554 = vst.msk [vmem:[%s1251_s1 + $0x20] ss:$162 sm:$0x3] %vm3_vm0, %v337_v45   ;;  %555 = vst.msk [vmem:[%s1251_s1 - $0x100] ss:$162 sm:$0xc] %vm3_vm0, %v337_v45  }
  0xac   :  { %556 = vst.msk [vmem:[%s1251_s1 - $0x220] ss:$162 sm:$0x30] %vm3_vm0, %v337_v45   ;;  %557 = vst.msk [vmem:[%s1251_s1 + $0x380] ss:$-126 sm:$0xc0] %vm3_vm0, %v337_v45   ;;  %v375_v46 = vpop.permute.xlu1 %374  }
  0xad   :  { %v362_v47 = vpop.permute.xlu0 %361   ;;  %568 = vst.msk [vmem:[%s1251_s1 + $0xb1] ss:$-126 sm:$0x3] %vm3_vm0, %v375_v46   ;;  %569 = vst.msk [vmem:[%s1251_s1 + $0x1d1] ss:$-126 sm:$0xc] %vm3_vm0, %v375_v46  }
  0xae   :  { %570 = vst.msk [vmem:[%s1251_s1 + $0x2f1] ss:$-126 sm:$0x30] %vm3_vm0, %v375_v46   ;;  %571 = vst.msk [vmem:[%s1251_s1 + $0x411] ss:$-126 sm:$0xc0] %vm3_vm0, %v375_v46  }
  0xaf   :  { %563 = vst.msk [vmem:[%s1251_s1 + $0x21] ss:$162 sm:$0x3] %vm3_vm0, %v362_v47   ;;  %564 = vst.msk [vmem:[%s1251_s1 - $0xff] ss:$162 sm:$0xc] %vm3_vm0, %v362_v47  }
  0xb0   :  { %565 = vst.msk [vmem:[%s1251_s1 - $0x21f] ss:$162 sm:$0x30] %vm3_vm0, %v362_v47   ;;  %566 = vst.msk [vmem:[%s1251_s1 + $0x381] ss:$-126 sm:$0xc0] %vm3_vm0, %v362_v47   ;;  %v400_v48 = vpop.permute.xlu1 %399  }
  0xb1   :  { %v388_v49 = vpop.permute.xlu0 %387   ;;  %577 = vst.msk [vmem:[%s1251_s1 + $0x10] ss:$162 sm:$0x3] %vm3_vm0, %v400_v48   ;;  %578 = vst.msk [vmem:[%s1251_s1 - $0x110] ss:$162 sm:$0xc] %vm3_vm0, %v400_v48  }
  0xb2   :  { %579 = vst.msk [vmem:[%s1251_s1 - $0x230] ss:$162 sm:$0x30] %vm3_vm0, %v400_v48   ;;  %580 = vst.msk [vmem:[%s1251_s1 - $0x350] ss:$162 sm:$0xc0] %vm3_vm0, %v400_v48  }
  0xb3   :  { %573 = vst.msk [vmem:[%s1251_s1 + $0xa0] ss:$-126 sm:$0x3] %vm3_vm0, %v388_v49   ;;  %574 = vst.msk [vmem:[%s1251_s1 + $0x1c0] ss:$-126 sm:$0xc] %vm3_vm0, %v388_v49  }
  0xb4   :  { %575 = vst.msk [vmem:[%s1251_s1 + $0x2e0] ss:$-126 sm:$0x30] %vm3_vm0, %v388_v49   ;;  %576 = vst.msk [vmem:[%s1251_s1 + $0x400] ss:$-126 sm:$0xc0] %vm3_vm0, %v388_v49   ;;  %v425_v50 = vpop.permute.xlu1 %424  }
  0xb5   :  { %v413_v51 = vpop.permute.xlu0 %412   ;;  %586 = vst.msk [vmem:[%s1251_s1 + $0x11] ss:$162 sm:$0x3] %vm3_vm0, %v425_v50   ;;  %587 = vst.msk [vmem:[%s1251_s1 - $0x10f] ss:$162 sm:$0xc] %vm3_vm0, %v425_v50  }
  0xb6   :  { %588 = vst.msk [vmem:[%s1251_s1 - $0x22f] ss:$162 sm:$0x30] %vm3_vm0, %v425_v50   ;;  %589 = vst.msk [vmem:[%s1251_s1 - $0x34f] ss:$162 sm:$0xc0] %vm3_vm0, %v425_v50  }
  0xb7   :  { %582 = vst.msk [vmem:[%s1251_s1 + $0xa1] ss:$-126 sm:$0x3] %vm3_vm0, %v413_v51   ;;  %583 = vst.msk [vmem:[%s1251_s1 + $0x1c1] ss:$-126 sm:$0xc] %vm3_vm0, %v413_v51  }
  0xb8   :  { %584 = vst.msk [vmem:[%s1251_s1 + $0x2e1] ss:$-126 sm:$0x30] %vm3_vm0, %v413_v51   ;;  %585 = vst.msk [vmem:[%s1251_s1 + $0x401] ss:$-126 sm:$0xc0] %vm3_vm0, %v413_v51  }

// kernel: tile.13
= control target key start
LH: loop header
LB: loop body
LE: loop exit
PB: predicated region body
PF: predicated region fallthrough
CT: control target
= control target key end

     0   :  { %s22_s0 = inlined_call_operand.vmem [shape: f32[32], index: 0, kind: input, shape index: {}]   ;;  %s23_s1 = inlined_call_operand.vmem [shape: f32[2,32], index: 1, kind: output, shape index: {}]  }
   0x1   :  { %v4_v0 = vld [vmem:[%s22_s0] ss:$0 sm:$0xff] }
   0x2   :  { %5 = vst [vmem:[%s23_s1] sm:$0x3] %v4_v0 }

// kernel: tile.14
= control target key start
LH: loop header
LB: loop body
LE: loop exit
PB: predicated region body
PF: predicated region fallthrough
CT: control target
= control target key end

     0   :  { %vm7_vm0 = vcmask 261120   ;;  %vm13_vm1 = vcmask 523520   ;;  %s39_s0 = inlined_call_operand.vmem [shape: f32[2,32], index: 0, kind: input, shape index: {}]   ;;  %s40_s1 = inlined_call_operand.vmem [shape: f32[1,64], index: 1, kind: output, shape index: {}]  }
   0x1   :  { %v4_v0 = vld [vmem:[%s39_s0] sm:$0x3]  ;;  %s22_s0 = smov 32  }
   0x2   :  { %5 = vst [vmem:[#allocation1] sm:$0x3] %v4_v0 }
   0x9   :  { %v10_v1 = vld [vmem:[#allocation1 + $0x1] sm:$0x1]   ;;  %v6_v2 = vld [vmem:[#allocation1] sm:$0x1]  }
   0xa   :  { %11 = vrot.lane.b32.xlu0 %v10_v1, %s22_s0  ;;  %8 = vst.msk [vmem:[#allocation0] sm:$0x1] %vm7_vm0, %v6_v2  }
  0x7c   :  { %v12_v3 = vpop.permute.xlu0 %11  }
  0x7d   :  { %14 = vst.msk [vmem:[#allocation0] sm:$0x1] %vm13_vm1, %v12_v3  }
  0x84   :  { %v18_v4 = vld [vmem:[#allocation0] sm:$0x1] }
  0x85   :  { %20 = vst [vmem:[%s40_s1] sm:$0x1] %v18_v4 }

// kernel: up_forward.1
= control target key start
LH: loop header
LB: loop body
LE: loop exit
PB: predicated region body
PF: predicated region fallthrough
CT: control target
= control target key end

     0   :  { %s12495_s30 = smov 0   ;;  %s14509_s0 = inlined_call_operand.vmem [shape: f32[2,128,64], index: 0, kind: input, shape index: {}]   ;;  %s14510_s1 = inlined_call_operand.vmem [shape: f32[2,332,16], index: 1, kind: input, shape index: {}]   ;;  %s14511_s2 = inlined_call_operand.vmem [shape: f32[64,64], index: 2, kind: input, shape index: {}]   ;;  %s14512_s3 = inlined_call_operand.vmem [shape: f32[1,64], index: 3, kind: input, shape index: {}]   ;;  %s14513_s4 = inlined_call_operand.vmem [shape: f32[9,32,16], index: 4, kind: input, shape index: {}]   ;;  %s14514_s5 = inlined_call_operand.vmem [shape: f32[1,16], index: 5, kind: input, shape index: {}]   ;;  %s14515_s6 = inlined_call_operand.vmem [shape: f32[9,32,16], index: 6, kind: input, shape index: {}]   ;;  %s14516_s7 = inlined_call_operand.vmem [shape: f32[1,16], index: 7, kind: input, shape index: {}]   ;;  %s14517_s8 = inlined_call_operand.vmem [shape: f32[288,1], index: 8, kind: input, shape index: {}]   ;;  %s14518_s9 = inlined_call_operand.vmem [shape: f32[2,288,16], index: 9, kind: output, shape index: {}]  }
   0x1 LB: > { %s9034_s10 = sadd.s32 4294967295, %s12439_s30   ;;  %p9038_p0 = scmp.ge.s32.totalorder %s12439_s30, 1  ;;  %s12439_s30 = sphi %s12495_s30, %s19_s30  }
   0x2   : > { %p297_p1 = scmp.lt.s32.totalorder %s12439_s30, 3 }
   0x4   : > { %p298_p2 = pnand %p9038_p0, %p297_p1 }
   0x5   : > { %v369_v0 = vld [vmem:[%s14511_s2] sm:$0xff] (!%p298_p2)  ;;  %v370_v1 = vld [vmem:[%s14511_s2 + $0x8] sm:$0xff] (!%p298_p2)  ;;  %v371_v2 = vld [vmem:[%s14511_s2 + $0x10] sm:$0xff] (!%p298_p2)  ;;  %p338_p3 = scmp.lt.s32.totalorder (!%p298_p2), %s9034_s10, 1  ;;  %vm384_vm0 = vcmask (!%p298_p2), 523264   ;;  %vm578_vm1 = vcmask (!%p298_p2), 261120  }
   0x6   : > { %301 = sbr.rel (%p298_p2) target bundleno = 1998 (0x7ce), region = 56  ;;  %v11677_v3 = vpack.c.bf16 (!%p298_p2), %v370_v1, %v369_v0  ;;  %v372_v4 = vld [vmem:[%s14511_s2 + $0x18] sm:$0xff] (!%p298_p2)  ;;  %v373_v6 = vld [vmem:[%s14511_s2 + $0x20] sm:$0xff] (!%p298_p2)  ;;  %v374_v7 = vld [vmem:[%s14511_s2 + $0x28] sm:$0xff] (!%p298_p2)  ;;  %v12441_v31 = vmov (!%p298_p2), 0.0   ;;  %vm581_vm2 = vcmask (!%p298_p2), 256000  }
   0x7   : > { %v11681_v5 = vpack.c.bf16 (!%p298_p2), %v372_v4, %v371_v2  ;;  %v11685_v8 = vpack.c.bf16 (!%p298_p2), %v374_v7, %v373_v6  ;;  %v375_v9 = vld [vmem:[%s14511_s2 + $0x30] sm:$0xff] (!%p298_p2)  ;;  %v376_v10 = vld [vmem:[%s14511_s2 + $0x38] sm:$0xff] (!%p298_p2)  ;;  %v9060_v28 = vld [vmem:[%s14513_s4 + $0x20] sm:$0xff] (!%p298_p2)  ;;  %579 = vst.msk [vmem:[#allocation2] sm:$0xff] (!%p298_p2), %vm578_vm1, %v12441_v31  ;;  %vm587_vm3 = vcmask (!%p298_p2), 254976   ;;  %s12444_s16 = smov (!%p298_p2), 16  }
   0x8   : > { %11678 = vmatprep.subr.bf16.mxu0 (!%p298_p2), %v11677_v3  ;;  %v11689_v12 = vpack.c.bf16 (!%p298_p2), %v376_v10, %v375_v9  ;;  %v9061_v29 = vld [vmem:[%s14513_s4 + $0x28] sm:$0xff] (!%p298_p2)  ;;  %580 = vst.msk [vmem:[#allocation2 + $0x8] sm:$0xff] (!%p298_p2), %vm578_vm1, %v12441_v31  ;;  %583 = vst.msk [vmem:[#allocation2 + $0x131] sm:$0xff] (!%p298_p2), %vm578_vm1, %v12441_v31  ;;  %v9062_v32 = vld [vmem:[%s14513_s4 + $0x30] sm:$0xff] (!%p298_p2)  ;;  %vm909_vm4 = vcmask (!%p298_p2), 261248   ;;  %vm953_vm5 = vcmask (!%p298_p2), 130048  }
   0x9   : > { %11680 = vmatpush3.bf16.msra.mxu0 (!%p298_p2), %v11677_v3  ;;  %v11693_v30 = vpack.c.bf16 (!%p298_p2), %v9061_v29, %v9060_v28  ;;  %584 = vst.msk [vmem:[#allocation2 + $0x139] sm:$0xff] (!%p298_p2), %vm578_vm1, %v12441_v31  ;;  %585 = vst.msk [vmem:[#allocation2 + $0x141] sm:$0xff] (!%p298_p2), %vm578_vm1, %v12441_v31  ;;  %v9063_v33 = vld [vmem:[%s14513_s4 + $0x38] sm:$0xff] (!%p298_p2)  ;;  %v999_v37 = vld [vmem:[%s14513_s4] sm:$0xff] (!%p298_p2)  ;;  %vm956_vm6 = vcmask (!%p298_p2), 124928  }
   0xa   : > { %11682 = vmatprep.subr.bf16.mxu0 (!%p298_p2), %v11681_v5  ;;  %582 = vst.msk [vmem:[#allocation2 + $0x10] sm:$0x7] (!%p298_p2), %vm581_vm2, %v12441_v31  ;;  %v11697_v34 = vpack.c.bf16 (!%p298_p2), %v9063_v33, %v9062_v32  ;;  %v1000_v38 = vld [vmem:[%s14513_s4 + $0x8] sm:$0xff] (!%p298_p2)  ;;  %v12616_v40 = vld [vmem:[%s14512_s3] ss:$0 sm:$0xff] (!%p298_p2)  ;;  %v1002_v9 = vld [vmem:[%s14513_s4 + $0x18] sm:$0xff] (!%p298_p2) }
   0xb   : > { %11694 = vmatprep.subr.bf16.mxu1 (!%p298_p2), %v11693_v30  ;;  %588 = vst.msk [vmem:[#allocation2 + $0x23] sm:$0x3] (!%p298_p2), %vm587_vm3, %v12441_v31  ;;  %589 = vst.msk [vmem:[#allocation2 + $0x35] sm:$0x3] (!%p298_p2), %vm587_vm3, %v12441_v31  ;;  %v11701_v39 = vpack.c.bf16 (!%p298_p2), %v1000_v38, %v999_v37 }
   0xc   : > { %11696 = vmatpush3.bf16.msra.mxu1 (!%p298_p2), %v11693_v30  ;;  %590 = vst.msk [vmem:[#allocation2 + $0x47] sm:$0x3] (!%p298_p2), %vm587_vm3, %v12441_v31  ;;  %591 = vst.msk [vmem:[#allocation2 + $0x59] sm:$0x3] (!%p298_p2), %vm587_vm3, %v12441_v31 }
   0xd   : > { %s14520_s10 = smov (!%p338_p3, %s9034_s10), 1  ;;  %11684 = vmatpush3.bf16.msra.mxu0 %v11681_v5  ;;  %592 = vst.msk [vmem:[#allocation2 + $0x6b] sm:$0x3] %vm587_vm3, %v12441_v31  ;;  %593 = vst.msk [vmem:[#allocation2 + $0x7d] sm:$0x3] %vm587_vm3, %v12441_v31  ;;  %11698 = vmatprep.subr.bf16.mxu1 %v11697_v34 }
   0xe   : > { %s9776_s23 = sshll.u32 %s14520_s10, 7  ;;  %11686 = vmatprep.subr.bf16.mxu0 %v11685_v8  ;;  %594 = vst.msk [vmem:[#allocation2 + $0x8f] sm:$0x3] %vm587_vm3, %v12441_v31  ;;  %595 = vst.msk [vmem:[#allocation2 + $0xa1] sm:$0x3] %vm587_vm3, %v12441_v31  ;;  %s12417_s29 = smul.u32 336, %s14520_s10 }
   0xf   : > { %s12527_s26 = scalar_lea.vmem %s14509_s0, %s9776_s23  ;;  %596 = vst.msk [vmem:[#allocation2 + $0xb3] sm:$0x3] %vm587_vm3, %v12441_v31  ;;  %597 = vst.msk [vmem:[#allocation2 + $0xc5] sm:$0x3] %vm587_vm3, %v12441_v31  ;;  %v1003_v35 = vld [vmem:[#allocation2 + $0x1] sm:$0xff]  ;;  %s12418_s24 = smul.u32 288, %s14520_s10 }
  0x10   : > { %v353_v11 = vld [vmem:[%s12527_s26] sm:$0xff]  ;;  %v354_v13 = vld [vmem:[%s12527_s26 + $0x8] sm:$0xff]  ;;  %v355_v14 = vld [vmem:[%s12527_s26 + $0x10] sm:$0xff]  ;;  %598 = vst.msk [vmem:[#allocation2 + $0xd7] sm:$0x3] %vm587_vm3, %v12441_v31  ;;  %11700 = vmatpush3.bf16.msra.mxu1 %v11697_v34  ;;  %10569 = vmatprep.mubr.msk.f32.mxu1 %vm578_vm1, %v1003_v35  ;;  %s12996_s15 = scalar_lea.vmem %s14510_s1, %s12417_s29 }
  0x11   : > { %10537 = vmatprep.mubr.msk.f32.mxu0 %vm384_vm0, %v353_v11  ;;  %11688 = vmatpush3.bf16.msra.mxu0 %v11685_v8  ;;  %v356_v15 = vld [vmem:[%s12527_s26 + $0x18] sm:$0xff]  ;;  %v357_v16 = vld [vmem:[%s12527_s26 + $0x20] sm:$0xff]  ;;  %v358_v17 = vld [vmem:[%s12527_s26 + $0x28] sm:$0xff]  ;;  %599 = vst.msk [vmem:[#allocation2 + $0xe9] sm:$0x3] %vm587_vm3, %v12441_v31  ;;  %s14386_s29 = scalar_lea.vmem %s14518_s9, %s12418_s24 }
  0x12   : > { %11690 = vmatprep.subr.bf16.mxu0 %v11689_v12  ;;  %v359_v18 = vld [vmem:[%s12527_s26 + $0x30] sm:$0xff]  ;;  %v360_v19 = vld [vmem:[%s12527_s26 + $0x38] sm:$0xff]  ;;  %v361_v20 = vld [vmem:[%s12527_s26 + $0x40] sm:$0xff]  ;;  %600 = vst.msk [vmem:[#allocation2 + $0xfb] sm:$0x3] %vm587_vm3, %v12441_v31  ;;  %11702 = vmatprep.subr.bf16.mxu1 %v11701_v39 }
  0x13   : > { %v362_v21 = vld [vmem:[%s12527_s26 + $0x48] sm:$0xff]  ;;  %v363_v22 = vld [vmem:[%s12527_s26 + $0x50] sm:$0xff]  ;;  %v364_v23 = vld [vmem:[%s12527_s26 + $0x58] sm:$0xff]  ;;  %601 = vst.msk [vmem:[#allocation2 + $0x10d] sm:$0x3] %vm587_vm3, %v12441_v31 }
  0x14   : > { %v365_v24 = vld [vmem:[%s12527_s26 + $0x60] sm:$0xff]  ;;  %v366_v25 = vld [vmem:[%s12527_s26 + $0x68] sm:$0xff]  ;;  %v367_v26 = vld [vmem:[%s12527_s26 + $0x70] sm:$0xff]  ;;  %602 = vst.msk [vmem:[#allocation2 + $0x11f] sm:$0x3] %vm587_vm3, %v12441_v31 }
  0x15   : > { %11692 = vmatpush3.bf16.msra.mxu0 %v11689_v12  ;;  %v368_v27 = vld [vmem:[%s12527_s26 + $0x78] sm:$0xff]  ;;  %v1004_v36 = vld [vmem:[#allocation2 + $0x9] sm:$0xff]  ;;  %s12442_s26 = smov 96  }
  0x16   : > { %10570 = vmatmul.mubr.msk.f32.vlgmr.msra.gmra.mrb[0].mxu1 %vm578_vm1, %v1004_v36  ;;  %v1001_v8 = vld [vmem:[%s14513_s4 + $0x10] sm:$0xff] }
  0x17   : > { %11704 = vmatpush3.bf16.msra.mxu1 %v11701_v39  ;;  %v11705_v12 = vpack.c.bf16 %v1002_v9, %v1001_v8  ;;  %v9177_v8 = vld [vmem:[%s14513_s4 + $0x68] sm:$0xff] }
  0x18   : > { %10538 = vmatmul.mubr.msk.f32.vlgmr.msra.gmra.mrb[0].mxu0 %vm384_vm0, %v354_v13 }
  0x19   : > { %10540 = vmatprep.mubr.msk.f32.mxu0 %vm384_vm0, %v355_v14  ;;  %11706 = vmatprep.subr.bf16.mxu1 %v11705_v12  ;;  %v9136_v14 = vld [vmem:[%s14513_s4 + $0x40] sm:$0xff] }
  0x1b   : > { %11708 = vmatpush3.bf16.msra.mxu1 %v11705_v12 }
  0x1c   : > { %10541 = vmatmul.mubr.msk.f32.gmra.mrb[2].mxu0 %vm384_vm0, %v356_v15  ;;  %v9137_v15 = vld [vmem:[%s14513_s4 + $0x48] sm:$0xff] }
  0x1d   : > { %10543 = vmatprep.mubr.msk.f32.mxu0 %vm384_vm0, %v357_v16  ;;  %v12680_v16 = vpack.c.bf16 %v9137_v15, %v9136_v14 }
  0x1f   : > { %11710 = vmatprep.subr.bf16.mxu1 %v12680_v16 }
  0x20   : > { %10544 = vmatmul.mubr.msk.f32.gmra.mrb[4].mxu0 %vm384_vm0, %v358_v17 }
  0x21   : > { %10546 = vmatprep.mubr.msk.f32.mxu0 %vm384_vm0, %v359_v18 }
  0x24   : > { %10547 = vmatmul.mubr.msk.f32.gmra.mrb[6].mxu0 %vm384_vm0, %v360_v19 }
  0x25   : > { %10549 = vmatprep.mubr.msk.f32.mxu0 %vm384_vm0, %v361_v20 }
  0x28   : > { %10550 = vmatmul.mubr.msk.f32.gmra.mrb[8].mxu0 %vm384_vm0, %v362_v21 }
  0x29   : > { %10552 = vmatprep.mubr.msk.f32.mxu0 %vm384_vm0, %v363_v22 }
  0x2c   : > { %10553 = vmatmul.mubr.msk.f32.gmra.mrb[10].mxu0 %vm384_vm0, %v364_v23 }
  0x2d   : > { %10555 = vmatprep.mubr.msk.f32.mxu0 %vm384_vm0, %v365_v24 }
  0x30   : > { %10556 = vmatmul.mubr.msk.f32.gmra.mrb[12].mxu0 %vm384_vm0, %v366_v25 }
  0x31   : > { %10558 = vmatprep.mubr.msk.f32.mxu0 %vm384_vm0, %v367_v26 }
  0x34   : > { %10559 = vmatmul.mubr.msk.f32.gmra.mrb[14].mxu0 %vm384_vm0, %v368_v27 }
  0xeb   : > { %v10539_v41 = vpop.f32.mrb[0].mxu0 }
  0xec   : > { %v505_v42 = vadd.f32 %v10539_v41, %v12616_v40  ;;  %v499_v43 = vpop.f32.mrb[1].mxu0 }
  0xed   : > { %v500_v44 = vadd.f32 %v12616_v40, %v499_v43 }
  0xee   : > { %604 = vst.msk [vmem:[#allocation2 + $0x1b] sm:$0xff] %vm578_vm1, %v505_v42 }
  0xef   : > { %603 = vst.msk [vmem:[#allocation2 + $0x13] sm:$0xff] %vm578_vm1, %v500_v44  ;;  %v10542_v45 = vpop.f32.mrb[2].mxu0  ;;  %607 = vrot.lane.b32.xlu0 %v500_v44, %s12442_s26 }
  0xf0   : > { %v515_v46 = vadd.f32 %v10542_v45, %v12616_v40  ;;  %v509_v47 = vpop.f32.mrb[3].mxu0 }
  0xf1   : > { %v510_v48 = vadd.f32 %v12616_v40, %v509_v47 }
  0xf2   : > { %616 = vst.msk [vmem:[#allocation2 + $0x3f] sm:$0xff] %vm578_vm1, %v515_v46 }
  0xf3   : > { %615 = vst.msk [vmem:[#allocation2 + $0x37] sm:$0xff] %vm578_vm1, %v510_v48  ;;  %v10545_v49 = vpop.f32.mrb[4].mxu0  ;;  %619 = vrot.lane.b32.xlu1 %v510_v48, %s12442_s26  ;;  %609 = vrot.lane.b32.xlu0 %v505_v42, %s12442_s26 }
  0xf4   : > { %v525_v50 = vadd.f32 %v10545_v49, %v12616_v40  ;;  %v519_v51 = vpop.f32.mrb[5].mxu0 }
  0xf5   : > { %v520_v52 = vadd.f32 %v12616_v40, %v519_v51 }
  0xf6   : > { %628 = vst.msk [vmem:[#allocation2 + $0x63] sm:$0xff] %vm578_vm1, %v525_v50  ;;  %v1005_v53 = vld [vmem:[#allocation2 + $0x11] sm:$0xff]  ;;  %v1006_v54 = vld [vmem:[#allocation2 + $0x19] sm:$0xff] }
  0xf7   : > { %627 = vst.msk [vmem:[#allocation2 + $0x5b] sm:$0xff] %vm578_vm1, %v520_v52  ;;  %v10548_v55 = vpop.f32.mrb[6].mxu0  ;;  %621 = vrot.lane.b32.xlu1 %v515_v46, %s12442_s26  ;;  %631 = vrot.lane.b32.xlu0 %v520_v52, %s12442_s26  ;;  %v965_v9 = vld [vmem:[#allocation2 + $0x10] sm:$0xff] }
  0xf8   : > { %v535_v56 = vadd.f32 %v10548_v55, %v12616_v40  ;;  %10572 = vmatprep.mubr.msk.f32.mxu1 %vm578_vm1, %v1005_v53  ;;  %v529_v57 = vpop.f32.mrb[7].mxu0 }
  0xf9   : > { %v530_v58 = vadd.f32 %v12616_v40, %v529_v57  ;;  %10573 = vmatmul.mubr.msk.f32.gmra.mrb[2].mxu1 %vm578_vm1, %v1006_v54  ;;  %v1011_v30 = vld [vmem:[#allocation2 + $0x41] sm:$0xff] }
  0xfa   : > { %640 = vst.msk [vmem:[#allocation2 + $0x87] sm:$0xff] %vm578_vm1, %v535_v56  ;;  %v1010_v29 = vld [vmem:[#allocation2 + $0x39] sm:$0xff] }
  0xfb   : > { %639 = vst.msk [vmem:[#allocation2 + $0x7f] sm:$0xff] %vm578_vm1, %v530_v58  ;;  %v10551_v59 = vpop.f32.mrb[8].mxu0  ;;  %633 = vrot.lane.b32.xlu1 %v525_v50, %s12442_s26  ;;  %643 = vrot.lane.b32.xlu0 %v530_v58, %s12442_s26  ;;  %v970_v15 = vld [vmem:[#allocation2 + $0x38] sm:$0xff] }
  0xfc   : > { %v545_v60 = vadd.f32 %v10551_v59, %v12616_v40  ;;  %v539_v61 = vpop.f32.mrb[9].mxu0 }
  0xfd   : > { %v540_v62 = vadd.f32 %v12616_v40, %v539_v61 }
  0xfe   : > { %652 = vst.msk [vmem:[#allocation2 + $0xab] sm:$0xff] %vm578_vm1, %v545_v60  ;;  %v1014_v38 = vld [vmem:[#allocation2 + $0x59] sm:$0xff]  ;;  %v1015_v39 = vld [vmem:[#allocation2 + $0x61] sm:$0xff] }
  0xff   : > { %651 = vst.msk [vmem:[#allocation2 + $0xa3] sm:$0xff] %vm578_vm1, %v540_v62  ;;  %v10554_v63 = vpop.f32.mrb[10].mxu0  ;;  %645 = vrot.lane.b32.xlu1 %v535_v56, %s12442_s26  ;;  %655 = vrot.lane.b32.xlu0 %v540_v62, %s12442_s26 }
 0x100   : > { %v555_v0 = vadd.f32 %v10554_v63, %v12616_v40  ;;  %v549_v1 = vpop.f32.mrb[11].mxu0 }
 0x101   : > { %v550_v2 = vadd.f32 %v12616_v40, %v549_v1  ;;  %v1020_v47 = vld [vmem:[#allocation2 + $0x89] sm:$0xff]  ;;  %v963_v1 = vld [vmem:[#allocation2] sm:$0xff] }
 0x102   : > { %664 = vst.msk [vmem:[#allocation2 + $0xcf] sm:$0xff] %vm578_vm1, %v555_v0  ;;  %v1019_v45 = vld [vmem:[#allocation2 + $0x81] sm:$0xff] }
 0x103   : > { %663 = vst.msk [vmem:[#allocation2 + $0xc7] sm:$0xff] %vm578_vm1, %v550_v2  ;;  %v10557_v3 = vpop.f32.mrb[12].mxu0  ;;  %657 = vrot.lane.b32.xlu1 %v545_v60, %s12442_s26  ;;  %667 = vrot.lane.b32.xlu0 %v550_v2, %s12442_s26 }
 0x104   : > { %v565_v4 = vadd.f32 %v10557_v3, %v12616_v40  ;;  %v559_v5 = vpop.f32.mrb[13].mxu0  ;;  %v9138_v3 = vld [vmem:[%s14513_s4 + $0x50] sm:$0xff] }
 0x105   : > { %v560_v6 = vadd.f32 %v12616_v40, %v559_v5  ;;  %v964_v5 = vld [vmem:[#allocation2 + $0x8] sm:$0xff] }
 0x106   : > { %676 = vst.msk [vmem:[#allocation2 + $0xf3] sm:$0xff] %vm578_vm1, %v565_v4  ;;  %v1023_v49 = vld [vmem:[#allocation2 + $0xa1] sm:$0xff]  ;;  %v1024_v50 = vld [vmem:[#allocation2 + $0xa9] sm:$0xff] }
 0x107   : > { %675 = vst.msk [vmem:[#allocation2 + $0xeb] sm:$0xff] %vm578_vm1, %v560_v6  ;;  %669 = vrot.lane.b32.xlu1 %v555_v0, %s12442_s26  ;;  %679 = vrot.lane.b32.xlu0 %v560_v6, %s12442_s26  ;;  %v10560_v7 = vpop.f32.mrb[14].mxu0 }
 0x108   : > { %v575_v10 = vadd.f32 %v10560_v7, %v12616_v40  ;;  %v569_v11 = vpop.f32.mrb[15].mxu0  ;;  %v9176_v7 = vld [vmem:[%s14513_s4 + $0x60] sm:$0xff] }
 0x109   : > { %v570_v13 = vadd.f32 %v12616_v40, %v569_v11  ;;  %v1029_v56 = vld [vmem:[#allocation2 + $0xd1] sm:$0xff] }
 0x10a   : > { %688 = vst.msk [vmem:[#allocation2 + $0x117] sm:$0xff] %vm578_vm1, %v575_v10  ;;  %v1028_v55 = vld [vmem:[#allocation2 + $0xc9] sm:$0xff]  ;;  %v966_v11 = vld [vmem:[#allocation2 + $0x18] sm:$0xff] }
 0x10b   : > { %681 = vrot.lane.b32.xlu1 %v565_v4, %s12442_s26  ;;  %687 = vst.msk [vmem:[#allocation2 + $0x10f] sm:$0xff] %vm578_vm1, %v570_v13  ;;  %691 = vrot.lane.b32.xlu0 %v570_v13, %s12442_s26  ;;  %v9139_v4 = vld [vmem:[%s14513_s4 + $0x58] sm:$0xff] }
 0x10c   : > { %v11713_v6 = vpack.c.bf16 %v9139_v4, %v9138_v3  ;;  %v12857_v3 = vld [vmem:[#allocation2 + $0x82] sm:$0xff] }
 0x10e   : > { %v1032_v59 = vld [vmem:[#allocation2 + $0xe9] sm:$0xff]  ;;  %v1033_v60 = vld [vmem:[#allocation2 + $0xf1] sm:$0xff] }
 0x10f   : > { %693 = vrot.lane.b32.xlu1 %v575_v10, %s12442_s26  ;;  %v12747_v10 = vpack.c.bf16 %v9177_v8, %v9176_v7  ;;  %v1770_v7 = vld [vmem:[#allocation2 + $0xa2] sm:$0xff]  ;;  %v1771_v8 = vld [vmem:[#allocation2 + $0xaa] sm:$0xff] }
 0x111   : > { %v1038_v2 = vld [vmem:[#allocation2 + $0x119] sm:$0xff] }
 0x112   : > { %v1037_v0 = vld [vmem:[#allocation2 + $0x111] sm:$0xff] }
 0x161   : > { %v608_v17 = vpop.permute.xlu0 %607 }
 0x162   : > { %613 = vst.msk [vmem:[#allocation2 + $0x25] sm:$0xff] %vm578_vm1, %v608_v17 }
 0x165   : > { %v620_v18 = vpop.permute.xlu1 %619  ;;  %v610_v19 = vpop.permute.xlu0 %609 }
 0x166   : > { %625 = vst.msk [vmem:[#allocation2 + $0x49] sm:$0xff] %vm578_vm1, %v620_v18  ;;  %614 = vst.msk [vmem:[#allocation2 + $0x2d] sm:$0xff] %vm578_vm1, %v610_v19 }
 0x169   : > { %v622_v20 = vpop.permute.xlu1 %621  ;;  %v632_v21 = vpop.permute.xlu0 %631  ;;  %v1007_v22 = vld [vmem:[#allocation2 + $0x21] sm:$0xff] }
 0x16a   : > { %626 = vst.msk [vmem:[#allocation2 + $0x51] sm:$0xff] %vm578_vm1, %v622_v20  ;;  %637 = vst.msk [vmem:[#allocation2 + $0x6d] sm:$0xff] %vm578_vm1, %v632_v21  ;;  %10575 = vmatprep.mubr.msk.f32.mxu1 %vm578_vm1, %v1007_v22  ;;  %v967_v12 = vld [vmem:[#allocation2 + $0x20] sm:$0xff] }
 0x16b   : > { %v975_v20 = vld [vmem:[#allocation2 + $0x60] sm:$0xff] }
 0x16d   : > { %v634_v23 = vpop.permute.xlu1 %633  ;;  %v644_v24 = vpop.permute.xlu0 %643  ;;  %v1008_v25 = vld [vmem:[#allocation2 + $0x29] sm:$0xff]  ;;  %v1009_v26 = vld [vmem:[#allocation2 + $0x31] sm:$0xff] }
 0x16e   : > { %638 = vst.msk [vmem:[#allocation2 + $0x75] sm:$0xff] %vm578_vm1, %v634_v23  ;;  %649 = vst.msk [vmem:[#allocation2 + $0x91] sm:$0xff] %vm578_vm1, %v644_v24  ;;  %10576 = vmatmul.mubr.msk.f32.gmra.mrb[4].mxu1 %vm578_vm1, %v1008_v25  ;;  %v1012_v34 = vld [vmem:[#allocation2 + $0x49] sm:$0xff]  ;;  %v979_v24 = vld [vmem:[#allocation2 + $0x80] sm:$0xff] }
 0x16f   : > { %10578 = vmatprep.mubr.msk.f32.mxu1 %vm578_vm1, %v1009_v26  ;;  %v968_v13 = vld [vmem:[#allocation2 + $0x28] sm:$0xff]  ;;  %v969_v14 = vld [vmem:[#allocation2 + $0x30] sm:$0xff] }
 0x170   : > { %v972_v17 = vld [vmem:[#allocation2 + $0x48] sm:$0xff] }
 0x171   : > { %v646_v27 = vpop.permute.xlu1 %645  ;;  %v656_v28 = vpop.permute.xlu0 %655  ;;  %v1013_v35 = vld [vmem:[#allocation2 + $0x51] sm:$0xff]  ;;  %v1016_v40 = vld [vmem:[#allocation2 + $0x69] sm:$0xff] }
 0x172   : > { %650 = vst.msk [vmem:[#allocation2 + $0x99] sm:$0xff] %vm578_vm1, %v646_v27  ;;  %661 = vst.msk [vmem:[#allocation2 + $0xb5] sm:$0xff] %vm578_vm1, %v656_v28  ;;  %10579 = vmatmul.mubr.msk.f32.gmra.mrb[6].mxu1 %vm578_vm1, %v1010_v29  ;;  %v973_v18 = vld [vmem:[#allocation2 + $0x50] sm:$0xff]  ;;  %v974_v19 = vld [vmem:[#allocation2 + $0x58] sm:$0xff] }
 0x173   : > { %10581 = vmatprep.mubr.msk.f32.mxu1 %vm578_vm1, %v1011_v30  ;;  %v976_v21 = vld [vmem:[#allocation2 + $0x68] sm:$0xff] }
 0x174   : > { %v980_v25 = vld [vmem:[#allocation2 + $0x88] sm:$0xff] }
 0x175   : > { %v658_v32 = vpop.permute.xlu1 %657  ;;  %v668_v33 = vpop.permute.xlu0 %667  ;;  %v1017_v43 = vld [vmem:[#allocation2 + $0x71] sm:$0xff]  ;;  %v1018_v44 = vld [vmem:[#allocation2 + $0x79] sm:$0xff]  ;;  %v984_v29 = vld [vmem:[#allocation2 + $0xa8] sm:$0xff] }
 0x176   : > { %662 = vst.msk [vmem:[#allocation2 + $0xbd] sm:$0xff] %vm578_vm1, %v658_v32  ;;  %673 = vst.msk [vmem:[#allocation2 + $0xd9] sm:$0xff] %vm578_vm1, %v668_v33  ;;  %10582 = vmatmul.mubr.msk.f32.gmra.mrb[8].mxu1 %vm578_vm1, %v1012_v34  ;;  %v1021_v46 = vld [vmem:[#allocation2 + $0x91] sm:$0xff]  ;;  %v988_v34 = vld [vmem:[#allocation2 + $0xc8] sm:$0xff] }
 0x177   : > { %10584 = vmatprep.mubr.msk.f32.mxu1 %vm578_vm1, %v1013_v35  ;;  %v977_v22 = vld [vmem:[#allocation2 + $0x70] sm:$0xff]  ;;  %v978_v23 = vld [vmem:[#allocation2 + $0x78] sm:$0xff] }
 0x178   : > { %v981_v26 = vld [vmem:[#allocation2 + $0x90] sm:$0xff] }
 0x179   : > { %v670_v36 = vpop.permute.xlu1 %669  ;;  %v680_v37 = vpop.permute.xlu0 %679  ;;  %v1022_v48 = vld [vmem:[#allocation2 + $0x99] sm:$0xff]  ;;  %v1025_v51 = vld [vmem:[#allocation2 + $0xb1] sm:$0xff] }
 0x17a   : > { %674 = vst.msk [vmem:[#allocation2 + $0xe1] sm:$0xff] %vm578_vm1, %v670_v36  ;;  %685 = vst.msk [vmem:[#allocation2 + $0xfd] sm:$0xff] %vm578_vm1, %v680_v37  ;;  %10585 = vmatmul.mubr.msk.f32.gmra.mrb[10].mxu1 %vm578_vm1, %v1014_v38  ;;  %v982_v27 = vld [vmem:[#allocation2 + $0x98] sm:$0xff]  ;;  %v983_v28 = vld [vmem:[#allocation2 + $0xa0] sm:$0xff] }
 0x17b   : > { %10587 = vmatprep.mubr.msk.f32.mxu1 %vm578_vm1, %v1015_v39  ;;  %v985_v30 = vld [vmem:[#allocation2 + $0xb0] sm:$0xff] }
 0x17c   : > { %v989_v35 = vld [vmem:[#allocation2 + $0xd0] sm:$0xff] }
 0x17d   : > { %v682_v41 = vpop.permute.xlu1 %681  ;;  %v692_v42 = vpop.permute.xlu0 %691  ;;  %v1026_v53 = vld [vmem:[#allocation2 + $0xb9] sm:$0xff]  ;;  %v1027_v54 = vld [vmem:[#allocation2 + $0xc1] sm:$0xff]  ;;  %v993_v39 = vld [vmem:[#allocation2 + $0xf0] sm:$0xff] }
 0x17e   : > { %10588 = vmatmul.mubr.msk.f32.gmra.mrb[12].mxu1 %vm578_vm1, %v1016_v40  ;;  %686 = vst.msk [vmem:[#allocation2 + $0x105] sm:$0xff] %vm578_vm1, %v682_v41  ;;  %697 = vst.msk [vmem:[#allocation2 + $0x121] sm:$0xff] %vm578_vm1, %v692_v42  ;;  %v1030_v57 = vld [vmem:[#allocation2 + $0xd9] sm:$0xff]  ;;  %v12861_v4 = vld [vmem:[#allocation2 + $0x8a] sm:$0xff] }
 0x17f   : > { %10590 = vmatprep.mubr.msk.f32.mxu1 %vm578_vm1, %v1017_v43  ;;  %v986_v32 = vld [vmem:[#allocation2 + $0xb8] sm:$0xff]  ;;  %v987_v33 = vld [vmem:[#allocation2 + $0xc0] sm:$0xff]  ;;  %v997_v43 = vld [vmem:[#allocation2 + $0x110] sm:$0xff] }
 0x180   : > { %v990_v36 = vld [vmem:[#allocation2 + $0xd8] sm:$0xff] }
 0x181   : > { %v694_v52 = vpop.permute.xlu1 %693  ;;  %v1031_v58 = vld [vmem:[#allocation2 + $0xe1] sm:$0xff]  ;;  %v1034_v61 = vld [vmem:[#allocation2 + $0xf9] sm:$0xff] }
 0x182   : > { %10591 = vmatmul.mubr.msk.f32.gmra.mrb[14].mxu1 %vm578_vm1, %v1018_v44  ;;  %698 = vst.msk [vmem:[#allocation2 + $0x129] sm:$0xff] %vm578_vm1, %v694_v52  ;;  %v991_v37 = vld [vmem:[#allocation2 + $0xe0] sm:$0xff]  ;;  %v992_v38 = vld [vmem:[#allocation2 + $0xe8] sm:$0xff]  ;;  %v994_v40 = vld [vmem:[#allocation2 + $0xf8] sm:$0xff] }
 0x183   : > { %10593 = vmatprep.mubr.msk.f32.mxu1 %vm578_vm1, %v1019_v45  ;;  %v1750_v44 = vld [vmem:[#allocation2 + $0x2] sm:$0xff]  ;;  %v998_v45 = vld [vmem:[#allocation2 + $0x118] sm:$0xff] }
 0x184   : > { %v12797_v52 = vld [vmem:[#allocation2 + $0x12] sm:$0xff] }
 0x185   : > { %v1035_v62 = vld [vmem:[#allocation2 + $0x101] sm:$0xff]  ;;  %v1036_v63 = vld [vmem:[#allocation2 + $0x109] sm:$0xff] }
 0x186   : > { %10594 = vmatmul.mubr.msk.f32.gmra.mrb[16].mxu1 %vm578_vm1, %v1020_v47  ;;  %v995_v41 = vld [vmem:[#allocation2 + $0x100] sm:$0xff]  ;;  %v996_v42 = vld [vmem:[#allocation2 + $0x108] sm:$0xff]  ;;  %v9179_v47 = vld [vmem:[%s14513_s4 + $0x78] sm:$0xff] }
 0x187   : > { %10596 = vmatprep.mubr.msk.f32.mxu1 %vm578_vm1, %v1021_v46  ;;  %v9178_v46 = vld [vmem:[%s14513_s4 + $0x70] sm:$0xff] }
 0x18a   : > { %10597 = vmatmul.mubr.msk.f32.gmra.mrb[18].mxu1 %vm578_vm1, %v1022_v48  ;;  %v1751_v48 = vld [vmem:[#allocation2 + $0xa] sm:$0xff] }
 0x18b   : > { %10599 = vmatprep.mubr.msk.f32.mxu1 %vm578_vm1, %v1023_v49  ;;  %v11721_v49 = vpack.c.bf16 %v9179_v47, %v9178_v46  ;;  %v2618_v46 = vld [vmem:[#allocation2 + $0x53] sm:$0xff]  ;;  %v2619_v47 = vld [vmem:[#allocation2 + $0x5b] sm:$0xff] }
 0x18e   : > { %10600 = vmatmul.mubr.msk.f32.gmra.mrb[20].mxu1 %vm578_vm1, %v1024_v50  ;;  %v9216_v50 = vld [vmem:[%s14513_s4 + $0x80] sm:$0xff] }
 0x18f   : > { %10602 = vmatprep.mubr.msk.f32.mxu1 %vm578_vm1, %v1025_v51  ;;  %v9217_v51 = vld [vmem:[%s14513_s4 + $0x88] sm:$0xff] }
 0x192   : > { %10603 = vmatmul.mubr.msk.f32.gmra.mrb[22].mxu1 %vm578_vm1, %v1026_v53  ;;  %v12802_v53 = vpack.c.bf16 %v9217_v51, %v9216_v50  ;;  %v2622_v50 = vld [vmem:[#allocation2 + $0x73] sm:$0xff]  ;;  %v2623_v51 = vld [vmem:[#allocation2 + $0x7b] sm:$0xff] }
 0x193   : > { %10605 = vmatprep.mubr.msk.f32.mxu1 %vm578_vm1, %v1027_v54  ;;  %v12804_v54 = vld [vmem:[#allocation2 + $0x1a] sm:$0xff] }
 0x196   : > { %10606 = vmatmul.mubr.msk.f32.gmra.mrb[24].mxu1 %vm578_vm1, %v1028_v55  ;;  %v12808_v55 = vld [vmem:[#allocation2 + $0x22] sm:$0xff] }
 0x197   : > { %10608 = vmatprep.mubr.msk.f32.mxu1 %vm578_vm1, %v1029_v56  ;;  %v12813_v56 = vld [vmem:[#allocation2 + $0x2a] sm:$0xff] }
 0x19a   : > { %10609 = vmatmul.mubr.msk.f32.gmra.mrb[26].mxu1 %vm578_vm1, %v1030_v57  ;;  %v12817_v57 = vld [vmem:[#allocation2 + $0x32] sm:$0xff] }
 0x19b   : > { %10611 = vmatprep.mubr.msk.f32.mxu1 %vm578_vm1, %v1031_v58  ;;  %v12821_v58 = vld [vmem:[#allocation2 + $0x3a] sm:$0xff] }
 0x19e   : > { %10612 = vmatmul.mubr.msk.f32.gmra.mrb[28].mxu1 %vm578_vm1, %v1032_v59  ;;  %v12825_v59 = vld [vmem:[#allocation2 + $0x42] sm:$0xff] }
 0x19f   : > { %10614 = vmatprep.mubr.msk.f32.mxu1 %vm578_vm1, %v1033_v60  ;;  %v12829_v60 = vld [vmem:[#allocation2 + $0x4a] sm:$0xff] }
 0x1a2   : > { %10615 = vmatmul.mubr.msk.f32.gmra.mrb[30].mxu1 %vm578_vm1, %v1034_v61  ;;  %v12833_v61 = vld [vmem:[#allocation2 + $0x52] sm:$0xff] }
 0x1a3   : > { %10617 = vmatprep.mubr.msk.f32.mxu1 %vm578_vm1, %v1035_v62  ;;  %v12837_v62 = vld [vmem:[#allocation2 + $0x5a] sm:$0xff] }
 0x1a6   : > { %10618 = vmatmul.mubr.msk.f32.gmra.mrb[32].mxu1 %vm578_vm1, %v1036_v63  ;;  %v12841_v63 = vld [vmem:[#allocation2 + $0x62] sm:$0xff] }
 0x1a7   : > { %10620 = vmatprep.mubr.msk.f32.mxu1 %vm578_vm1, %v1037_v0  ;;  %v12845_v0 = vld [vmem:[#allocation2 + $0x6a] sm:$0xff] }
 0x1aa   : > { %10621 = vmatmul.mubr.msk.f32.gmra.mrb[34].mxu1 %vm578_vm1, %v1038_v2  ;;  %v12853_v2 = vld [vmem:[#allocation2 + $0x7a] sm:$0xff] }
 0x1ab   : > { %10631 = vmatprep.mubr.msk.f32.mxu1 %vm578_vm1, %v963_v1  ;;  %v12849_v1 = vld [vmem:[#allocation2 + $0x72] sm:$0xff] }
 0x1ae   : > { %10632 = vmatmul.mubr.msk.f32.vlgmr.msra.gmra.mrb[0].mxu1 %vm578_vm1, %v964_v5  ;;  %v1768_v5 = vld [vmem:[#allocation2 + $0x92] sm:$0xff] }
 0x1af   : > { %11712 = vmatpush3.bf16.msra.mxu1 %v12680_v16  ;;  %10634 = vmatprep.mubr.msk.f32.mxu1 %vm578_vm1, %v965_v9  ;;  %v971_v16 = vld [vmem:[#allocation2 + $0x40] sm:$0xff]  ;;  %v1772_v9 = vld [vmem:[#allocation2 + $0xb2] sm:$0xff] }
 0x1b0   : > { %11714 = vmatprep.subr.bf16.mxu1 %v11713_v6 }
 0x1b2   : > { %10635 = vmatmul.mubr.msk.f32.gmra.mrb[2].mxu1 %vm578_vm1, %v966_v11  ;;  %v1774_v11 = vld [vmem:[#allocation2 + $0xc2] sm:$0xff] }
 0x1b3   : > { %10637 = vmatprep.mubr.msk.f32.mxu1 %vm578_vm1, %v967_v12  ;;  %11716 = vmatpush3.bf16.msra.mxu1 %v11713_v6  ;;  %v1769_v6 = vld [vmem:[#allocation2 + $0x9a] sm:$0xff]  ;;  %v1775_v12 = vld [vmem:[#allocation2 + $0xca] sm:$0xff] }
 0x1b4   : > { %11718 = vmatprep.subr.bf16.mxu1 %v12747_v10 }
 0x1b6   : > { %10638 = vmatmul.mubr.msk.f32.gmra.mrb[4].mxu1 %vm578_vm1, %v968_v13  ;;  %v1776_v13 = vld [vmem:[#allocation2 + $0xd2] sm:$0xff] }
 0x1b7   : > { %10640 = vmatprep.mubr.msk.f32.mxu1 %vm578_vm1, %v969_v14  ;;  %v1777_v14 = vld [vmem:[#allocation2 + $0xda] sm:$0xff] }
 0x1ba   : > { %10641 = vmatmul.mubr.msk.f32.gmra.mrb[6].mxu1 %vm578_vm1, %v970_v15  ;;  %v1778_v15 = vld [vmem:[#allocation2 + $0xe2] sm:$0xff] }
 0x1bb   : > { %10643 = vmatprep.mubr.msk.f32.mxu1 %vm578_vm1, %v971_v16  ;;  %v1779_v16 = vld [vmem:[#allocation2 + $0xea] sm:$0xff] }
 0x1be   : > { %10644 = vmatmul.mubr.msk.f32.gmra.mrb[8].mxu1 %vm578_vm1, %v972_v17  ;;  %v1780_v17 = vld [vmem:[#allocation2 + $0xf2] sm:$0xff] }
 0x1bf   : > { %10646 = vmatprep.mubr.msk.f32.mxu1 %vm578_vm1, %v973_v18  ;;  %v1781_v18 = vld [vmem:[#allocation2 + $0xfa] sm:$0xff] }
 0x1c2   : > { %10647 = vmatmul.mubr.msk.f32.gmra.mrb[10].mxu1 %vm578_vm1, %v974_v19  ;;  %v1782_v19 = vld [vmem:[#allocation2 + $0x102] sm:$0xff] }
 0x1c3   : > { %10649 = vmatprep.mubr.msk.f32.mxu1 %vm578_vm1, %v975_v20  ;;  %v1783_v20 = vld [vmem:[#allocation2 + $0x10a] sm:$0xff] }
 0x1c6   : > { %10650 = vmatmul.mubr.msk.f32.gmra.mrb[12].mxu1 %vm578_vm1, %v976_v21  ;;  %v1784_v21 = vld [vmem:[#allocation2 + $0x112] sm:$0xff] }
 0x1c7   : > { %10652 = vmatprep.mubr.msk.f32.mxu1 %vm578_vm1, %v977_v22  ;;  %v1785_v22 = vld [vmem:[#allocation2 + $0x11a] sm:$0xff] }
 0x1ca   : > { %10653 = vmatmul.mubr.msk.f32.gmra.mrb[14].mxu1 %vm578_vm1, %v978_v23  ;;  %v9218_v23 = vld [vmem:[%s14513_s4 + $0x90] sm:$0xff] }
 0x1cb   : > { %10655 = vmatprep.mubr.msk.f32.mxu1 %vm578_vm1, %v979_v24  ;;  %v9219_v24 = vld [vmem:[%s14513_s4 + $0x98] sm:$0xff] }
 0x1ce   : > { %10656 = vmatmul.mubr.msk.f32.gmra.mrb[16].mxu1 %vm578_vm1, %v980_v25  ;;  %v11729_v25 = vpack.c.bf16 %v9219_v24, %v9218_v23  ;;  %v4808_v23 = vld [vmem:[%s14517_s8 + $0x28] sm:$0xff]  ;;  %v703_v24 = vld [vmem:[%s12996_s15 + $0x20] sm:$0xff] }
 0x1cf   : > { %10658 = vmatprep.mubr.msk.f32.mxu1 %vm578_vm1, %v981_v26  ;;  %v9256_v26 = vld [vmem:[%s14513_s4 + $0xa0] sm:$0xff] }
 0x1d2   : > { %10659 = vmatmul.mubr.msk.f32.gmra.mrb[18].mxu1 %vm578_vm1, %v982_v27  ;;  %v9257_v27 = vld [vmem:[%s14513_s4 + $0xa8] sm:$0xff] }
 0x1d3   : > { %10661 = vmatprep.mubr.msk.f32.mxu1 %vm578_vm1, %v983_v28  ;;  %v11733_v28 = vpack.c.bf16 %v9257_v27, %v9256_v26  ;;  %v3041_v26 = vld [vmem:[#allocation2 + $0x1c] sm:$0xff] }
 0x1d4   : > { %v9336_v27 = vld [vmem:[%s14513_s4 + $0xe0] sm:$0xff] }
 0x1d6   : > { %10662 = vmatmul.mubr.msk.f32.gmra.mrb[20].mxu1 %vm578_vm1, %v984_v29  ;;  %v2214_v29 = vld [vmem:[#allocation2 + $0x122] sm:$0xff] }
 0x1d7   : > { %10664 = vmatprep.mubr.msk.f32.mxu1 %vm578_vm1, %v985_v30  ;;  %v2215_v30 = vld [vmem:[#allocation2 + $0x12a] sm:$0xff] }
 0x1da   : > { %10665 = vmatmul.mubr.msk.f32.gmra.mrb[22].mxu1 %vm578_vm1, %v986_v32  ;;  %v9258_v32 = vld [vmem:[%s14513_s4 + $0xb0] sm:$0xff] }
 0x1db   : > { %10667 = vmatprep.mubr.msk.f32.mxu1 %vm578_vm1, %v987_v33  ;;  %v9259_v33 = vld [vmem:[%s14513_s4 + $0xb8] sm:$0xff] }
 0x1de   : > { %10668 = vmatmul.mubr.msk.f32.gmra.mrb[24].mxu1 %vm578_vm1, %v988_v34  ;;  %v2610_v34 = vld [vmem:[#allocation2 + $0x13] sm:$0xff] }
 0x1df   : > { %10670 = vmatprep.mubr.msk.f32.mxu1 %vm578_vm1, %v989_v35  ;;  %v11737_v35 = vpack.c.bf16 %v9259_v33, %v9258_v32  ;;  %v704_v32 = vld [vmem:[%s12996_s15 + $0x28] sm:$0xff] }
 0x1e2   : > { %10671 = vmatmul.mubr.msk.f32.gmra.mrb[26].mxu1 %vm578_vm1, %v990_v36  ;;  %v2611_v36 = vld [vmem:[#allocation2 + $0x1b] sm:$0xff] }
 0x1e3   : > { %10673 = vmatprep.mubr.msk.f32.mxu1 %vm578_vm1, %v991_v37  ;;  %v9296_v37 = vld [vmem:[%s14513_s4 + $0xc0] sm:$0xff] }
 0x1e6   : > { %10674 = vmatmul.mubr.msk.f32.gmra.mrb[28].mxu1 %vm578_vm1, %v992_v38  ;;  %v9297_v38 = vld [vmem:[%s14513_s4 + $0xc8] sm:$0xff] }
 0x1e7   : > { %10676 = vmatprep.mubr.msk.f32.mxu1 %vm578_vm1, %v993_v39  ;;  %v2612_v39 = vld [vmem:[#allocation2 + $0x23] sm:$0xff] }
 0x1ea   : > { %10677 = vmatmul.mubr.msk.f32.gmra.mrb[30].mxu1 %vm578_vm1, %v994_v40  ;;  %v12963_v40 = vpack.c.bf16 %v9297_v38, %v9296_v37  ;;  %v705_v37 = vld [vmem:[%s12996_s15 + $0x30] sm:$0xff]  ;;  %v13072_v38 = vld [vmem:[#allocation2 + $0x3c] sm:$0xff] }
 0x1eb   : > { %10679 = vmatprep.mubr.msk.f32.mxu1 %vm578_vm1, %v995_v41  ;;  %v2613_v41 = vld [vmem:[#allocation2 + $0x2b] sm:$0xff] }
 0x1ee   : > { %10680 = vmatmul.mubr.msk.f32.gmra.mrb[32].mxu1 %vm578_vm1, %v996_v42  ;;  %v2614_v42 = vld [vmem:[#allocation2 + $0x33] sm:$0xff] }
 0x1ef   : > { %10682 = vmatprep.mubr.msk.f32.mxu1 %vm578_vm1, %v997_v43  ;;  %v2615_v43 = vld [vmem:[#allocation2 + $0x3b] sm:$0xff] }
 0x1f2   : > { %10683 = vmatmul.mubr.msk.f32.gmra.mrb[34].mxu1 %vm578_vm1, %v998_v45  ;;  %v2617_v45 = vld [vmem:[#allocation2 + $0x4b] sm:$0xff] }
 0x1f3   : > { %10693 = vmatprep.mubr.msk.f32.mxu1 %vm578_vm1, %v1750_v44  ;;  %v2616_v44 = vld [vmem:[#allocation2 + $0x43] sm:$0xff] }
 0x1f6   : > { %10694 = vmatmul.mubr.msk.f32.vlgmr.msra.gmra.mrb[0].mxu1 %vm578_vm1, %v1751_v48  ;;  %v2620_v48 = vld [vmem:[#allocation2 + $0x63] sm:$0xff] }
 0x1f7   : > { %11720 = vmatpush3.bf16.msra.mxu1 %v12747_v10  ;;  %10696 = vmatprep.mubr.msk.f32.mxu1 %vm578_vm1, %v12797_v52  ;;  %v1773_v10 = vld [vmem:[#allocation2 + $0xba] sm:$0xff] }
 0x1f8   : > { %11722 = vmatprep.subr.bf16.mxu1 %v11721_v49 }
 0x1fa   : > { %10697 = vmatmul.mubr.msk.f32.gmra.mrb[2].mxu1 %vm578_vm1, %v12804_v54 }
 0x1fb   : > { %10699 = vmatprep.mubr.msk.f32.mxu1 %vm578_vm1, %v12808_v55  ;;  %11724 = vmatpush3.bf16.msra.mxu1 %v11721_v49  ;;  %v2621_v49 = vld [vmem:[#allocation2 + $0x6b] sm:$0xff] }
 0x1fc   : > { %11726 = vmatprep.subr.bf16.mxu1 %v12802_v53 }
 0x1fe   : > { %10700 = vmatmul.mubr.msk.f32.gmra.mrb[4].mxu1 %vm578_vm1, %v12813_v56 }
 0x1ff   : > { %10702 = vmatprep.mubr.msk.f32.mxu1 %vm578_vm1, %v12817_v57 }
 0x202   : > { %10703 = vmatmul.mubr.msk.f32.gmra.mrb[6].mxu1 %vm578_vm1, %v12821_v58 }
 0x203   : > { %10705 = vmatprep.mubr.msk.f32.mxu1 %vm578_vm1, %v12825_v59 }
 0x206   : > { %10706 = vmatmul.mubr.msk.f32.gmra.mrb[8].mxu1 %vm578_vm1, %v12829_v60 }
 0x207   : > { %10708 = vmatprep.mubr.msk.f32.mxu1 %vm578_vm1, %v12833_v61 }
 0x20a   : > { %10709 = vmatmul.mubr.msk.f32.gmra.mrb[10].mxu1 %vm578_vm1, %v12837_v62 }
 0x20b   : > { %10711 = vmatprep.mubr.msk.f32.mxu1 %vm578_vm1, %v12841_v63 }
 0x20e   : > { %10712 = vmatmul.mubr.msk.f32.gmra.mrb[12].mxu1 %vm578_vm1, %v12845_v0 }
 0x20f   : > { %10714 = vmatprep.mubr.msk.f32.mxu1 %vm578_vm1, %v12849_v1 }
 0x212   : > { %10715 = vmatmul.mubr.msk.f32.gmra.mrb[14].mxu1 %vm578_vm1, %v12853_v2 }
 0x213   : > { %10717 = vmatprep.mubr.msk.f32.mxu1 %vm578_vm1, %v12857_v3 }
 0x216   : > { %10718 = vmatmul.mubr.msk.f32.gmra.mrb[16].mxu1 %vm578_vm1, %v12861_v4 }
 0x217   : > { %10720 = vmatprep.mubr.msk.f32.mxu1 %vm578_vm1, %v1768_v5 }
 0x21a   : > { %10721 = vmatmul.mubr.msk.f32.gmra.mrb[18].mxu1 %vm578_vm1, %v1769_v6 }
 0x21b   : > { %10723 = vmatprep.mubr.msk.f32.mxu1 %vm578_vm1, %v1770_v7 }
 0x21e   : > { %10724 = vmatmul.mubr.msk.f32.gmra.mrb[20].mxu1 %vm578_vm1, %v1771_v8 }
 0x21f   : > { %10726 = vmatprep.mubr.msk.f32.mxu1 %vm578_vm1, %v1772_v9 }
 0x222   : > { %10727 = vmatmul.mubr.msk.f32.gmra.mrb[22].mxu1 %vm578_vm1, %v1773_v10 }
 0x223   : > { %10729 = vmatprep.mubr.msk.f32.mxu1 %vm578_vm1, %v1774_v11 }
 0x226   : > { %10730 = vmatmul.mubr.msk.f32.gmra.mrb[24].mxu1 %vm578_vm1, %v1775_v12 }
 0x227   : > { %10732 = vmatprep.mubr.msk.f32.mxu1 %vm578_vm1, %v1776_v13 }
 0x22a   : > { %10733 = vmatmul.mubr.msk.f32.gmra.mrb[26].mxu1 %vm578_vm1, %v1777_v14 }
 0x22b   : > { %10735 = vmatprep.mubr.msk.f32.mxu1 %vm578_vm1, %v1778_v15 }
 0x22e   : > { %10736 = vmatmul.mubr.msk.f32.gmra.mrb[28].mxu1 %vm578_vm1, %v1779_v16 }
 0x22f   : > { %10738 = vmatprep.mubr.msk.f32.mxu1 %vm578_vm1, %v1780_v17 }
 0x232   : > { %10739 = vmatmul.mubr.msk.f32.gmra.mrb[30].mxu1 %vm578_vm1, %v1781_v18 }
 0x233   : > { %10741 = vmatprep.mubr.msk.f32.mxu1 %vm578_vm1, %v1782_v19 }
 0x236   : > { %10742 = vmatmul.mubr.msk.f32.gmra.mrb[32].mxu1 %vm578_vm1, %v1783_v20 }
 0x237   : > { %10744 = vmatprep.mubr.msk.f32.mxu1 %vm578_vm1, %v1784_v21 }
 0x23a   : > { %10745 = vmatmul.mubr.msk.f32.gmra.mrb[34].mxu1 %vm578_vm1, %v1785_v22 }
 0x23b   : > { %10755 = vmatprep.mubr.msk.f32.mxu1 %vm578_vm1, %v12797_v52  ;;  %v2624_v52 = vld [vmem:[#allocation2 + $0x83] sm:$0xff] }
 0x23e   : > { %10756 = vmatmul.mubr.msk.f32.vlgmr.msra.gmra.mrb[0].mxu1 %vm578_vm1, %v12804_v54  ;;  %v2626_v54 = vld [vmem:[#allocation2 + $0x93] sm:$0xff] }
 0x23f   : > { %11728 = vmatpush3.bf16.msra.mxu1 %v12802_v53  ;;  %10758 = vmatprep.mubr.msk.f32.mxu1 %vm578_vm1, %v12808_v55  ;;  %v2625_v53 = vld [vmem:[#allocation2 + $0x8b] sm:$0xff]  ;;  %v2627_v55 = vld [vmem:[#allocation2 + $0x9b] sm:$0xff] }
 0x240   : > { %11730 = vmatprep.subr.bf16.mxu1 %v11729_v25 }
 0x242   : > { %10759 = vmatmul.mubr.msk.f32.gmra.mrb[2].mxu1 %vm578_vm1, %v12813_v56  ;;  %v2628_v56 = vld [vmem:[#allocation2 + $0xa3] sm:$0xff] }
 0x243   : > { %10761 = vmatprep.mubr.msk.f32.mxu1 %vm578_vm1, %v12817_v57  ;;  %11732 = vmatpush3.bf16.msra.mxu1 %v11729_v25  ;;  %v2629_v57 = vld [vmem:[#allocation2 + $0xab] sm:$0xff] }
 0x244   : > { %11734 = vmatprep.subr.bf16.mxu1 %v11733_v28 }
 0x246   : > { %10762 = vmatmul.mubr.msk.f32.gmra.mrb[4].mxu1 %vm578_vm1, %v12821_v58  ;;  %v2630_v58 = vld [vmem:[#allocation2 + $0xb3] sm:$0xff] }
 0x247   : > { %10764 = vmatprep.mubr.msk.f32.mxu1 %vm578_vm1, %v12825_v59  ;;  %v2631_v59 = vld [vmem:[#allocation2 + $0xbb] sm:$0xff] }
 0x24a   : > { %10765 = vmatmul.mubr.msk.f32.gmra.mrb[6].mxu1 %vm578_vm1, %v12829_v60  ;;  %v2632_v60 = vld [vmem:[#allocation2 + $0xc3] sm:$0xff] }
 0x24b   : > { %10767 = vmatprep.mubr.msk.f32.mxu1 %vm578_vm1, %v12833_v61  ;;  %v2633_v61 = vld [vmem:[#allocation2 + $0xcb] sm:$0xff] }
 0x24e   : > { %10768 = vmatmul.mubr.msk.f32.gmra.mrb[8].mxu1 %vm578_vm1, %v12837_v62  ;;  %v2634_v62 = vld [vmem:[#allocation2 + $0xd3] sm:$0xff] }
 0x24f   : > { %10770 = vmatprep.mubr.msk.f32.mxu1 %vm578_vm1, %v12841_v63  ;;  %v12443_v63 = vmov 0  }
 0x250   : > { %12432 = vset.pattern.permute.xlu1 %v12443_v63  ;;  %12431 = vset.pattern.permute.xlu0 %v12443_v63  ;;  %v13155_v63 = vld [vmem:[#allocation2 + $0xa4] sm:$0xff] }
 0x252   : > { %10771 = vmatmul.mubr.msk.f32.gmra.mrb[10].mxu1 %vm578_vm1, %v12845_v0  ;;  %v2635_v0 = vld [vmem:[#allocation2 + $0xdb] sm:$0xff] }
 0x253   : > { %10773 = vmatprep.mubr.msk.f32.mxu1 %vm578_vm1, %v12849_v1  ;;  %v2636_v1 = vld [vmem:[#allocation2 + $0xe3] sm:$0xff] }
 0x256   : > { %10774 = vmatmul.mubr.msk.f32.gmra.mrb[12].mxu1 %vm578_vm1, %v12853_v2  ;;  %v4804_v2 = vld [vmem:[%s14517_s8 + $0x8] sm:$0xff] }
 0x257   : > { %10776 = vmatprep.mubr.msk.f32.mxu1 %vm578_vm1, %v12857_v3  ;;  %4846 = vperm.xlu1 %12432, %v4804_v2   ;;  %v2637_v3 = vld [vmem:[#allocation2 + $0xeb] sm:$0xff] }
 0x258   : > { %v13163_v2 = vld [vmem:[#allocation2 + $0xac] sm:$0xff] }
 0x25a   : > { %10777 = vmatmul.mubr.msk.f32.gmra.mrb[14].mxu1 %vm578_vm1, %v12861_v4  ;;  %v2638_v4 = vld [vmem:[#allocation2 + $0xf3] sm:$0xff] }
 0x25b   : > { %10779 = vmatprep.mubr.msk.f32.mxu1 %vm578_vm1, %v1768_v5  ;;  %v699_v5 = vld [vmem:[%s12996_s15] sm:$0xff] }
 0x25c   : > { %783 = vrot.lane.b32.xlu1 %v699_v5, %s12444_s16  ;;  %v713_v5 = vld [vmem:[%s12996_s15 + $0x70] sm:$0xff] }
 0x25e   : > { %10780 = vmatmul.mubr.msk.f32.gmra.mrb[16].mxu1 %vm578_vm1, %v1769_v6  ;;  %v4803_v6 = vld [vmem:[%s14517_s8] sm:$0xff] }
 0x25f   : > { %10782 = vmatprep.mubr.msk.f32.mxu1 %vm578_vm1, %v1770_v7  ;;  %4841 = vperm.xlu0 %12431, %v4803_v6   ;;  %v2639_v7 = vld [vmem:[#allocation2 + $0xfb] sm:$0xff] }
 0x260   : > { %v13176_v6 = vld [vmem:[#allocation2 + $0xbc] sm:$0xff] }
 0x262   : > { %10783 = vmatmul.mubr.msk.f32.gmra.mrb[18].mxu1 %vm578_vm1, %v1771_v8  ;;  %v2640_v8 = vld [vmem:[#allocation2 + $0x103] sm:$0xff] }
 0x263   : > { %10785 = vmatprep.mubr.msk.f32.mxu1 %vm578_vm1, %v1772_v9  ;;  %v4805_v9 = vld [vmem:[%s14517_s8 + $0x10] sm:$0xff] }
 0x264   : > { %4851 = vperm.xlu1 %12432, %v4805_v9   ;;  %v714_v9 = vld [vmem:[%s12996_s15 + $0x78] sm:$0xff] }
 0x266   : > { %10786 = vmatmul.mubr.msk.f32.gmra.mrb[20].mxu1 %vm578_vm1, %v1773_v10  ;;  %v700_v10 = vld [vmem:[%s12996_s15 + $0x8] sm:$0xff] }
 0x267   : > { %10788 = vmatprep.mubr.msk.f32.mxu1 %vm578_vm1, %v1774_v11  ;;  %785 = vrot.lane.b32.xlu0 %v700_v10, %s12444_s16  ;;  %v2641_v11 = vld [vmem:[#allocation2 + $0x10b] sm:$0xff] }
 0x268   : > { %v13189_v10 = vld [vmem:[#allocation2 + $0xcc] sm:$0xff] }
 0x26a   : > { %10789 = vmatmul.mubr.msk.f32.gmra.mrb[22].mxu1 %vm578_vm1, %v1775_v12  ;;  %v2642_v12 = vld [vmem:[#allocation2 + $0x113] sm:$0xff] }
 0x26b   : > { %10791 = vmatprep.mubr.msk.f32.mxu1 %vm578_vm1, %v1776_v13  ;;  %v4806_v13 = vld [vmem:[%s14517_s8 + $0x18] sm:$0xff] }
 0x26c   : > { %4856 = vperm.xlu1 %12432, %v4806_v13   ;;  %v715_v13 = vld [vmem:[%s12996_s15 + $0x80] sm:$0xff] }
 0x26e   : > { %10792 = vmatmul.mubr.msk.f32.gmra.mrb[24].mxu1 %vm578_vm1, %v1777_v14  ;;  %v701_v14 = vld [vmem:[%s12996_s15 + $0x10] sm:$0xff] }
 0x26f   : > { %10794 = vmatprep.mubr.msk.f32.mxu1 %vm578_vm1, %v1778_v15  ;;  %787 = vrot.lane.b32.xlu0 %v701_v14, %s12444_s16  ;;  %v2643_v15 = vld [vmem:[#allocation2 + $0x11b] sm:$0xff] }
 0x270   : > { %v13202_v14 = vld [vmem:[#allocation2 + $0xdc] sm:$0xff] }
 0x272   : > { %10795 = vmatmul.mubr.msk.f32.gmra.mrb[26].mxu1 %vm578_vm1, %v1779_v16  ;;  %v2644_v16 = vld [vmem:[#allocation2 + $0x123] sm:$0xff] }
 0x273   : > { %10797 = vmatprep.mubr.msk.f32.mxu1 %vm578_vm1, %v1780_v17  ;;  %v4807_v17 = vld [vmem:[%s14517_s8 + $0x20] sm:$0xff] }
 0x274   : > { %4861 = vperm.xlu1 %12432, %v4807_v17   ;;  %v716_v17 = vld [vmem:[%s12996_s15 + $0x88] sm:$0xff] }
 0x276   : > { %10798 = vmatmul.mubr.msk.f32.gmra.mrb[28].mxu1 %vm578_vm1, %v1781_v18  ;;  %v702_v18 = vld [vmem:[%s12996_s15 + $0x18] sm:$0xff] }
 0x277   : > { %10800 = vmatprep.mubr.msk.f32.mxu1 %vm578_vm1, %v1782_v19  ;;  %789 = vrot.lane.b32.xlu0 %v702_v18, %s12444_s16  ;;  %v2645_v19 = vld [vmem:[#allocation2 + $0x12b] sm:$0xff] }
 0x278   : > { %4866 = vperm.xlu1 %12432, %v4808_v23   ;;  %v13215_v18 = vld [vmem:[#allocation2 + $0xec] sm:$0xff]  ;;  %v13233_v23 = vld [vmem:[#allocation2 + $0x104] sm:$0xff] }
 0x27a   : > { %10801 = vmatmul.mubr.msk.f32.gmra.mrb[30].mxu1 %vm578_vm1, %v1783_v20  ;;  %v9298_v20 = vld [vmem:[%s14513_s4 + $0xd0] sm:$0xff] }
 0x27b   : > { %10803 = vmatprep.mubr.msk.f32.mxu1 %vm578_vm1, %v1784_v21  ;;  %v9299_v21 = vld [vmem:[%s14513_s4 + $0xd8] sm:$0xff]  ;;  %791 = vrot.lane.b32.xlu0 %v703_v24, %s12444_s16  ;;  %v4823_v24 = vld [vmem:[%s14517_s8 + $0xa0] sm:$0xff] }
 0x27c   : > { %v11745_v25 = vpack.c.bf16 %v9299_v21, %v9298_v20  ;;  %v4822_v20 = vld [vmem:[%s14517_s8 + $0x98] sm:$0xff]  ;;  %v717_v21 = vld [vmem:[%s12996_s15 + $0x90] sm:$0xff] }
 0x27e   : > { %10804 = vmatmul.mubr.msk.f32.gmra.mrb[32].mxu1 %vm578_vm1, %v1785_v22  ;;  %v3040_v22 = vld [vmem:[#allocation2 + $0x14] sm:$0xff] }
 0x27f   : > { %10806 = vmatprep.mubr.msk.f32.mxu1 %vm578_vm1, %v2214_v29  ;;  %v13047_v29 = vld [vmem:[#allocation2 + $0x24] sm:$0xff]  ;;  %793 = vrot.lane.b32.xlu0 %v704_v32, %s12444_s16  ;;  %v13254_v32 = vld [vmem:[#allocation2 + $0x11c] sm:$0xff] }
 0x282   : > { %10807 = vmatmul.mubr.msk.f32.gmra.mrb[34].mxu1 %vm578_vm1, %v2215_v30  ;;  %v4809_v30 = vld [vmem:[%s14517_s8 + $0x30] sm:$0xff] }
 0x283   : > { %10817 = vmatprep.mubr.msk.f32.mxu1 %vm578_vm1, %v2610_v34  ;;  %4871 = vperm.xlu1 %12432, %v4809_v30   ;;  %v13058_v34 = vld [vmem:[#allocation2 + $0x2c] sm:$0xff]  ;;  %v719_v30 = vld [vmem:[%s12996_s15 + $0xa0] sm:$0xff] }
 0x284   : > { %795 = vrot.lane.b32.xlu0 %v705_v37, %s12444_s16  ;;  %v4825_v37 = vld [vmem:[%s14517_s8 + $0xb0] sm:$0xff] }
 0x286   : > { %10818 = vmatmul.mubr.msk.f32.vlgmr.msra.gmra.mrb[0].mxu1 %vm578_vm1, %v2611_v36  ;;  %v4810_v36 = vld [vmem:[%s14517_s8 + $0x38] sm:$0xff] }
 0x287   : > { %11736 = vmatpush3.bf16.msra.mxu1 %v11733_v28  ;;  %10820 = vmatprep.mubr.msk.f32.mxu1 %vm578_vm1, %v2612_v39  ;;  %v9337_v28 = vld [vmem:[%s14513_s4 + $0xe8] sm:$0xff] }
 0x288   : > { %11738 = vmatprep.subr.bf16.mxu1 %v11737_v35  ;;  %v13056_v33 = vpack.c.bf16 %v9337_v28, %v9336_v27  ;;  %4876 = vperm.xlu1 %12432, %v4810_v36   ;;  %v13077_v39 = vld [vmem:[#allocation2 + $0x44] sm:$0xff]  ;;  %v13246_v27 = vld [vmem:[#allocation2 + $0x114] sm:$0xff] }
 0x289   : > { %v4824_v28 = vld [vmem:[%s14517_s8 + $0xa8] sm:$0xff] }
 0x28a   : > { %10821 = vmatmul.mubr.msk.f32.gmra.mrb[2].mxu1 %vm578_vm1, %v2613_v41  ;;  %v706_v41 = vld [vmem:[%s12996_s15 + $0x38] sm:$0xff]  ;;  %v13259_v36 = vld [vmem:[#allocation2 + $0x124] sm:$0xff] }
 0x28b   : > { %10823 = vmatprep.mubr.msk.f32.mxu1 %vm578_vm1, %v2614_v42  ;;  %11740 = vmatpush3.bf16.msra.mxu1 %v11737_v35  ;;  %v13063_v35 = vld [vmem:[#allocation2 + $0x34] sm:$0xff]  ;;  %v13085_v42 = vld [vmem:[#allocation2 + $0x4c] sm:$0xff] }
 0x28c   : > { %11742 = vmatprep.subr.bf16.mxu1 %v12963_v40  ;;  %797 = vrot.lane.b32.xlu0 %v706_v41, %s12444_s16  ;;  %v13267_v41 = vld [vmem:[#allocation2 + $0x12c] sm:$0xff] }
 0x28e   : > { %10824 = vmatmul.mubr.msk.f32.gmra.mrb[4].mxu1 %vm578_vm1, %v2615_v43  ;;  %v13090_v43 = vld [vmem:[#allocation2 + $0x54] sm:$0xff] }
 0x28f   : > { %10826 = vmatprep.mubr.msk.f32.mxu1 %vm578_vm1, %v2616_v44  ;;  %v4812_v44 = vld [vmem:[%s14517_s8 + $0x48] sm:$0xff] }
 0x292   : > { %10827 = vmatmul.mubr.msk.f32.gmra.mrb[6].mxu1 %vm578_vm1, %v2617_v45  ;;  %v707_v45 = vld [vmem:[%s12996_s15 + $0x40] sm:$0xff] }
 0x293   : > { %10829 = vmatprep.mubr.msk.f32.mxu1 %vm578_vm1, %v2618_v46  ;;  %v13098_v46 = vld [vmem:[#allocation2 + $0x5c] sm:$0xff]  ;;  %799 = vrot.lane.b32.xlu0 %v707_v45, %s12444_s16 }
 0x294   : > { %v9339_v45 = vld [vmem:[%s14513_s4 + $0xf8] sm:$0xff] }
 0x296   : > { %10830 = vmatmul.mubr.msk.f32.gmra.mrb[8].mxu1 %vm578_vm1, %v2619_v47  ;;  %v13103_v47 = vld [vmem:[#allocation2 + $0x64] sm:$0xff] }
 0x297   : > { %10832 = vmatprep.mubr.msk.f32.mxu1 %vm578_vm1, %v2620_v48  ;;  %v4813_v48 = vld [vmem:[%s14517_s8 + $0x50] sm:$0xff] }
 0x29a   : > { %10833 = vmatmul.mubr.msk.f32.gmra.mrb[10].mxu1 %vm578_vm1, %v2621_v49  ;;  %v708_v49 = vld [vmem:[%s12996_s15 + $0x48] sm:$0xff] }
 0x29b   : > { %10835 = vmatprep.mubr.msk.f32.mxu1 %vm578_vm1, %v2622_v50  ;;  %v13111_v50 = vld [vmem:[#allocation2 + $0x6c] sm:$0xff]  ;;  %801 = vrot.lane.b32.xlu0 %v708_v49, %s12444_s16 }
 0x29c   : > { %v721_v49 = vld [vmem:[%s12996_s15 + $0xb0] sm:$0xff] }
 0x29e   : > { %10836 = vmatmul.mubr.msk.f32.gmra.mrb[12].mxu1 %vm578_vm1, %v2623_v51  ;;  %v13116_v51 = vld [vmem:[#allocation2 + $0x74] sm:$0xff] }
 0x29f   : > { %10838 = vmatprep.mubr.msk.f32.mxu1 %vm578_vm1, %v2624_v52  ;;  %v4814_v52 = vld [vmem:[%s14517_s8 + $0x58] sm:$0xff] }
 0x2a2   : > { %10839 = vmatmul.mubr.msk.f32.gmra.mrb[14].mxu1 %vm578_vm1, %v2625_v53  ;;  %v709_v53 = vld [vmem:[%s12996_s15 + $0x50] sm:$0xff] }
 0x2a3   : > { %10841 = vmatprep.mubr.msk.f32.mxu1 %vm578_vm1, %v2626_v54  ;;  %v13124_v54 = vld [vmem:[#allocation2 + $0x7c] sm:$0xff]  ;;  %803 = vrot.lane.b32.xlu0 %v709_v53, %s12444_s16 }
 0x2a4   : > { %v9376_v53 = vld [vmem:[%s14513_s4 + $0x100] sm:$0xff] }
 0x2a6   : > { %10842 = vmatmul.mubr.msk.f32.gmra.mrb[16].mxu1 %vm578_vm1, %v2627_v55  ;;  %v13129_v55 = vld [vmem:[#allocation2 + $0x84] sm:$0xff] }
 0x2a7   : > { %10844 = vmatprep.mubr.msk.f32.mxu1 %vm578_vm1, %v2628_v56  ;;  %v4815_v56 = vld [vmem:[%s14517_s8 + $0x60] sm:$0xff] }
 0x2aa   : > { %10845 = vmatmul.mubr.msk.f32.gmra.mrb[18].mxu1 %vm578_vm1, %v2629_v57  ;;  %v710_v57 = vld [vmem:[%s12996_s15 + $0x58] sm:$0xff] }
 0x2ab   : > { %10847 = vmatprep.mubr.msk.f32.mxu1 %vm578_vm1, %v2630_v58  ;;  %v13137_v58 = vld [vmem:[#allocation2 + $0x8c] sm:$0xff]  ;;  %805 = vrot.lane.b32.xlu0 %v710_v57, %s12444_s16  ;;  %v723_v57 = vld [vmem:[%s12996_s15 + $0xc0] sm:$0xff] }
 0x2ae   : > { %10848 = vmatmul.mubr.msk.f32.gmra.mrb[20].mxu1 %vm578_vm1, %v2631_v59  ;;  %v13142_v59 = vld [vmem:[#allocation2 + $0x94] sm:$0xff] }
 0x2af   : > { %10850 = vmatprep.mubr.msk.f32.mxu1 %vm578_vm1, %v2632_v60  ;;  %v4816_v60 = vld [vmem:[%s14517_s8 + $0x68] sm:$0xff] }
 0x2b2   : > { %10851 = vmatmul.mubr.msk.f32.gmra.mrb[22].mxu1 %vm578_vm1, %v2633_v61  ;;  %v711_v61 = vld [vmem:[%s12996_s15 + $0x60] sm:$0xff] }
 0x2b3   : > { %10853 = vmatprep.mubr.msk.f32.mxu1 %vm578_vm1, %v2634_v62  ;;  %v13150_v62 = vld [vmem:[#allocation2 + $0x9c] sm:$0xff]  ;;  %807 = vrot.lane.b32.xlu0 %v711_v61, %s12444_s16  ;;  %v725_v61 = vld [vmem:[%s12996_s15 + $0xd0] sm:$0xff] }
 0x2b6   : > { %10854 = vmatmul.mubr.msk.f32.gmra.mrb[24].mxu1 %vm578_vm1, %v2635_v0  ;;  %v4817_v0 = vld [vmem:[%s14517_s8 + $0x70] sm:$0xff] }
 0x2b7   : > { %10856 = vmatprep.mubr.msk.f32.mxu1 %vm578_vm1, %v2636_v1  ;;  %v712_v1 = vld [vmem:[%s12996_s15 + $0x68] sm:$0xff] }
 0x2b8   : > { %809 = vrot.lane.b32.xlu0 %v712_v1, %s12444_s16 }
 0x2ba   : > { %10857 = vmatmul.mubr.msk.f32.gmra.mrb[26].mxu1 %vm578_vm1, %v2637_v3  ;;  %v13168_v3 = vld [vmem:[#allocation2 + $0xb4] sm:$0xff] }
 0x2bb   : > { %10859 = vmatprep.mubr.msk.f32.mxu1 %vm578_vm1, %v2638_v4  ;;  %v4818_v4 = vld [vmem:[%s14517_s8 + $0x78] sm:$0xff] }
 0x2bc   : > { %811 = vrot.lane.b32.xlu0 %v713_v5, %s12444_s16 }
 0x2be   : > { %10860 = vmatmul.mubr.msk.f32.gmra.mrb[28].mxu1 %vm578_vm1, %v2639_v7  ;;  %v13181_v7 = vld [vmem:[#allocation2 + $0xc4] sm:$0xff] }
 0x2bf   : > { %10862 = vmatprep.mubr.msk.f32.mxu1 %vm578_vm1, %v2640_v8  ;;  %v4819_v8 = vld [vmem:[%s14517_s8 + $0x80] sm:$0xff] }
 0x2c0   : > { %813 = vrot.lane.b32.xlu0 %v714_v9, %s12444_s16 }
 0x2c2   : > { %10863 = vmatmul.mubr.msk.f32.gmra.mrb[30].mxu1 %vm578_vm1, %v2641_v11  ;;  %v13194_v11 = vld [vmem:[#allocation2 + $0xd4] sm:$0xff] }
 0x2c3   : > { %10865 = vmatprep.mubr.msk.f32.mxu1 %vm578_vm1, %v2642_v12  ;;  %v4820_v12 = vld [vmem:[%s14517_s8 + $0x88] sm:$0xff] }
 0x2c4   : > { %815 = vrot.lane.b32.xlu0 %v715_v13, %s12444_s16 }
 0x2c6   : > { %10866 = vmatmul.mubr.msk.f32.gmra.mrb[32].mxu1 %vm578_vm1, %v2643_v15  ;;  %v13207_v15 = vld [vmem:[#allocation2 + $0xe4] sm:$0xff] }
 0x2c7   : > { %10868 = vmatprep.mubr.msk.f32.mxu1 %vm578_vm1, %v2644_v16  ;;  %v4821_v16 = vld [vmem:[%s14517_s8 + $0x90] sm:$0xff] }
 0x2c8   : > { %817 = vrot.lane.b32.xlu0 %v716_v17, %s12444_s16 }
 0x2ca   : > { %10869 = vmatmul.mubr.msk.f32.gmra.mrb[34].mxu1 %vm578_vm1, %v2645_v19  ;;  %v13220_v19 = vld [vmem:[#allocation2 + $0xf4] sm:$0xff] }
 0x2cb   : > { %10879 = vmatprep.mubr.msk.f32.mxu1 %vm578_vm1, %v3040_v22  ;;  %v13228_v22 = vld [vmem:[#allocation2 + $0xfc] sm:$0xff] }
 0x2cc   : > { %819 = vrot.lane.b32.xlu0 %v717_v21, %s12444_s16  ;;  %v3504_v21 = vld [vmem:[#allocation2 + $0x134] sm:$0xff] }
 0x2ce   : > { %10880 = vmatmul.mubr.msk.f32.vlgmr.msra.gmra.mrb[0].mxu1 %vm578_vm1, %v3041_v26  ;;  %v13241_v26 = vld [vmem:[#allocation2 + $0x10c] sm:$0xff] }
 0x2cf   : > { %11744 = vmatpush3.bf16.msra.mxu1 %v12963_v40  ;;  %10882 = vmatprep.mubr.msk.f32.mxu1 %vm578_vm1, %v13047_v29  ;;  %v4811_v40 = vld [vmem:[%s14517_s8 + $0x40] sm:$0xff] }
 0x2d0   : > { %11746 = vmatprep.subr.bf16.mxu1 %v11745_v25  ;;  %4881 = vperm.xlu1 %12432, %v4811_v40   ;;  %v720_v40 = vld [vmem:[%s12996_s15 + $0xa8] sm:$0xff] }
 0x2d2   : > { %10883 = vmatmul.mubr.msk.f32.gmra.mrb[2].mxu1 %vm578_vm1, %v13058_v34 }
 0x2d3   : > { %10885 = vmatprep.mubr.msk.f32.mxu1 %vm578_vm1, %v13063_v35  ;;  %11748 = vmatpush3.bf16.msra.mxu1 %v11745_v25  ;;  %v718_v25 = vld [vmem:[%s12996_s15 + $0x98] sm:$0xff] }
 0x2d4   : > { %11750 = vmatprep.subr.bf16.mxu1 %v13056_v33  ;;  %4886 = vperm.xlu1 %12432, %v4812_v44   ;;  %v9338_v44 = vld [vmem:[%s14513_s4 + $0xf0] sm:$0xff] }
 0x2d5   : > { %821 = vrot.lane.b32.xlu0 %v718_v25, %s12444_s16  ;;  %v9378_v25 = vld [vmem:[%s14513_s4 + $0x110] sm:$0xff] }
 0x2d6   : > { %10886 = vmatmul.mubr.msk.f32.gmra.mrb[4].mxu1 %vm578_vm1, %v13072_v38 }
 0x2d7   : > { %10888 = vmatprep.mubr.msk.f32.mxu1 %vm578_vm1, %v13077_v39 }
 0x2d8   : > { %4891 = vperm.xlu1 %12432, %v4813_v48   ;;  %v4826_v48 = vld [vmem:[%s14517_s8 + $0xb8] sm:$0xff] }
 0x2d9   : > { %823 = vrot.lane.b32.xlu0 %v719_v30, %s12444_s16 }
 0x2da   : > { %10889 = vmatmul.mubr.msk.f32.gmra.mrb[6].mxu1 %vm578_vm1, %v13085_v42 }
 0x2db   : > { %10891 = vmatprep.mubr.msk.f32.mxu1 %vm578_vm1, %v13090_v43 }
 0x2dc   : > { %4896 = vperm.xlu1 %12432, %v4814_v52   ;;  %v11753_v52 = vpack.c.bf16 %v9339_v45, %v9338_v44  ;;  %v3903_v44 = vld [vmem:[#allocation2 + $0x3d] sm:$0xff]  ;;  %v3904_v45 = vld [vmem:[#allocation2 + $0x45] sm:$0xff] }
 0x2dd   : > { %825 = vrot.lane.b32.xlu0 %v720_v40, %s12444_s16 }
 0x2de   : > { %10892 = vmatmul.mubr.msk.f32.gmra.mrb[8].mxu1 %vm578_vm1, %v13098_v46  ;;  %v13386_v1 = vpop.permute.xlu0 %4841 }
 0x2df   : > { %10894 = vmatprep.mubr.msk.f32.mxu1 %vm578_vm1, %v13103_v47 }
 0x2e0   : > { %4901 = vperm.xlu1 %12432, %v4815_v56   ;;  %v9377_v56 = vld [vmem:[%s14513_s4 + $0x108] sm:$0xff] }
 0x2e1   : > { %827 = vrot.lane.b32.xlu0 %v721_v49, %s12444_s16 }
 0x2e2   : > { %10895 = vmatmul.mubr.msk.f32.gmra.mrb[10].mxu1 %vm578_vm1, %v13111_v50  ;;  %v786_v5 = vpop.permute.xlu0 %785 }
 0x2e3   : > { %10897 = vmatprep.mubr.msk.f32.mxu1 %vm578_vm1, %v13116_v51  ;;  %911 = vst.msk [vmem:[#allocation3 + $0x8] sm:$0xff] %vm909_vm4, %v786_v5  ;;  %v3914_v5 = vld [vmem:[#allocation2 + $0x95] sm:$0xff] }
 0x2e4   : > { %4906 = vperm.xlu1 %12432, %v4816_v60   ;;  %v13298_v60 = vpack.c.bf16 %v9377_v56, %v9376_v53  ;;  %955 = vst.msk [vmem:[#allocation3 + $0x8] sm:$0xff] %vm953_vm5, %v12441_v31  ;;  %v3906_v53 = vld [vmem:[#allocation2 + $0x55] sm:$0xff] }
 0x2e6   : > { %10898 = vmatmul.mubr.msk.f32.gmra.mrb[12].mxu1 %vm578_vm1, %v13124_v54  ;;  %v788_v9 = vpop.permute.xlu0 %787 }
 0x2e7   : > { %10900 = vmatprep.mubr.msk.f32.mxu1 %vm578_vm1, %v13129_v55  ;;  %912 = vst.msk [vmem:[#allocation3 + $0x10] sm:$0xff] %vm909_vm4, %v788_v9  ;;  %v3915_v9 = vld [vmem:[#allocation2 + $0x9d] sm:$0xff] }
 0x2e8   : > { %4911 = vperm.xlu1 %12432, %v4817_v0   ;;  %v4836_v0 = vld [vmem:[%s14517_s8 + $0x108] sm:$0xff]  ;;  %957 = vst.msk [vmem:[#allocation3 + $0x10] sm:$0x7] %vm956_vm6, %v12441_v31 }
 0x2ea   : > { %10901 = vmatmul.mubr.msk.f32.gmra.mrb[14].mxu1 %vm578_vm1, %v13137_v58  ;;  %v790_v13 = vpop.permute.xlu0 %789 }
 0x2eb   : > { %10903 = vmatprep.mubr.msk.f32.mxu1 %vm578_vm1, %v13142_v59  ;;  %913 = vst.msk [vmem:[#allocation3 + $0x18] sm:$0xff] %vm909_vm4, %v790_v13 }
 0x2ec   : > { %4916 = vperm.xlu1 %12432, %v4818_v4   ;;  %v733_v4 = vld [vmem:[%s12996_s15 + $0x110] sm:$0xff] }
 0x2ee   : > { %10904 = vmatmul.mubr.msk.f32.gmra.mrb[16].mxu1 %vm578_vm1, %v13150_v62 }
 0x2ef   : > { %10906 = vmatprep.mubr.msk.f32.mxu1 %vm578_vm1, %v13155_v63 }
 0x2f0   : > { %4921 = vperm.xlu1 %12432, %v4819_v8   ;;  %v735_v8 = vld [vmem:[%s12996_s15 + $0x120] sm:$0xff] }
 0x2f2   : > { %10907 = vmatmul.mubr.msk.f32.gmra.mrb[18].mxu1 %vm578_vm1, %v13163_v2 }
 0x2f3   : > { %10909 = vmatprep.mubr.msk.f32.mxu1 %vm578_vm1, %v13168_v3 }
 0x2f4   : > { %4926 = vperm.xlu1 %12432, %v4820_v12   ;;  %v4838_v12 = vld [vmem:[%s14517_s8 + $0x118] sm:$0xff] }
 0x2f6   : > { %10910 = vmatmul.mubr.msk.f32.gmra.mrb[20].mxu1 %vm578_vm1, %v13176_v6 }
 0x2f7   : > { %10912 = vmatprep.mubr.msk.f32.mxu1 %vm578_vm1, %v13181_v7 }
 0x2f8   : > { %4931 = vperm.xlu1 %12432, %v4821_v16   ;;  %v792_v16 = vpop.permute.xlu0 %791 }
 0x2f9   : > { %914 = vst.msk [vmem:[#allocation3 + $0x20] sm:$0xff] %vm909_vm4, %v792_v16  ;;  %v3918_v16 = vld [vmem:[#allocation2 + $0xb5] sm:$0xff] }
 0x2fa   : > { %10913 = vmatmul.mubr.msk.f32.gmra.mrb[22].mxu1 %vm578_vm1, %v13189_v10 }
 0x2fb   : > { %10915 = vmatprep.mubr.msk.f32.mxu1 %vm578_vm1, %v13194_v11 }
 0x2fc   : > { %4936 = vperm.xlu1 %12432, %v4822_v20  }
 0x2fe   : > { %10916 = vmatmul.mubr.msk.f32.gmra.mrb[24].mxu1 %vm578_vm1, %v13202_v14 }
 0x2ff   : > { %10918 = vmatprep.mubr.msk.f32.mxu1 %vm578_vm1, %v13207_v15 }
 0x300   : > { %4941 = vperm.xlu1 %12432, %v4823_v24  }
 0x302   : > { %10919 = vmatmul.mubr.msk.f32.gmra.mrb[26].mxu1 %vm578_vm1, %v13215_v18 }
 0x303   : > { %10921 = vmatprep.mubr.msk.f32.mxu1 %vm578_vm1, %v13220_v19 }
 0x304   : > { %4946 = vperm.xlu1 %12432, %v4824_v28  }
 0x306   : > { %10922 = vmatmul.mubr.msk.f32.gmra.mrb[28].mxu1 %vm578_vm1, %v13228_v22 }
 0x307   : > { %10924 = vmatprep.mubr.msk.f32.mxu1 %vm578_vm1, %v13233_v23 }
 0x308   : > { %4951 = vperm.xlu1 %12432, %v4825_v37   ;;  %v3902_v37 = vld [vmem:[#allocation2 + $0x35] sm:$0xff] }
 0x30a   : > { %10925 = vmatmul.mubr.msk.f32.gmra.mrb[30].mxu1 %vm578_vm1, %v13241_v26 }
 0x30b   : > { %10927 = vmatprep.mubr.msk.f32.mxu1 %vm578_vm1, %v13246_v27 }
 0x30c   : > { %4956 = vperm.xlu1 %12432, %v4826_v48  }
 0x30e   : > { %10928 = vmatmul.mubr.msk.f32.gmra.mrb[32].mxu1 %vm578_vm1, %v13254_v32 }
 0x30f   : > { %10930 = vmatprep.mubr.msk.f32.mxu1 %vm578_vm1, %v13259_v36 }
 0x310   : > { %831 = vrot.lane.b32.xlu1 %v723_v57, %s12444_s16 }
 0x312   : > { %10931 = vmatmul.mubr.msk.f32.gmra.mrb[34].mxu1 %vm578_vm1, %v13267_v41 }
 0x313   : > { %10941 = vmatprep.mubr.msk.f32.mxu1 %vm578_vm1, %v13047_v29  ;;  %v722_v29 = vld [vmem:[%s12996_s15 + $0xb8] sm:$0xff] }
 0x314   : > { %829 = vrot.lane.b32.xlu0 %v722_v29, %s12444_s16  ;;  %835 = vrot.lane.b32.xlu1 %v725_v61, %s12444_s16  ;;  %v3907_v29 = vld [vmem:[#allocation2 + $0x5d] sm:$0xff]  ;;  %v736_v61 = vld [vmem:[%s12996_s15 + $0x128] sm:$0xff] }
 0x316   : > { %10942 = vmatmul.mubr.msk.f32.vlgmr.msra.gmra.mrb[0].mxu1 %vm578_vm1, %v13058_v34  ;;  %v4828_v34 = vld [vmem:[%s14517_s8 + $0xc8] sm:$0xff] }
 0x317   : > { %11752 = vmatpush3.bf16.msra.mxu1 %v13056_v33  ;;  %10944 = vmatprep.mubr.msk.f32.mxu1 %vm578_vm1, %v13063_v35  ;;  %v724_v33 = vld [vmem:[%s12996_s15 + $0xc8] sm:$0xff]  ;;  %v4827_v35 = vld [vmem:[%s14517_s8 + $0xc0] sm:$0xff] }
 0x318   : > { %11754 = vmatprep.subr.bf16.mxu1 %v11753_v52  ;;  %833 = vrot.lane.b32.xlu0 %v724_v33, %s12444_s16  ;;  %v737_v33 = vld [vmem:[%s12996_s15 + $0x130] sm:$0xff] }
 0x319   : > { %4966 = vperm.xlu1 %12432, %v4828_v34  }
 0x31a   : > { %10945 = vmatmul.mubr.msk.f32.gmra.mrb[2].mxu1 %vm578_vm1, %v13072_v38  ;;  %v4830_v38 = vld [vmem:[%s14517_s8 + $0xd8] sm:$0xff] }
 0x31b   : > { %10947 = vmatprep.mubr.msk.f32.mxu1 %vm578_vm1, %v13077_v39  ;;  %11756 = vmatpush3.bf16.msra.mxu1 %v11753_v52  ;;  %v4829_v39 = vld [vmem:[%s14517_s8 + $0xd0] sm:$0xff] }
 0x31c   : > { %11758 = vmatprep.subr.bf16.mxu1 %v13298_v60  ;;  %4961 = vperm.xlu0 %12431, %v4827_v35   ;;  %v3905_v52 = vld [vmem:[#allocation2 + $0x4d] sm:$0xff] }
 0x31d   : > { %4976 = vperm.xlu1 %12432, %v4830_v38   ;;  %v9417_v38 = vld [vmem:[%s14515_s6 + $0x20] sm:$0xff] }
 0x31e   : > { %10948 = vmatmul.mubr.msk.f32.gmra.mrb[4].mxu1 %vm578_vm1, %v13085_v42  ;;  %v4831_v42 = vld [vmem:[%s14517_s8 + $0xe0] sm:$0xff] }
 0x31f   : > { %10950 = vmatprep.mubr.msk.f32.mxu1 %vm578_vm1, %v13090_v43  ;;  %v726_v43 = vld [vmem:[%s12996_s15 + $0xd8] sm:$0xff] }
 0x320   : > { %4971 = vperm.xlu0 %12431, %v4829_v39   ;;  %v9418_v39 = vld [vmem:[%s14515_s6 + $0x28] sm:$0xff] }
 0x321   : > { %4981 = vperm.xlu1 %12432, %v4831_v42   ;;  %v9419_v42 = vld [vmem:[%s14515_s6 + $0x30] sm:$0xff] }
 0x322   : > { %10951 = vmatmul.mubr.msk.f32.gmra.mrb[6].mxu1 %vm578_vm1, %v13098_v46  ;;  %v4832_v46 = vld [vmem:[%s14517_s8 + $0xe8] sm:$0xff] }
 0x323   : > { %10953 = vmatprep.mubr.msk.f32.mxu1 %vm578_vm1, %v13103_v47  ;;  %v727_v47 = vld [vmem:[%s12996_s15 + $0xe0] sm:$0xff] }
 0x324   : > { %837 = vrot.lane.b32.xlu0 %v726_v43, %s12444_s16  ;;  %v738_v43 = vld [vmem:[%s12996_s15 + $0x138] sm:$0xff] }
 0x325   : > { %4986 = vperm.xlu1 %12432, %v4832_v46   ;;  %v13503_v46 = vpack.c.bf16 %v9418_v39, %v9417_v38 }
 0x326   : > { %10954 = vmatmul.mubr.msk.f32.gmra.mrb[8].mxu1 %vm578_vm1, %v13111_v50  ;;  %v4833_v50 = vld [vmem:[%s14517_s8 + $0xf0] sm:$0xff] }
 0x327   : > { %10956 = vmatprep.mubr.msk.f32.mxu1 %vm578_vm1, %v13116_v51  ;;  %v728_v51 = vld [vmem:[%s12996_s15 + $0xe8] sm:$0xff]  ;;  %11766 = vmatprep.subr.bf16.mxu0 %v13503_v46 }
 0x328   : > { %839 = vrot.lane.b32.xlu0 %v727_v47, %s12444_s16  ;;  %v9420_v47 = vld [vmem:[%s14515_s6 + $0x38] sm:$0xff]  ;;  %11768 = vmatpush3.bf16.msra.mxu0 %v13503_v46 }
 0x329   : > { %4991 = vperm.xlu1 %12432, %v4833_v50   ;;  %v3909_v50 = vld [vmem:[#allocation2 + $0x6d] sm:$0xff] }
 0x32a   : > { %10957 = vmatmul.mubr.msk.f32.gmra.mrb[10].mxu1 %vm578_vm1, %v13124_v54  ;;  %v4834_v54 = vld [vmem:[%s14517_s8 + $0xf8] sm:$0xff] }
 0x32b   : > { %10959 = vmatprep.mubr.msk.f32.mxu1 %vm578_vm1, %v13129_v55  ;;  %v729_v55 = vld [vmem:[%s12996_s15 + $0xf0] sm:$0xff] }
 0x32c   : > { %841 = vrot.lane.b32.xlu0 %v728_v51, %s12444_s16  ;;  %v13508_v51 = vpack.c.bf16 %v9420_v47, %v9419_v42  ;;  %v3931_v42 = vld [vmem:[#allocation2 + $0x11d] sm:$0xff] }
 0x32d   : > { %4996 = vperm.xlu1 %12432, %v4834_v54   ;;  %v3910_v54 = vld [vmem:[#allocation2 + $0x75] sm:$0xff] }
 0x32e   : > { %10960 = vmatmul.mubr.msk.f32.gmra.mrb[12].mxu1 %vm578_vm1, %v13137_v58  ;;  %v13369_v58 = vpop.permute.xlu1 %4846  ;;  %11770 = vmatprep.subr.bf16.mxu0 %v13508_v51 }
 0x32f   : > { %10962 = vmatprep.mubr.msk.f32.mxu1 %vm578_vm1, %v13142_v59  ;;  %v4835_v59 = vld [vmem:[%s14517_s8 + $0x100] sm:$0xff]  ;;  %11772 = vmatpush3.bf16.msra.mxu0 %v13508_v51 }
 0x330   : > { %843 = vrot.lane.b32.xlu0 %v729_v55, %s12444_s16 }
 0x331   : > { %5001 = vperm.xlu1 %12432, %v4835_v59  }
 0x332   : > { %10963 = vmatmul.mubr.msk.f32.gmra.mrb[14].mxu1 %vm578_vm1, %v13150_v62  ;;  %v730_v62 = vld [vmem:[%s12996_s15 + $0xf8] sm:$0xff] }
 0x333   : > { %10965 = vmatprep.mubr.msk.f32.mxu1 %vm578_vm1, %v13155_v63  ;;  %v784_v63 = vpop.permute.xlu1 %783 }
 0x334   : > { %845 = vrot.lane.b32.xlu0 %v730_v62, %s12444_s16  ;;  %910 = vst.msk [vmem:[#allocation3] sm:$0xff] %vm909_vm4, %v784_v63  ;;  %v3911_v62 = vld [vmem:[#allocation2 + $0x7d] sm:$0xff]  ;;  %v3912_v63 = vld [vmem:[#allocation2 + $0x85] sm:$0xff] }
 0x335   : > { %954 = vst.msk [vmem:[#allocation3] sm:$0xff] %vm953_vm5, %v12441_v31  ;;  %5006 = vperm.xlu1 %12432, %v4836_v0  }
 0x336   : > { %10966 = vmatmul.mubr.msk.f32.gmra.mrb[16].mxu1 %vm578_vm1, %v13163_v2  ;;  %v731_v2 = vld [vmem:[%s12996_s15 + $0x100] sm:$0xff] }
 0x337   : > { %10968 = vmatprep.mubr.msk.f32.mxu1 %vm578_vm1, %v13168_v3  ;;  %v13394_v3 = vpop.permute.xlu1 %4851 }
 0x338   : > { %847 = vrot.lane.b32.xlu0 %v731_v2, %s12444_s16 }
 0x339   : > { %851 = vrot.lane.b32.xlu1 %v733_v4, %s12444_s16  ;;  %v3913_v4 = vld [vmem:[#allocation2 + $0x8d] sm:$0xff] }
 0x33a   : > { %10969 = vmatmul.mubr.msk.f32.gmra.mrb[18].mxu1 %vm578_vm1, %v13176_v6  ;;  %v732_v6 = vld [vmem:[%s12996_s15 + $0x108] sm:$0xff] }
 0x33b   : > { %10971 = vmatprep.mubr.msk.f32.mxu1 %vm578_vm1, %v13181_v7  ;;  %v13407_v7 = vpop.permute.xlu1 %4856 }
 0x33c   : > { %849 = vrot.lane.b32.xlu0 %v732_v6, %s12444_s16 }
 0x33d   : > { %855 = vrot.lane.b32.xlu1 %v735_v8, %s12444_s16 }
 0x33e   : > { %10972 = vmatmul.mubr.msk.f32.gmra.mrb[20].mxu1 %vm578_vm1, %v13189_v10  ;;  %v734_v10 = vld [vmem:[%s12996_s15 + $0x118] sm:$0xff] }
 0x33f   : > { %10974 = vmatprep.mubr.msk.f32.mxu1 %vm578_vm1, %v13194_v11  ;;  %v13419_v11 = vpop.permute.xlu1 %4861 }
 0x340   : > { %853 = vrot.lane.b32.xlu0 %v734_v10, %s12444_s16  ;;  %v3916_v10 = vld [vmem:[#allocation2 + $0xa5] sm:$0xff] }
 0x341   : > { %5016 = vperm.xlu1 %12432, %v4838_v12  }
 0x342   : > { %10975 = vmatmul.mubr.msk.f32.gmra.mrb[22].mxu1 %vm578_vm1, %v13202_v14  ;;  %v4837_v14 = vld [vmem:[%s14517_s8 + $0x110] sm:$0xff] }
 0x343   : > { %10977 = vmatprep.mubr.msk.f32.mxu1 %vm578_vm1, %v13207_v15  ;;  %v13432_v15 = vpop.permute.xlu1 %4866 }
 0x344   : > { %5011 = vperm.xlu0 %12431, %v4837_v14   ;;  %v3917_v14 = vld [vmem:[#allocation2 + $0xad] sm:$0xff] }
 0x345   : > { %859 = vrot.lane.b32.xlu1 %v737_v33, %s12444_s16  ;;  %v3929_v33 = vld [vmem:[#allocation2 + $0x10d] sm:$0xff] }
 0x346   : > { %10978 = vmatmul.mubr.msk.f32.gmra.mrb[24].mxu1 %vm578_vm1, %v13215_v18  ;;  %v794_v18 = vpop.permute.xlu0 %793 }
 0x347   : > { %10980 = vmatprep.mubr.msk.f32.mxu1 %vm578_vm1, %v13220_v19  ;;  %v13441_v17 = vpop.permute.xlu1 %4871  ;;  %915 = vst.msk [vmem:[#allocation3 + $0x28] sm:$0xff] %vm909_vm4, %v794_v18 }
 0x348   : > { %857 = vrot.lane.b32.xlu0 %v736_v61, %s12444_s16 }
 0x34a   : > { %10981 = vmatmul.mubr.msk.f32.gmra.mrb[26].mxu1 %vm578_vm1, %v13228_v22  ;;  %v796_v20 = vpop.permute.xlu0 %795  ;;  %v3505_v22 = vld [vmem:[#allocation2 + $0x13c] sm:$0xff] }
 0x34b   : > { %10983 = vmatprep.mubr.msk.f32.mxu1 %vm578_vm1, %v13233_v23  ;;  %v13448_v19 = vpop.permute.xlu1 %4876  ;;  %916 = vst.msk [vmem:[#allocation3 + $0x30] sm:$0xff] %vm909_vm4, %v796_v20 }
 0x34c   : > { %861 = vrot.lane.b32.xlu0 %v738_v43, %s12444_s16  ;;  %v3932_v43 = vld [vmem:[#allocation2 + $0x125] sm:$0xff] }
 0x34e   : > { %10984 = vmatmul.mubr.msk.f32.gmra.mrb[28].mxu1 %vm578_vm1, %v13241_v26  ;;  %v798_v24 = vpop.permute.xlu0 %797  ;;  %v9379_v26 = vld [vmem:[%s14513_s4 + $0x118] sm:$0xff] }
 0x34f   : > { %10986 = vmatprep.mubr.msk.f32.mxu1 %vm578_vm1, %v13246_v27  ;;  %v13454_v23 = vpop.permute.xlu1 %4881  ;;  %917 = vst.msk [vmem:[#allocation3 + $0x38] sm:$0xff] %vm909_vm4, %v798_v24  ;;  %v3900_v27 = vld [vmem:[#allocation2 + $0x25] sm:$0xff] }
 0x352   : > { %10987 = vmatmul.mubr.msk.f32.gmra.mrb[30].mxu1 %vm578_vm1, %v13254_v32  ;;  %v800_v30 = vpop.permute.xlu0 %799  ;;  %v11761_v32 = vpack.c.bf16 %v9379_v26, %v9378_v25  ;;  %v3921_v26 = vld [vmem:[#allocation2 + $0xcd] sm:$0xff] }
 0x353   : > { %10989 = vmatprep.mubr.msk.f32.mxu1 %vm578_vm1, %v13259_v36  ;;  %v13465_v28 = vpop.permute.xlu1 %4886  ;;  %918 = vst.msk [vmem:[#allocation3 + $0x40] sm:$0xff] %vm909_vm4, %v800_v30  ;;  %v3901_v36 = vld [vmem:[#allocation2 + $0x2d] sm:$0xff] }
 0x356   : > { %10990 = vmatmul.mubr.msk.f32.gmra.mrb[32].mxu1 %vm578_vm1, %v13267_v41  ;;  %v802_v41 = vpop.permute.xlu0 %801 }
 0x357   : > { %10992 = vmatprep.mubr.msk.f32.mxu1 %vm578_vm1, %v3504_v21  ;;  %v13471_v40 = vpop.permute.xlu1 %4891  ;;  %919 = vst.msk [vmem:[#allocation3 + $0x48] sm:$0xff] %vm909_vm4, %v802_v41  ;;  %v3919_v21 = vld [vmem:[#allocation2 + $0xbd] sm:$0xff] }
 0x35a   : > { %10993 = vmatmul.mubr.msk.f32.gmra.mrb[34].mxu1 %vm578_vm1, %v3505_v22  ;;  %v804_v49 = vpop.permute.xlu0 %803  ;;  %v3920_v22 = vld [vmem:[#allocation2 + $0xc5] sm:$0xff] }
 0x35b   : > { %11003 = vmatprep.mubr.msk.f32.mxu1 %vm578_vm1, %v3900_v27  ;;  %v13476_v48 = vpop.permute.xlu1 %4896  ;;  %920 = vst.msk [vmem:[#allocation3 + $0x50] sm:$0xff] %vm909_vm4, %v804_v49  ;;  %v3922_v27 = vld [vmem:[#allocation2 + $0xd5] sm:$0xff] }
 0x35c   : > { %v3926_v49 = vld [vmem:[#allocation2 + $0xf5] sm:$0xff] }
 0x35e   : > { %11004 = vmatmul.mubr.msk.f32.vlgmr.msra.gmra.mrb[0].mxu1 %vm578_vm1, %v3901_v36  ;;  %v806_v57 = vpop.permute.xlu0 %805  ;;  %v3923_v36 = vld [vmem:[#allocation2 + $0xdd] sm:$0xff] }
 0x35f   : > { %11760 = vmatpush3.bf16.msra.mxu1 %v13298_v60  ;;  %11006 = vmatprep.mubr.msk.f32.mxu1 %vm578_vm1, %v3902_v37  ;;  %v13481_v56 = vpop.permute.xlu1 %4901  ;;  %921 = vst.msk [vmem:[#allocation3 + $0x58] sm:$0xff] %vm909_vm4, %v806_v57  ;;  %v3908_v60 = vld [vmem:[#allocation2 + $0x65] sm:$0xff]  ;;  %v3927_v57 = vld [vmem:[#allocation2 + $0xfd] sm:$0xff] }
 0x360   : > { %11762 = vmatprep.subr.bf16.mxu1 %v11761_v32  ;;  %v3924_v37 = vld [vmem:[#allocation2 + $0xe5] sm:$0xff] }
 0x362   : > { %11007 = vmatmul.mubr.msk.f32.gmra.mrb[2].mxu1 %vm578_vm1, %v3903_v44  ;;  %v808_v35 = vpop.permute.xlu0 %807 }
 0x363   : > { %11009 = vmatprep.mubr.msk.f32.mxu1 %vm578_vm1, %v3904_v45  ;;  %11764 = vmatpush3.bf16.msra.mxu1 %v11761_v32  ;;  %v13488_v34 = vpop.permute.xlu1 %4906  ;;  %922 = vst.msk [vmem:[#allocation3 + $0x60] sm:$0xff] %vm909_vm4, %v808_v35  ;;  %v3925_v45 = vld [vmem:[#allocation2 + $0xed] sm:$0xff]  ;;  %v3930_v35 = vld [vmem:[#allocation2 + $0x115] sm:$0xff] }
 0x364   : > { %11837 = vmatprep.subr.bf16.mxu1 %v13503_v46 }
 0x366   : > { %11010 = vmatmul.mubr.msk.f32.gmra.mrb[4].mxu1 %vm578_vm1, %v3905_v52  ;;  %v810_v59 = vpop.permute.xlu0 %809 }
 0x367   : > { %11012 = vmatprep.mubr.msk.f32.mxu1 %vm578_vm1, %v3906_v53  ;;  %v13513_v55 = vpop.permute.xlu1 %4911  ;;  %923 = vst.msk [vmem:[#allocation3 + $0x68] sm:$0xff] %vm909_vm4, %v810_v59  ;;  %v3933_v59 = vld [vmem:[#allocation2 + $0x12d] sm:$0xff] }
 0x36a   : > { %11013 = vmatmul.mubr.msk.f32.gmra.mrb[6].mxu1 %vm578_vm1, %v3907_v29  ;;  %v812_v2 = vpop.permute.xlu0 %811  ;;  %v3928_v29 = vld [vmem:[#allocation2 + $0x105] sm:$0xff] }
 0x36b   : > { %11015 = vmatprep.mubr.msk.f32.mxu1 %vm578_vm1, %v3908_v60  ;;  %v13522_v0 = vpop.permute.xlu1 %4916  ;;  %924 = vst.msk [vmem:[#allocation3 + $0x70] sm:$0xff] %vm909_vm4, %v812_v2 }
 0x36e   : > { %11016 = vmatmul.mubr.msk.f32.gmra.mrb[8].mxu1 %vm578_vm1, %v3909_v50  ;;  %v814_v8 = vpop.permute.xlu0 %813 }
 0x36f   : > { %11018 = vmatprep.mubr.msk.f32.mxu1 %vm578_vm1, %v3910_v54  ;;  %v13528_v6 = vpop.permute.xlu1 %4921  ;;  %925 = vst.msk [vmem:[#allocation3 + $0x78] sm:$0xff] %vm909_vm4, %v814_v8  ;;  %v3934_v54 = vld [vmem:[#allocation2 + $0x135] sm:$0xff] }
 0x372   : > { %11019 = vmatmul.mubr.msk.f32.gmra.mrb[10].mxu1 %vm578_vm1, %v3911_v62  ;;  %v816_v13 = vpop.permute.xlu0 %815  ;;  %v3935_v62 = vld [vmem:[#allocation2 + $0x13d] sm:$0xff] }
 0x373   : > { %11021 = vmatprep.mubr.msk.f32.mxu1 %vm578_vm1, %v3912_v63  ;;  %v13533_v12 = vpop.permute.xlu1 %4926  ;;  %926 = vst.msk [vmem:[#allocation3 + $0x80] sm:$0xff] %vm909_vm4, %v816_v13 }
 0x376   : > { %11022 = vmatmul.mubr.msk.f32.gmra.mrb[12].mxu1 %vm578_vm1, %v3913_v4  ;;  %v818_v20 = vpop.permute.xlu0 %817  ;;  %v4330_v4 = vld [vmem:[#allocation2 + $0x26] sm:$0xff] }
 0x377   : > { %11024 = vmatprep.mubr.msk.f32.mxu1 %vm578_vm1, %v3914_v5  ;;  %v13538_v18 = vpop.permute.xlu1 %4931  ;;  %927 = vst.msk [vmem:[#allocation3 + $0x88] sm:$0xff] %vm909_vm4, %v818_v20  ;;  %v4334_v20 = vld [vmem:[#allocation2 + $0x46] sm:$0xff] }
 0x37a   : > { %11025 = vmatmul.mubr.msk.f32.gmra.mrb[14].mxu1 %vm578_vm1, %v3915_v9  ;;  %v820_v25 = vpop.permute.xlu0 %819  ;;  %v4331_v9 = vld [vmem:[#allocation2 + $0x2e] sm:$0xff] }
 0x37b   : > { %11027 = vmatprep.mubr.msk.f32.mxu1 %vm578_vm1, %v3916_v10  ;;  %v13543_v24 = vpop.permute.xlu1 %4936  ;;  %928 = vst.msk [vmem:[#allocation3 + $0x90] sm:$0xff] %vm909_vm4, %v820_v25  ;;  %v4332_v10 = vld [vmem:[#allocation2 + $0x36] sm:$0xff]  ;;  %v4335_v25 = vld [vmem:[#allocation2 + $0x4e] sm:$0xff] }
 0x37e   : > { %11028 = vmatmul.mubr.msk.f32.gmra.mrb[16].mxu1 %vm578_vm1, %v3917_v14  ;;  %v822_v32 = vpop.permute.xlu0 %821 }
 0x37f   : > { %11030 = vmatprep.mubr.msk.f32.mxu1 %vm578_vm1, %v3918_v16  ;;  %v13548_v30 = vpop.permute.xlu1 %4941  ;;  %929 = vst.msk [vmem:[#allocation3 + $0x98] sm:$0xff] %vm909_vm4, %v822_v32  ;;  %v4333_v16 = vld [vmem:[#allocation2 + $0x3e] sm:$0xff] }
 0x380   : > { %v4337_v32 = vld [vmem:[#allocation2 + $0x5e] sm:$0xff] }
 0x382   : > { %11031 = vmatmul.mubr.msk.f32.gmra.mrb[18].mxu1 %vm578_vm1, %v3919_v21  ;;  %v824_v44 = vpop.permute.xlu0 %823 }
 0x383   : > { %11033 = vmatprep.mubr.msk.f32.mxu1 %vm578_vm1, %v3920_v22  ;;  %v13553_v41 = vpop.permute.xlu1 %4946  ;;  %930 = vst.msk [vmem:[#allocation3 + $0xa0] sm:$0xff] %vm909_vm4, %v824_v44  ;;  %v4339_v44 = vld [vmem:[#allocation2 + $0x6e] sm:$0xff] }
 0x386   : > { %11034 = vmatmul.mubr.msk.f32.gmra.mrb[20].mxu1 %vm578_vm1, %v3921_v26  ;;  %v826_v53 = vpop.permute.xlu0 %825 }
 0x387   : > { %11036 = vmatprep.mubr.msk.f32.mxu1 %vm578_vm1, %v3922_v27  ;;  %v13558_v52 = vpop.permute.xlu1 %4951  ;;  %931 = vst.msk [vmem:[#allocation3 + $0xa8] sm:$0xff] %vm909_vm4, %v826_v53 }
 0x38a   : > { %11037 = vmatmul.mubr.msk.f32.gmra.mrb[22].mxu1 %vm578_vm1, %v3923_v36  ;;  %v828_v61 = vpop.permute.xlu0 %827  ;;  %v4338_v36 = vld [vmem:[#allocation2 + $0x66] sm:$0xff] }
 0x38b   : > { %11039 = vmatprep.mubr.msk.f32.mxu1 %vm578_vm1, %v3924_v37  ;;  %v13563_v60 = vpop.permute.xlu1 %4956  ;;  %932 = vst.msk [vmem:[#allocation3 + $0xb0] sm:$0xff] %vm909_vm4, %v828_v61 }
 0x38e   : > { %11040 = vmatmul.mubr.msk.f32.gmra.mrb[24].mxu1 %vm578_vm1, %v3925_v45  ;;  %v830_v39 = vpop.permute.xlu0 %829  ;;  %v4340_v45 = vld [vmem:[#allocation2 + $0x76] sm:$0xff] }
 0x38f   : > { %11042 = vmatprep.mubr.msk.f32.mxu1 %vm578_vm1, %v3926_v49  ;;  %v832_v38 = vpop.permute.xlu1 %831  ;;  %933 = vst.msk [vmem:[#allocation3 + $0xb8] sm:$0xff] %vm909_vm4, %v830_v39 }
 0x390   : > { %934 = vst.msk [vmem:[#allocation3 + $0xc0] sm:$0xff] %vm909_vm4, %v832_v38  ;;  %v4344_v38 = vld [vmem:[#allocation2 + $0x96] sm:$0xff] }
 0x392   : > { %11043 = vmatmul.mubr.msk.f32.gmra.mrb[26].mxu1 %vm578_vm1, %v3927_v57  ;;  %v834_v50 = vpop.permute.xlu0 %833  ;;  %v4341_v57 = vld [vmem:[#allocation2 + $0x7e] sm:$0xff] }
 0x393   : > { %11045 = vmatprep.mubr.msk.f32.mxu1 %vm578_vm1, %v3928_v29  ;;  %v836_v47 = vpop.permute.xlu1 %835  ;;  %935 = vst.msk [vmem:[#allocation3 + $0xc8] sm:$0xff] %vm909_vm4, %v834_v50  ;;  %v4342_v29 = vld [vmem:[#allocation2 + $0x86] sm:$0xff] }
 0x394   : > { %936 = vst.msk [vmem:[#allocation3 + $0xd0] sm:$0xff] %vm909_vm4, %v836_v47  ;;  %v4346_v47 = vld [vmem:[#allocation2 + $0xa6] sm:$0xff] }
 0x396   : > { %11046 = vmatmul.mubr.msk.f32.gmra.mrb[28].mxu1 %vm578_vm1, %v3929_v33 }
 0x397   : > { %11048 = vmatprep.mubr.msk.f32.mxu1 %vm578_vm1, %v3930_v35  ;;  %v4343_v35 = vld [vmem:[#allocation2 + $0x8e] sm:$0xff] }
 0x398   : > { %v13576_v63 = vpop.permute.xlu1 %4966 }
 0x39a   : > { %11049 = vmatmul.mubr.msk.f32.gmra.mrb[30].mxu1 %vm578_vm1, %v3931_v42 }
 0x39b   : > { %11051 = vmatprep.mubr.msk.f32.mxu1 %vm578_vm1, %v3932_v43  ;;  %v13578_v2 = vpop.permute.xlu0 %4961  ;;  %v4345_v43 = vld [vmem:[#allocation2 + $0x9e] sm:$0xff] }
 0x39c   : > { %v13582_v5 = vpop.permute.xlu1 %4976 }
 0x39e   : > { %11052 = vmatmul.mubr.msk.f32.gmra.mrb[32].mxu1 %vm578_vm1, %v3933_v59  ;;  %v4347_v59 = vld [vmem:[#allocation2 + $0xae] sm:$0xff] }
 0x39f   : > { %11054 = vmatprep.mubr.msk.f32.mxu1 %vm578_vm1, %v3934_v54  ;;  %v13584_v8 = vpop.permute.xlu0 %4971 }
 0x3a0   : > { %v13588_v13 = vpop.permute.xlu1 %4981 }
 0x3a2   : > { %11055 = vmatmul.mubr.msk.f32.gmra.mrb[34].mxu1 %vm578_vm1, %v3935_v62  ;;  %v4348_v62 = vld [vmem:[#allocation2 + $0xb6] sm:$0xff] }
 0x3a3   : > { %11065 = vmatprep.mubr.msk.f32.mxu1 %vm578_vm1, %v4330_v4  ;;  %v838_v14 = vpop.permute.xlu0 %837  ;;  %v4349_v4 = vld [vmem:[#allocation2 + $0xbe] sm:$0xff] }
 0x3a4   : > { %937 = vst.msk [vmem:[#allocation3 + $0xd8] sm:$0xff] %vm909_vm4, %v838_v14  ;;  %v13595_v21 = vpop.permute.xlu1 %4986  ;;  %v4352_v14 = vld [vmem:[#allocation2 + $0xd6] sm:$0xff] }
 0x3a6   : > { %11066 = vmatmul.mubr.msk.f32.vlgmr.msra.gmra.mrb[0].mxu1 %vm578_vm1, %v4331_v9  ;;  %v4350_v9 = vld [vmem:[#allocation2 + $0xc6] sm:$0xff] }
 0x3a7   : > { %11068 = vmatprep.mubr.msk.f32.mxu1 %vm578_vm1, %v4332_v10  ;;  %11839 = vmatpush3.bf16.msra.mxu1 %v13503_v46  ;;  %v840_v22 = vpop.permute.xlu0 %839  ;;  %v4336_v46 = vld [vmem:[#allocation2 + $0x56] sm:$0xff]  ;;  %v4351_v10 = vld [vmem:[#allocation2 + $0xce] sm:$0xff] }
 0x3a8   : > { %11838 = vmatprep.subr.bf16.mxu1 %v13508_v51  ;;  %938 = vst.msk [vmem:[#allocation3 + $0xe0] sm:$0xff] %vm909_vm4, %v840_v22  ;;  %v13601_v26 = vpop.permute.xlu1 %4991  ;;  %v4355_v22 = vld [vmem:[#allocation2 + $0xee] sm:$0xff] }
 0x3aa   : > { %11069 = vmatmul.mubr.msk.f32.gmra.mrb[2].mxu1 %vm578_vm1, %v4333_v16  ;;  %v4353_v16 = vld [vmem:[#allocation2 + $0xde] sm:$0xff] }
 0x3ab   : > { %11071 = vmatprep.mubr.msk.f32.mxu1 %vm578_vm1, %v4334_v20  ;;  %11840 = vmatpush3.bf16.msra.mxu1 %v13508_v51  ;;  %v842_v27 = vpop.permute.xlu0 %841  ;;  %v4354_v20 = vld [vmem:[#allocation2 + $0xe6] sm:$0xff] }
 0x3ac   : > { %939 = vst.msk [vmem:[#allocation3 + $0xe8] sm:$0xff] %vm909_vm4, %v842_v27  ;;  %v13606_v51 = vpop.permute.xlu1 %4996  ;;  %v4358_v27 = vld [vmem:[#allocation2 + $0x106] sm:$0xff] }
 0x3ae   : > { %11072 = vmatmul.mubr.msk.f32.gmra.mrb[4].mxu1 %vm578_vm1, %v4335_v25  ;;  %v4356_v25 = vld [vmem:[#allocation2 + $0xf6] sm:$0xff] }
 0x3af   : > { %11074 = vmatprep.mubr.msk.f32.mxu1 %vm578_vm1, %v4336_v46  ;;  %v844_v37 = vpop.permute.xlu0 %843  ;;  %v4357_v46 = vld [vmem:[#allocation2 + $0xfe] sm:$0xff] }
 0x3b0   : > { %940 = vst.msk [vmem:[#allocation3 + $0xf0] sm:$0xff] %vm909_vm4, %v844_v37  ;;  %v13611_v49 = vpop.permute.xlu1 %5001  ;;  %v4361_v37 = vld [vmem:[#allocation2 + $0x11e] sm:$0xff] }
 0x3b2   : > { %11075 = vmatmul.mubr.msk.f32.gmra.mrb[6].mxu1 %vm578_vm1, %v4337_v32  ;;  %v4359_v32 = vld [vmem:[#allocation2 + $0x10e] sm:$0xff] }
 0x3b3   : > { %11077 = vmatprep.mubr.msk.f32.mxu1 %vm578_vm1, %v4338_v36  ;;  %v846_v53 = vpop.permute.xlu0 %845  ;;  %v4360_v36 = vld [vmem:[#allocation2 + $0x116] sm:$0xff] }
 0x3b4   : > { %941 = vst.msk [vmem:[#allocation3 + $0xf8] sm:$0xff] %vm909_vm4, %v846_v53  ;;  %v13616_v61 = vpop.permute.xlu1 %5006  ;;  %v4363_v53 = vld [vmem:[#allocation2 + $0x12e] sm:$0xff] }
 0x3b6   : > { %11078 = vmatmul.mubr.msk.f32.gmra.mrb[8].mxu1 %vm578_vm1, %v4339_v44  ;;  %v4362_v44 = vld [vmem:[#allocation2 + $0x126] sm:$0xff] }
 0x3b7   : > { %11080 = vmatprep.mubr.msk.f32.mxu1 %vm578_vm1, %v4340_v45  ;;  %v848_v33 = vpop.permute.xlu0 %847  ;;  %v4364_v45 = vld [vmem:[#allocation2 + $0x136] sm:$0xff] }
 0x3b8   : > { %942 = vst.msk [vmem:[#allocation3 + $0x100] sm:$0xff] %vm909_vm4, %v848_v33  ;;  %v852_v39 = vpop.permute.xlu1 %851  ;;  %v5127_v33 = vld [vmem:[%s14515_s6] sm:$0xff] }
 0x3b9   : > { %944 = vst.msk [vmem:[#allocation3 + $0x110] sm:$0xff] %vm909_vm4, %v852_v39  ;;  %v5132_v39 = vld [vmem:[#allocation3 + $0x9] sm:$0xff] }
 0x3ba   : > { %11081 = vmatmul.mubr.msk.f32.gmra.mrb[10].mxu1 %vm578_vm1, %v4341_v57  ;;  %v4365_v57 = vld [vmem:[#allocation2 + $0x13e] sm:$0xff] }
 0x3bb   : > { %11083 = vmatprep.mubr.msk.f32.mxu1 %vm578_vm1, %v4342_v29  ;;  %v850_v42 = vpop.permute.xlu0 %849  ;;  %v5131_v29 = vld [vmem:[#allocation3 + $0x1] sm:$0xff] }
 0x3bc   : > { %943 = vst.msk [vmem:[#allocation3 + $0x108] sm:$0xff] %vm909_vm4, %v850_v42  ;;  %v856_v50 = vpop.permute.xlu1 %855  ;;  %11127 = vmatprep.mubr.msk.f32.mxu0 %vm578_vm1, %v5131_v29  ;;  %v5129_v42 = vld [vmem:[%s14515_s6 + $0x10] sm:$0xff] }
 0x3bd   : > { %946 = vst.msk [vmem:[#allocation3 + $0x120] sm:$0xff] %vm909_vm4, %v856_v50  ;;  %11128 = vmatmul.mubr.msk.f32.vlgmr.msra.gmra.mrb[16].mxu0 %vm578_vm1, %v5132_v39 }
 0x3be   : > { %11084 = vmatmul.mubr.msk.f32.gmra.mrb[12].mxu1 %vm578_vm1, %v4343_v35  ;;  %v5128_v35 = vld [vmem:[%s14515_s6 + $0x8] sm:$0xff] }
 0x3bf   : > { %11086 = vmatprep.mubr.msk.f32.mxu1 %vm578_vm1, %v4344_v38  ;;  %v854_v54 = vpop.permute.xlu0 %853  ;;  %v11773_v38 = vpack.c.bf16 %v5128_v35, %v5127_v33 }
 0x3c0   : > { %945 = vst.msk [vmem:[#allocation3 + $0x118] sm:$0xff] %vm909_vm4, %v854_v54  ;;  %v9493_v54 = vld [vmem:[%s14515_s6 + $0x40] sm:$0xff] }
 0x3c1   : > { %11774 = vmatprep.subr.bf16.mxu0 %v11773_v38 }
 0x3c2   : > { %11087 = vmatmul.mubr.msk.f32.gmra.mrb[14].mxu1 %vm578_vm1, %v4345_v43  ;;  %11776 = vmatpush3.bf16.msra.mxu0 %v11773_v38  ;;  %v5130_v43 = vld [vmem:[%s14515_s6 + $0x18] sm:$0xff] }
 0x3c3   : > { %11089 = vmatprep.mubr.msk.f32.mxu1 %vm578_vm1, %v4346_v47  ;;  %v11777_v47 = vpack.c.bf16 %v5130_v43, %v5129_v42  ;;  %v13660_v50 = vpop.permute.xlu0 %5011 }
 0x3c5   : > { %11778 = vmatprep.subr.bf16.mxu0 %v11777_v47 }
 0x3c6   : > { %11090 = vmatmul.mubr.msk.f32.gmra.mrb[16].mxu1 %vm578_vm1, %v4347_v59  ;;  %11780 = vmatpush3.bf16.msra.mxu0 %v11777_v47  ;;  %v9494_v59 = vld [vmem:[%s14515_s6 + $0x48] sm:$0xff] }
 0x3c7   : > { %11092 = vmatprep.mubr.msk.f32.mxu1 %vm578_vm1, %v4348_v62  ;;  %v13668_v62 = vpack.c.bf16 %v9494_v59, %v9493_v54 }
 0x3c9   : > { %11782 = vmatprep.subr.bf16.mxu0 %v13668_v62 }
 0x3ca   : > { %11093 = vmatmul.mubr.msk.f32.gmra.mrb[18].mxu1 %vm578_vm1, %v4349_v4  ;;  %v13671_v4 = vpop.permute.xlu1 %5016 }
 0x3cb   : > { %11095 = vmatprep.mubr.msk.f32.mxu1 %vm578_vm1, %v4350_v9  ;;  %v858_v9 = vpop.permute.xlu0 %857 }
 0x3cc   : > { %947 = vst.msk [vmem:[#allocation3 + $0x128] sm:$0xff] %vm909_vm4, %v858_v9 }
 0x3ce   : > { %11096 = vmatmul.mubr.msk.f32.gmra.mrb[20].mxu1 %vm578_vm1, %v4351_v10  ;;  %v860_v10 = vpop.permute.xlu1 %859 }
 0x3cf   : > { %11098 = vmatprep.mubr.msk.f32.mxu1 %vm578_vm1, %v4352_v14  ;;  %v862_v14 = vpop.permute.xlu0 %861  ;;  %948 = vst.msk [vmem:[#allocation3 + $0x130] sm:$0xff] %vm909_vm4, %v860_v10 }
 0x3d0   : > { %949 = vst.msk [vmem:[#allocation3 + $0x138] sm:$0xff] %vm909_vm4, %v862_v14 }
 0x3d1   : > { %958 = vst.msk [vmem:[#allocation3 + $0x133] sm:$0xff] %vm953_vm5, %v12441_v31 }
 0x3d2   : > { %11099 = vmatmul.mubr.msk.f32.gmra.mrb[22].mxu1 %vm578_vm1, %v4353_v16  ;;  %v13681_v16 = vld [vmem:[%s14514_s5] ss:$0 sm:$0xff] }
 0x3d3   : > { %11101 = vmatprep.mubr.msk.f32.mxu1 %vm578_vm1, %v4354_v20 }
 0x3d6   : > { %11102 = vmatmul.mubr.msk.f32.gmra.mrb[24].mxu1 %vm578_vm1, %v4355_v22 }
 0x3d7   : > { %11104 = vmatprep.mubr.msk.f32.mxu1 %vm578_vm1, %v4356_v25 }
 0x3da   : > { %11105 = vmatmul.mubr.msk.f32.gmra.mrb[26].mxu1 %vm578_vm1, %v4357_v46 }
 0x3db   : > { %11107 = vmatprep.mubr.msk.f32.mxu1 %vm578_vm1, %v4358_v27 }
 0x3de   : > { %11108 = vmatmul.mubr.msk.f32.gmra.mrb[28].mxu1 %vm578_vm1, %v4359_v32 }
 0x3df   : > { %11110 = vmatprep.mubr.msk.f32.mxu1 %vm578_vm1, %v4360_v36 }
 0x3e2   : > { %11111 = vmatmul.mubr.msk.f32.gmra.mrb[30].mxu1 %vm578_vm1, %v4361_v37 }
 0x3e3   : > { %11113 = vmatprep.mubr.msk.f32.mxu1 %vm578_vm1, %v4362_v44 }
 0x3e6   : > { %11114 = vmatmul.mubr.msk.f32.gmra.mrb[32].mxu1 %vm578_vm1, %v4363_v53 }
 0x3e7   : > { %11116 = vmatprep.mubr.msk.f32.mxu1 %vm578_vm1, %v4364_v45 }
 0x3ea   : > { %11117 = vmatmul.mubr.msk.f32.gmra.mrb[34].mxu1 %vm578_vm1, %v4365_v57 }
 0x479   : > { %v11067_v20 = vpop.f32.mrb[0].mxu1 }
 0x47a   : > { %v4768_v22 = vadd.f32 %v11067_v20, %v13681_v16  ;;  %v4545_v25 = vpop.f32.mrb[1].mxu1 }
 0x47b   : > { %v4767_v46 = vadd.f32 %v13681_v16, %v4545_v25 }
 0x47c   : > { %v5020_v27 = vmul.f32 %v13369_v58, %v4768_v22 }
 0x47d   : > { %v5019_v32 = vmul.f32 %v13386_v1, %v4767_v46  ;;  %v11070_v36 = vpop.f32.mrb[2].mxu1 }
 0x47e   : > { %5056 = vst.msk [vmem:[#allocation3 + $0x1b] sm:$0xff] %vm953_vm5, %v5020_v27  ;;  %v4770_v37 = vadd.f32 %v11070_v36, %v13681_v16  ;;  %v4555_v44 = vpop.f32.mrb[3].mxu1 }
 0x47f   : > { %5055 = vst.msk [vmem:[#allocation3 + $0x13] sm:$0xff] %vm953_vm5, %v5019_v32  ;;  %v4769_v45 = vadd.f32 %v13681_v16, %v4555_v44 }
 0x480   : > { %v5022_v53 = vmul.f32 %v13407_v7, %v4770_v37 }
 0x481   : > { %v5021_v57 = vmul.f32 %v13394_v3, %v4769_v45  ;;  %v11073_v29 = vpop.f32.mrb[4].mxu1 }
 0x482   : > { %5058 = vst.msk [vmem:[#allocation3 + $0x2b] sm:$0xff] %vm953_vm5, %v5022_v53  ;;  %v4772_v58 = vadd.f32 %v11073_v29, %v13681_v16  ;;  %v4565_v1 = vpop.f32.mrb[5].mxu1 }
 0x483   : > { %5057 = vst.msk [vmem:[#allocation3 + $0x23] sm:$0xff] %vm953_vm5, %v5021_v57  ;;  %v4771_v33 = vadd.f32 %v13681_v16, %v4565_v1 }
 0x484   : > { %v5024_v35 = vmul.f32 %v13432_v15, %v4772_v58 }
 0x485   : > { %v5023_v38 = vmul.f32 %v13419_v11, %v4771_v33  ;;  %v11076_v39 = vpop.f32.mrb[6].mxu1 }
 0x486   : > { %5060 = vst.msk [vmem:[#allocation3 + $0x3b] sm:$0xff] %vm953_vm5, %v5024_v35  ;;  %v4774_v7 = vadd.f32 %v11076_v39, %v13681_v16  ;;  %v4575_v3 = vpop.f32.mrb[7].mxu1  ;;  %v5133_v42 = vld [vmem:[#allocation3 + $0x11] sm:$0xff]  ;;  %v5134_v43 = vld [vmem:[#allocation3 + $0x19] sm:$0xff] }
 0x487   : > { %5059 = vst.msk [vmem:[#allocation3 + $0x33] sm:$0xff] %vm953_vm5, %v5023_v38  ;;  %v4773_v47 = vadd.f32 %v13681_v16, %v4575_v3  ;;  %11130 = vmatprep.mubr.msk.f32.mxu0 %vm578_vm1, %v5133_v42 }
 0x488   : > { %v5026_v54 = vmul.f32 %v13448_v19, %v4774_v7  ;;  %11131 = vmatmul.mubr.msk.f32.gmra.mrb[18].mxu0 %vm578_vm1, %v5134_v43 }
 0x489   : > { %v5025_v11 = vmul.f32 %v13441_v17, %v4773_v47  ;;  %v11079_v15 = vpop.f32.mrb[8].mxu1 }
 0x48a   : > { %5062 = vst.msk [vmem:[#allocation3 + $0x4b] sm:$0xff] %vm953_vm5, %v5026_v54  ;;  %v4776_v59 = vadd.f32 %v11079_v15, %v13681_v16  ;;  %v4585_v9 = vpop.f32.mrb[9].mxu1  ;;  %v5135_v10 = vld [vmem:[#allocation3 + $0x21] sm:$0xff]  ;;  %v5136_v14 = vld [vmem:[#allocation3 + $0x29] sm:$0xff] }
 0x48b   : > { %5061 = vst.msk [vmem:[#allocation3 + $0x43] sm:$0xff] %vm953_vm5, %v5025_v11  ;;  %v4775_v20 = vadd.f32 %v13681_v16, %v4585_v9  ;;  %11133 = vmatprep.mubr.msk.f32.mxu0 %vm578_vm1, %v5135_v10 }
 0x48c   : > { %v5028_v19 = vmul.f32 %v13465_v28, %v4776_v59  ;;  %11134 = vmatmul.mubr.msk.f32.gmra.mrb[20].mxu0 %vm578_vm1, %v5136_v14 }
 0x48d   : > { %v5027_v17 = vmul.f32 %v13454_v23, %v4775_v20  ;;  %v11082_v22 = vpop.f32.mrb[10].mxu1 }
 0x48e   : > { %5064 = vst.msk [vmem:[#allocation3 + $0x5b] sm:$0xff] %vm953_vm5, %v5028_v19  ;;  %v4778_v25 = vadd.f32 %v11082_v22, %v13681_v16  ;;  %v4595_v46 = vpop.f32.mrb[11].mxu1  ;;  %v5137_v27 = vld [vmem:[#allocation3 + $0x31] sm:$0xff]  ;;  %v5138_v32 = vld [vmem:[#allocation3 + $0x39] sm:$0xff] }
 0x48f   : > { %5063 = vst.msk [vmem:[#allocation3 + $0x53] sm:$0xff] %vm953_vm5, %v5027_v17  ;;  %v4777_v36 = vadd.f32 %v13681_v16, %v4595_v46  ;;  %11136 = vmatprep.mubr.msk.f32.mxu0 %vm578_vm1, %v5137_v27 }
 0x490   : > { %v5030_v28 = vmul.f32 %v13476_v48, %v4778_v25  ;;  %11137 = vmatmul.mubr.msk.f32.gmra.mrb[22].mxu0 %vm578_vm1, %v5138_v32 }
 0x491   : > { %v5029_v23 = vmul.f32 %v13471_v40, %v4777_v36  ;;  %v11085_v37 = vpop.f32.mrb[12].mxu1 }
 0x492   : > { %5066 = vst.msk [vmem:[#allocation3 + $0x6b] sm:$0xff] %vm953_vm5, %v5030_v28  ;;  %v4780_v44 = vadd.f32 %v11085_v37, %v13681_v16  ;;  %v4605_v45 = vpop.f32.mrb[13].mxu1  ;;  %v5139_v53 = vld [vmem:[#allocation3 + $0x41] sm:$0xff]  ;;  %v5140_v57 = vld [vmem:[#allocation3 + $0x49] sm:$0xff] }
 0x493   : > { %5065 = vst.msk [vmem:[#allocation3 + $0x63] sm:$0xff] %vm953_vm5, %v5029_v23  ;;  %v4779_v29 = vadd.f32 %v13681_v16, %v4605_v45  ;;  %11139 = vmatprep.mubr.msk.f32.mxu0 %vm578_vm1, %v5139_v53 }
 0x494   : > { %v5032_v48 = vmul.f32 %v13488_v34, %v4780_v44  ;;  %11140 = vmatmul.mubr.msk.f32.gmra.mrb[24].mxu0 %vm578_vm1, %v5140_v57 }
 0x495   : > { %v5031_v40 = vmul.f32 %v13481_v56, %v4779_v29  ;;  %v11088_v58 = vpop.f32.mrb[14].mxu1 }
 0x496   : > { %5068 = vst.msk [vmem:[#allocation3 + $0x7b] sm:$0xff] %vm953_vm5, %v5032_v48  ;;  %v4782_v1 = vadd.f32 %v11088_v58, %v13681_v16  ;;  %v4615_v33 = vpop.f32.mrb[15].mxu1  ;;  %v5141_v35 = vld [vmem:[#allocation3 + $0x51] sm:$0xff]  ;;  %v5142_v38 = vld [vmem:[#allocation3 + $0x59] sm:$0xff] }
 0x497   : > { %5067 = vst.msk [vmem:[#allocation3 + $0x73] sm:$0xff] %vm953_vm5, %v5031_v40  ;;  %v4781_v39 = vadd.f32 %v13681_v16, %v4615_v33  ;;  %11142 = vmatprep.mubr.msk.f32.mxu0 %vm578_vm1, %v5141_v35 }
 0x498   : > { %v5034_v34 = vmul.f32 %v13522_v0, %v4782_v1  ;;  %11143 = vmatmul.mubr.msk.f32.gmra.mrb[26].mxu0 %vm578_vm1, %v5142_v38 }
 0x499   : > { %v5033_v56 = vmul.f32 %v13513_v55, %v4781_v39  ;;  %v11091_v7 = vpop.f32.mrb[16].mxu1 }
 0x49a   : > { %5070 = vst.msk [vmem:[#allocation3 + $0x8b] sm:$0xff] %vm953_vm5, %v5034_v34  ;;  %v4784_v3 = vadd.f32 %v11091_v7, %v13681_v16  ;;  %v4625_v42 = vpop.f32.mrb[17].mxu1  ;;  %v5143_v43 = vld [vmem:[#allocation3 + $0x61] sm:$0xff]  ;;  %v5144_v47 = vld [vmem:[#allocation3 + $0x69] sm:$0xff] }
 0x49b   : > { %5069 = vst.msk [vmem:[#allocation3 + $0x83] sm:$0xff] %vm953_vm5, %v5033_v56  ;;  %v4783_v54 = vadd.f32 %v13681_v16, %v4625_v42  ;;  %11145 = vmatprep.mubr.msk.f32.mxu0 %vm578_vm1, %v5143_v43  ;;  %v5091_v42 = vld [vmem:[#allocation3] sm:$0xff] }
 0x49c   : > { %v5036_v0 = vmul.f32 %v13533_v12, %v4784_v3  ;;  %11146 = vmatmul.mubr.msk.f32.gmra.mrb[28].mxu0 %vm578_vm1, %v5144_v47 }
 0x49d   : > { %v5035_v55 = vmul.f32 %v13528_v6, %v4783_v54  ;;  %v11094_v11 = vpop.f32.mrb[18].mxu1 }
 0x49e   : > { %5072 = vst.msk [vmem:[#allocation3 + $0x9b] sm:$0xff] %vm953_vm5, %v5036_v0  ;;  %v4786_v15 = vadd.f32 %v11094_v11, %v13681_v16  ;;  %v4635_v59 = vpop.f32.mrb[19].mxu1  ;;  %v5145_v9 = vld [vmem:[#allocation3 + $0x71] sm:$0xff]  ;;  %v5146_v10 = vld [vmem:[#allocation3 + $0x79] sm:$0xff] }
 0x49f   : > { %5071 = vst.msk [vmem:[#allocation3 + $0x93] sm:$0xff] %vm953_vm5, %v5035_v55  ;;  %v4785_v14 = vadd.f32 %v13681_v16, %v4635_v59  ;;  %11148 = vmatprep.mubr.msk.f32.mxu0 %vm578_vm1, %v5145_v9  ;;  %v5092_v55 = vld [vmem:[#allocation3 + $0x8] sm:$0xff] }
 0x4a0   : > { %v5038_v12 = vmul.f32 %v13543_v24, %v4786_v15  ;;  %11149 = vmatmul.mubr.msk.f32.gmra.mrb[30].mxu0 %vm578_vm1, %v5146_v10 }
 0x4a1   : > { %v5037_v6 = vmul.f32 %v13538_v18, %v4785_v14  ;;  %v11097_v20 = vpop.f32.mrb[20].mxu1  ;;  %v9534_v14 = vld [vmem:[%s14515_s6 + $0x68] sm:$0xff] }
 0x4a2   : > { %5074 = vst.msk [vmem:[#allocation3 + $0xab] sm:$0xff] %vm953_vm5, %v5038_v12  ;;  %v4788_v19 = vadd.f32 %v11097_v20, %v13681_v16  ;;  %v4645_v17 = vpop.f32.mrb[21].mxu1  ;;  %v5147_v22 = vld [vmem:[#allocation3 + $0x81] sm:$0xff]  ;;  %v5148_v25 = vld [vmem:[#allocation3 + $0x89] sm:$0xff] }
 0x4a3   : > { %5073 = vst.msk [vmem:[#allocation3 + $0xa3] sm:$0xff] %vm953_vm5, %v5037_v6  ;;  %v4787_v46 = vadd.f32 %v13681_v16, %v4645_v17  ;;  %11151 = vmatprep.mubr.msk.f32.mxu0 %vm578_vm1, %v5147_v22  ;;  %v5093_v6 = vld [vmem:[#allocation3 + $0x10] sm:$0xff] }
 0x4a4   : > { %v5040_v24 = vmul.f32 %v13553_v41, %v4788_v19  ;;  %11152 = vmatmul.mubr.msk.f32.gmra.mrb[32].mxu0 %vm578_vm1, %v5148_v25 }
 0x4a5   : > { %v5039_v18 = vmul.f32 %v13548_v30, %v4787_v46  ;;  %v11100_v27 = vpop.f32.mrb[22].mxu1 }
 0x4a6   : > { %5076 = vst.msk [vmem:[#allocation3 + $0xbb] sm:$0xff] %vm953_vm5, %v5040_v24  ;;  %v4790_v32 = vadd.f32 %v11100_v27, %v13681_v16  ;;  %v4655_v36 = vpop.f32.mrb[23].mxu1  ;;  %v5149_v28 = vld [vmem:[#allocation3 + $0x91] sm:$0xff]  ;;  %v5150_v23 = vld [vmem:[#allocation3 + $0x99] sm:$0xff] }
 0x4a7   : > { %5075 = vst.msk [vmem:[#allocation3 + $0xb3] sm:$0xff] %vm953_vm5, %v5039_v18  ;;  %v4789_v37 = vadd.f32 %v13681_v16, %v4655_v36  ;;  %11154 = vmatprep.mubr.msk.f32.mxu0 %vm578_vm1, %v5149_v28  ;;  %v5095_v18 = vld [vmem:[#allocation3 + $0x20] sm:$0xff] }
 0x4a8   : > { %v5042_v41 = vmul.f32 %v13563_v60, %v4790_v32  ;;  %11155 = vmatmul.mubr.msk.f32.gmra.mrb[34].mxu0 %vm578_vm1, %v5150_v23 }
 0x4a9   : > { %v5041_v30 = vmul.f32 %v13558_v52, %v4789_v37  ;;  %v11103_v44 = vpop.f32.mrb[24].mxu1 }
 0x4aa   : > { %5078 = vst.msk [vmem:[#allocation3 + $0xcb] sm:$0xff] %vm953_vm5, %v5042_v41  ;;  %v4792_v45 = vadd.f32 %v11103_v44, %v13681_v16  ;;  %v4665_v53 = vpop.f32.mrb[25].mxu1  ;;  %v5151_v57 = vld [vmem:[#allocation3 + $0xa1] sm:$0xff]  ;;  %v5152_v29 = vld [vmem:[#allocation3 + $0xa9] sm:$0xff] }
 0x4ab   : > { %5077 = vst.msk [vmem:[#allocation3 + $0xc3] sm:$0xff] %vm953_vm5, %v5041_v30  ;;  %v4791_v48 = vadd.f32 %v13681_v16, %v4665_v53  ;;  %11157 = vmatprep.mubr.msk.f32.mxu0 %vm578_vm1, %v5151_v57  ;;  %v5097_v30 = vld [vmem:[#allocation3 + $0x30] sm:$0xff] }
 0x4ac   : > { %v5044_v60 = vmul.f32 %v13576_v63, %v4792_v45  ;;  %11158 = vmatmul.mubr.msk.f32.gmra.mrb[36].mxu0 %vm578_vm1, %v5152_v29  ;;  %v5100_v29 = vld [vmem:[#allocation3 + $0x48] sm:$0xff] }
 0x4ad   : > { %v5043_v52 = vmul.f32 %v13578_v2, %v4791_v48  ;;  %v11106_v40 = vpop.f32.mrb[26].mxu1  ;;  %v5101_v48 = vld [vmem:[#allocation3 + $0x50] sm:$0xff] }
 0x4ae   : > { %5080 = vst.msk [vmem:[#allocation3 + $0xdb] sm:$0xff] %vm953_vm5, %v5044_v60  ;;  %v4794_v58 = vadd.f32 %v11106_v40, %v13681_v16  ;;  %v4675_v1 = vpop.f32.mrb[27].mxu1  ;;  %v5153_v33 = vld [vmem:[#allocation3 + $0xb1] sm:$0xff]  ;;  %v5154_v35 = vld [vmem:[#allocation3 + $0xb9] sm:$0xff]  ;;  %v5104_v40 = vld [vmem:[#allocation3 + $0x68] sm:$0xff] }
 0x4af   : > { %5079 = vst.msk [vmem:[#allocation3 + $0xd3] sm:$0xff] %vm953_vm5, %v5043_v52  ;;  %v4793_v38 = vadd.f32 %v13681_v16, %v4675_v1  ;;  %11160 = vmatprep.mubr.msk.f32.mxu0 %vm578_vm1, %v5153_v33  ;;  %v5102_v60 = vld [vmem:[#allocation3 + $0x58] sm:$0xff]  ;;  %v5103_v52 = vld [vmem:[#allocation3 + $0x60] sm:$0xff] }
 0x4b0   : > { %v5046_v63 = vmul.f32 %v13582_v5, %v4794_v58  ;;  %11161 = vmatmul.mubr.msk.f32.gmra.mrb[38].mxu0 %vm578_vm1, %v5154_v35  ;;  %v9495_v5 = vld [vmem:[%s14515_s6 + $0x50] sm:$0xff]  ;;  %v5105_v58 = vld [vmem:[#allocation3 + $0x70] sm:$0xff]  ;;  %v5106_v1 = vld [vmem:[#allocation3 + $0x78] sm:$0xff] }
 0x4b1   : > { %v5045_v2 = vmul.f32 %v13584_v8, %v4793_v38  ;;  %v11109_v39 = vpop.f32.mrb[28].mxu1  ;;  %v9496_v8 = vld [vmem:[%s14515_s6 + $0x58] sm:$0xff]  ;;  %v5107_v33 = vld [vmem:[#allocation3 + $0x80] sm:$0xff]  ;;  %v5109_v38 = vld [vmem:[#allocation3 + $0x90] sm:$0xff] }
 0x4b2   : > { %5082 = vst.msk [vmem:[#allocation3 + $0xeb] sm:$0xff] %vm953_vm5, %v5046_v63  ;;  %v4796_v34 = vadd.f32 %v11109_v39, %v13681_v16  ;;  %v4685_v56 = vpop.f32.mrb[29].mxu1  ;;  %v5155_v7 = vld [vmem:[#allocation3 + $0xc1] sm:$0xff]  ;;  %v5156_v3 = vld [vmem:[#allocation3 + $0xc9] sm:$0xff]  ;;  %v11785_v10 = vpack.c.bf16 %v9496_v8, %v9495_v5  ;;  %v5110_v63 = vld [vmem:[#allocation3 + $0x98] sm:$0xff] }
 0x4b3   : > { %5081 = vst.msk [vmem:[#allocation3 + $0xe3] sm:$0xff] %vm953_vm5, %v5045_v2  ;;  %v4795_v43 = vadd.f32 %v13681_v16, %v4685_v56  ;;  %11163 = vmatprep.mubr.msk.f32.mxu0 %vm578_vm1, %v5155_v7  ;;  %v5108_v35 = vld [vmem:[#allocation3 + $0x88] sm:$0xff]  ;;  %v5111_v2 = vld [vmem:[#allocation3 + $0xa0] sm:$0xff]  ;;  %v5114_v56 = vld [vmem:[#allocation3 + $0xb8] sm:$0xff] }
 0x4b4   : > { %v5048_v47 = vmul.f32 %v13595_v21, %v4796_v34  ;;  %11164 = vmatmul.mubr.msk.f32.gmra.mrb[40].mxu0 %vm578_vm1, %v5156_v3  ;;  %v5112_v39 = vld [vmem:[#allocation3 + $0xa8] sm:$0xff]  ;;  %v5113_v34 = vld [vmem:[#allocation3 + $0xb0] sm:$0xff]  ;;  %v5115_v7 = vld [vmem:[#allocation3 + $0xc0] sm:$0xff] }
 0x4b5   : > { %v5047_v54 = vmul.f32 %v13588_v13, %v4795_v43  ;;  %v11112_v0 = vpop.f32.mrb[30].mxu1  ;;  %11189 = vmatprep.mubr.msk.f32.mxu0 %vm578_vm1, %v5091_v42  ;;  %v9533_v13 = vld [vmem:[%s14515_s6 + $0x60] sm:$0xff]  ;;  %v5116_v3 = vld [vmem:[#allocation3 + $0xc8] sm:$0xff] }
 0x4b6   : > { %5084 = vst.msk [vmem:[#allocation3 + $0xfb] sm:$0xff] %vm953_vm5, %v5048_v47  ;;  %v4798_v11 = vadd.f32 %v11112_v0, %v13681_v16  ;;  %v4695_v15 = vpop.f32.mrb[31].mxu1  ;;  %v5157_v59 = vld [vmem:[#allocation3 + $0xd1] sm:$0xff]  ;;  %v5158_v9 = vld [vmem:[#allocation3 + $0xd9] sm:$0xff] }
 0x4b7   : > { %5083 = vst.msk [vmem:[#allocation3 + $0xf3] sm:$0xff] %vm953_vm5, %v5047_v54  ;;  %v4797_v21 = vadd.f32 %v13681_v16, %v4695_v15  ;;  %11166 = vmatprep.mubr.msk.f32.mxu1 %vm578_vm1, %v5157_v59  ;;  %v5117_v42 = vld [vmem:[#allocation3 + $0xd0] sm:$0xff]  ;;  %v5118_v43 = vld [vmem:[#allocation3 + $0xd8] sm:$0xff]  ;;  %v5878_v15 = vld [vmem:[#allocation3 + $0x2] sm:$0xff] }
 0x4b8   : > { %v5050_v12 = vmul.f32 %v13606_v51, %v4798_v11  ;;  %11167 = vmatmul.mubr.msk.f32.vlgmr.msra.gmra.mrb[36].mxu1 %vm578_vm1, %v5158_v9  ;;  %11190 = vmatmul.mubr.msk.f32.vlgmr.msra.gmra.mrb[16].mxu0 %vm578_vm1, %v5092_v55  ;;  %v13821_v51 = vpack.c.bf16 %v9534_v14, %v9533_v13  ;;  %v9535_v9 = vld [vmem:[%s14515_s6 + $0x70] sm:$0xff]  ;;  %v9573_v14 = vld [vmem:[%s14515_s6 + $0x80] sm:$0xff] }
 0x4b9   : > { %v5049_v20 = vmul.f32 %v13601_v26, %v4797_v21  ;;  %11784 = vmatpush3.bf16.msra.mxu0 %v13668_v62  ;;  %v11115_v19 = vpop.f32.mrb[32].mxu1  ;;  %11192 = vmatprep.mubr.msk.f32.mxu0 %vm578_vm1, %v5093_v6  ;;  %v5094_v26 = vld [vmem:[#allocation3 + $0x18] sm:$0xff]  ;;  %v5879_v21 = vld [vmem:[#allocation3 + $0xa] sm:$0xff] }
 0x4ba   : > { %5086 = vst.msk [vmem:[#allocation3 + $0x10b] sm:$0xff] %vm953_vm5, %v5050_v12  ;;  %v4800_v17 = vadd.f32 %v11115_v19, %v13681_v16  ;;  %v4705_v22 = vpop.f32.mrb[33].mxu1  ;;  %v5159_v25 = vld [vmem:[#allocation3 + $0xe1] sm:$0xff]  ;;  %v5160_v46 = vld [vmem:[#allocation3 + $0xe9] sm:$0xff]  ;;  %11786 = vmatprep.subr.bf16.mxu0 %v11785_v10  ;;  %v9574_v12 = vld [vmem:[%s14515_s6 + $0x88] sm:$0xff] }
 0x4bb   : > { %5085 = vst.msk [vmem:[#allocation3 + $0x103] sm:$0xff] %vm953_vm5, %v5049_v20  ;;  %v4799_v24 = vadd.f32 %v13681_v16, %v4705_v22  ;;  %11169 = vmatprep.mubr.msk.f32.mxu1 %vm578_vm1, %v5159_v25  ;;  %v5119_v5 = vld [vmem:[#allocation3 + $0xe0] sm:$0xff]  ;;  %v5120_v8 = vld [vmem:[#allocation3 + $0xe8] sm:$0xff]  ;;  %v13891_v6 = vld [vmem:[#allocation3 + $0x12] sm:$0xff]  ;;  %v13896_v20 = vpack.c.bf16 %v9574_v12, %v9573_v14 }
 0x4bc   : > { %v5052_v62 = vmul.f32 %v13616_v61, %v4800_v17  ;;  %11170 = vmatmul.mubr.msk.f32.gmra.mrb[38].mxu1 %vm578_vm1, %v5160_v46  ;;  %11193 = vmatmul.mubr.msk.f32.gmra.mrb[18].mxu0 %vm578_vm1, %v5094_v26  ;;  %v13898_v19 = vld [vmem:[#allocation3 + $0x1a] sm:$0xff]  ;;  %v13902_v17 = vld [vmem:[#allocation3 + $0x22] sm:$0xff]  ;;  %v13907_v22 = vld [vmem:[#allocation3 + $0x2a] sm:$0xff] }
 0x4bd   : > { %v5051_v27 = vmul.f32 %v13611_v49, %v4799_v24  ;;  %v11118_v32 = vpop.f32.mrb[34].mxu1  ;;  %11195 = vmatprep.mubr.msk.f32.mxu0 %vm578_vm1, %v5095_v18  ;;  %11788 = vmatpush3.bf16.msra.mxu0 %v11785_v10  ;;  %v5096_v49 = vld [vmem:[#allocation3 + $0x28] sm:$0xff]  ;;  %v13911_v25 = vld [vmem:[#allocation3 + $0x32] sm:$0xff]  ;;  %v13915_v46 = vld [vmem:[#allocation3 + $0x3a] sm:$0xff] }
 0x4be   : > { %5088 = vst.msk [vmem:[#allocation3 + $0x11b] sm:$0xff] %vm953_vm5, %v5052_v62  ;;  %v4802_v36 = vadd.f32 %v11118_v32, %v13681_v16  ;;  %v4715_v28 = vpop.f32.mrb[35].mxu1  ;;  %v5161_v23 = vld [vmem:[#allocation3 + $0xf1] sm:$0xff]  ;;  %v5162_v37 = vld [vmem:[#allocation3 + $0xf9] sm:$0xff]  ;;  %11790 = vmatprep.subr.bf16.mxu0 %v13821_v51  ;;  %v9536_v10 = vld [vmem:[%s14515_s6 + $0x78] sm:$0xff] }
 0x4bf   : > { %5087 = vst.msk [vmem:[#allocation3 + $0x113] sm:$0xff] %vm953_vm5, %v5051_v27  ;;  %v4801_v61 = vadd.f32 %v13681_v16, %v4715_v28  ;;  %11172 = vmatprep.mubr.msk.f32.mxu1 %vm578_vm1, %v5161_v23  ;;  %v5098_v16 = vld [vmem:[#allocation3 + $0x38] sm:$0xff]  ;;  %v5121_v47 = vld [vmem:[#allocation3 + $0xf0] sm:$0xff]  ;;  %v11793_v13 = vpack.c.bf16 %v9536_v10, %v9535_v9  ;;  %v13935_v18 = vld [vmem:[#allocation3 + $0x62] sm:$0xff] }
 0x4c0   : > { %v5054_v41 = vmul.f32 %v13671_v4, %v4802_v36  ;;  %11173 = vmatmul.mubr.msk.f32.gmra.mrb[40].mxu1 %vm578_vm1, %v5162_v37  ;;  %11196 = vmatmul.mubr.msk.f32.gmra.mrb[20].mxu0 %vm578_vm1, %v5096_v49  ;;  %v5099_v4 = vld [vmem:[#allocation3 + $0x40] sm:$0xff]  ;;  %v5122_v54 = vld [vmem:[#allocation3 + $0xf8] sm:$0xff]  ;;  %v13923_v24 = vld [vmem:[#allocation3 + $0x4a] sm:$0xff] }
 0x4c1   : > { %v5053_v44 = vmul.f32 %v13660_v50, %v4801_v61  ;;  %11198 = vmatprep.mubr.msk.f32.mxu0 %vm578_vm1, %v5097_v30  ;;  %v13927_v26 = vld [vmem:[#allocation3 + $0x52] sm:$0xff]  ;;  %v13931_v62 = vld [vmem:[#allocation3 + $0x5a] sm:$0xff]  ;;  %v13939_v27 = vld [vmem:[#allocation3 + $0x6a] sm:$0xff] }
 0x4c2   : > { %5090 = vst.msk [vmem:[#allocation3 + $0x12b] sm:$0xff] %vm953_vm5, %v5054_v41  ;;  %v5163_v45 = vld [vmem:[#allocation3 + $0x101] sm:$0xff]  ;;  %v5164_v53 = vld [vmem:[#allocation3 + $0x109] sm:$0xff]  ;;  %v13943_v32 = vld [vmem:[#allocation3 + $0x72] sm:$0xff] }
 0x4c3   : > { %5089 = vst.msk [vmem:[#allocation3 + $0x123] sm:$0xff] %vm953_vm5, %v5053_v44  ;;  %11175 = vmatprep.mubr.msk.f32.mxu1 %vm578_vm1, %v5163_v45  ;;  %v5123_v0 = vld [vmem:[#allocation3 + $0x100] sm:$0xff]  ;;  %v5124_v55 = vld [vmem:[#allocation3 + $0x108] sm:$0xff]  ;;  %v5896_v37 = vld [vmem:[#allocation3 + $0x92] sm:$0xff] }
 0x4c4   : > { %11176 = vmatmul.mubr.msk.f32.gmra.mrb[42].mxu1 %vm578_vm1, %v5164_v53  ;;  %11199 = vmatmul.mubr.msk.f32.gmra.mrb[22].mxu0 %vm578_vm1, %v5098_v16  ;;  %v13947_v36 = vld [vmem:[#allocation3 + $0x7a] sm:$0xff]  ;;  %v13951_v28 = vld [vmem:[#allocation3 + $0x82] sm:$0xff]  ;;  %v13955_v23 = vld [vmem:[#allocation3 + $0x8a] sm:$0xff] }
 0x4c5   : > { %11201 = vmatprep.mubr.msk.f32.mxu0 %vm578_vm1, %v5099_v4  ;;  %v13960_v61 = vld [vmem:[#allocation3 + $0x9a] sm:$0xff]  ;;  %v13964_v49 = vld [vmem:[#allocation3 + $0xa2] sm:$0xff]  ;;  %v13968_v41 = vld [vmem:[#allocation3 + $0xaa] sm:$0xff] }
 0x4c6   : > { %v5165_v57 = vld [vmem:[#allocation3 + $0x111] sm:$0xff]  ;;  %v5166_v50 = vld [vmem:[#allocation3 + $0x119] sm:$0xff]  ;;  %v5902_v45 = vld [vmem:[#allocation3 + $0xc2] sm:$0xff] }
 0x4c7   : > { %11178 = vmatprep.mubr.msk.f32.mxu1 %vm578_vm1, %v5165_v57  ;;  %v5125_v11 = vld [vmem:[#allocation3 + $0x110] sm:$0xff]  ;;  %v5126_v59 = vld [vmem:[#allocation3 + $0x118] sm:$0xff]  ;;  %v5906_v57 = vld [vmem:[#allocation3 + $0xe2] sm:$0xff] }
 0x4c8   : > { %11179 = vmatmul.mubr.msk.f32.gmra.mrb[44].mxu1 %vm578_vm1, %v5166_v50  ;;  %11202 = vmatmul.mubr.msk.f32.gmra.mrb[24].mxu0 %vm578_vm1, %v5100_v29  ;;  %v5900_v30 = vld [vmem:[#allocation3 + $0xb2] sm:$0xff]  ;;  %v5901_v44 = vld [vmem:[#allocation3 + $0xba] sm:$0xff]  ;;  %v5903_v53 = vld [vmem:[#allocation3 + $0xca] sm:$0xff] }
 0x4c9   : > { %11204 = vmatprep.mubr.msk.f32.mxu0 %vm578_vm1, %v5101_v48  ;;  %v5904_v16 = vld [vmem:[#allocation3 + $0xd2] sm:$0xff]  ;;  %v5905_v4 = vld [vmem:[#allocation3 + $0xda] sm:$0xff]  ;;  %v5907_v50 = vld [vmem:[#allocation3 + $0xea] sm:$0xff] }
 0x4ca   : > { %v5908_v29 = vld [vmem:[#allocation3 + $0xf2] sm:$0xff]  ;;  %v5909_v48 = vld [vmem:[#allocation3 + $0xfa] sm:$0xff] }
 0x4cb   : > { %v6742_v14 = vld [vmem:[#allocation3 + $0x33] sm:$0xff] }
 0x4cc   : > { %11205 = vmatmul.mubr.msk.f32.gmra.mrb[26].mxu0 %vm578_vm1, %v5102_v60  ;;  %v5910_v60 = vld [vmem:[#allocation3 + $0x102] sm:$0xff] }
 0x4cd   : > { %11207 = vmatprep.mubr.msk.f32.mxu0 %vm578_vm1, %v5103_v52  ;;  %v5911_v52 = vld [vmem:[#allocation3 + $0x10a] sm:$0xff] }
 0x4d0   : > { %11208 = vmatmul.mubr.msk.f32.gmra.mrb[28].mxu0 %vm578_vm1, %v5104_v40  ;;  %v5912_v40 = vld [vmem:[#allocation3 + $0x112] sm:$0xff] }
 0x4d1   : > { %11210 = vmatprep.mubr.msk.f32.mxu0 %vm578_vm1, %v5105_v58  ;;  %v5913_v58 = vld [vmem:[#allocation3 + $0x11a] sm:$0xff] }
 0x4d4   : > { %11211 = vmatmul.mubr.msk.f32.gmra.mrb[30].mxu0 %vm578_vm1, %v5106_v1  ;;  %v9575_v1 = vld [vmem:[%s14515_s6 + $0x90] sm:$0xff] }
 0x4d5   : > { %11213 = vmatprep.mubr.msk.f32.mxu0 %vm578_vm1, %v5107_v33  ;;  %v9576_v33 = vld [vmem:[%s14515_s6 + $0x98] sm:$0xff] }
 0x4d8   : > { %11214 = vmatmul.mubr.msk.f32.gmra.mrb[32].mxu0 %vm578_vm1, %v5108_v35  ;;  %v11801_v35 = vpack.c.bf16 %v9576_v33, %v9575_v1  ;;  %v9656_v1 = vld [vmem:[%s14515_s6 + $0xd8] sm:$0xff]  ;;  %v7168_v33 = vld [vmem:[#allocation3 + $0x14] sm:$0xff] }
 0x4d9   : > { %11216 = vmatprep.mubr.msk.f32.mxu0 %vm578_vm1, %v5109_v38  ;;  %v9613_v38 = vld [vmem:[%s14515_s6 + $0xa0] sm:$0xff] }
 0x4dc   : > { %11217 = vmatmul.mubr.msk.f32.gmra.mrb[34].mxu0 %vm578_vm1, %v5110_v63  ;;  %v9614_v63 = vld [vmem:[%s14515_s6 + $0xa8] sm:$0xff] }
 0x4dd   : > { %11219 = vmatprep.mubr.msk.f32.mxu0 %vm578_vm1, %v5111_v2  ;;  %v11805_v2 = vpack.c.bf16 %v9614_v63, %v9613_v38  ;;  %v7169_v38 = vld [vmem:[#allocation3 + $0x1c] sm:$0xff]  ;;  %v9693_v63 = vld [vmem:[%s14515_s6 + $0xe0] sm:$0xff] }
 0x4e0   : > { %11220 = vmatmul.mubr.msk.f32.gmra.mrb[36].mxu0 %vm578_vm1, %v5112_v39  ;;  %v739_v39 = vld [vmem:[%s12996_s15 + $0x140] sm:$0xff] }
 0x4e1   : > { %11222 = vmatprep.mubr.msk.f32.mxu0 %vm578_vm1, %v5113_v34  ;;  %v740_v34 = vld [vmem:[%s12996_s15 + $0x148] sm:$0xf]  ;;  %863 = vrot.lane.b32.xlu1 %v739_v39, %s12444_s16  ;;  %v14143_v39 = vld [vmem:[#allocation3 + $0x24] sm:$0xff] }
 0x4e2   : > { %865 = vrot.lane.b32.xlu0 %v740_v34, %s12444_s16 }
 0x4e4   : > { %11223 = vmatmul.mubr.msk.f32.gmra.mrb[38].mxu0 %vm578_vm1, %v5114_v56  ;;  %v6342_v56 = vld [vmem:[#allocation3 + $0x122] sm:$0xff] }
 0x4e5   : > { %11225 = vmatprep.mubr.msk.f32.mxu0 %vm578_vm1, %v5115_v7 }
 0x4e8   : > { %11226 = vmatmul.mubr.msk.f32.gmra.mrb[40].mxu0 %vm578_vm1, %v5116_v3  ;;  %v6343_v3 = vld [vmem:[#allocation3 + $0x12a] sm:$0xff] }
 0x4e9   : > { %11228 = vmatprep.mubr.msk.f32.mxu0 %vm578_vm1, %v5117_v42  ;;  %v9615_v42 = vld [vmem:[%s14515_s6 + $0xb0] sm:$0xff] }
 0x4ec   : > { %11229 = vmatmul.mubr.msk.f32.gmra.mrb[42].mxu0 %vm578_vm1, %v5118_v43  ;;  %v9616_v43 = vld [vmem:[%s14515_s6 + $0xb8] sm:$0xff] }
 0x4ed   : > { %11231 = vmatprep.mubr.msk.f32.mxu0 %vm578_vm1, %v5119_v5 }
 0x4f0   : > { %11232 = vmatmul.mubr.msk.f32.gmra.mrb[44].mxu0 %vm578_vm1, %v5120_v8  ;;  %v6738_v8 = vld [vmem:[#allocation3 + $0x13] sm:$0xff] }
 0x4f1   : > { %11234 = vmatprep.mubr.msk.f32.mxu0 %vm578_vm1, %v5121_v47  ;;  %v11809_v47 = vpack.c.bf16 %v9616_v43, %v9615_v42  ;;  %v14153_v42 = vld [vmem:[#allocation3 + $0x2c] sm:$0xff]  ;;  %v14159_v43 = vld [vmem:[#allocation3 + $0x34] sm:$0xff] }
 0x4f4   : > { %11235 = vmatmul.mubr.msk.f32.gmra.mrb[46].mxu0 %vm578_vm1, %v5122_v54 }
 0x4f5   : > { %11237 = vmatprep.mubr.msk.f32.mxu0 %vm578_vm1, %v5123_v0  ;;  %v6739_v0 = vld [vmem:[#allocation3 + $0x1b] sm:$0xff] }
 0x4f8   : > { %11238 = vmatmul.mubr.msk.f32.gmra.mrb[48].mxu0 %vm578_vm1, %v5124_v55  ;;  %v9653_v55 = vld [vmem:[%s14515_s6 + $0xc0] sm:$0xff] }
 0x4f9   : > { %11240 = vmatprep.mubr.msk.f32.mxu0 %vm578_vm1, %v5125_v11  ;;  %v9654_v11 = vld [vmem:[%s14515_s6 + $0xc8] sm:$0xff] }
 0x4fa   : > { %v14081_v9 = vpack.c.bf16 %v9654_v11, %v9653_v55  ;;  %v14180_v55 = vld [vmem:[#allocation3 + $0x5c] sm:$0xff]  ;;  %v14184_v11 = vld [vmem:[#allocation3 + $0x64] sm:$0xff] }
 0x4fc   : > { %11241 = vmatmul.mubr.msk.f32.gmra.mrb[50].mxu0 %vm578_vm1, %v5126_v59  ;;  %v6740_v59 = vld [vmem:[#allocation3 + $0x23] sm:$0xff] }
 0x4fd   : > { %11251 = vmatprep.mubr.msk.f32.mxu0 %vm578_vm1, %v5878_v15 }
 0x500   : > { %11252 = vmatmul.mubr.msk.f32.vlgmr.msra.gmra.mrb[16].mxu0 %vm578_vm1, %v5879_v21  ;;  %v6741_v21 = vld [vmem:[#allocation3 + $0x2b] sm:$0xff] }
 0x501   : > { %11792 = vmatpush3.bf16.msra.mxu0 %v13821_v51  ;;  %11254 = vmatprep.mubr.msk.f32.mxu0 %vm578_vm1, %v13891_v6  ;;  %v13919_v51 = vld [vmem:[#allocation3 + $0x42] sm:$0xff] }
 0x502   : > { %11794 = vmatprep.subr.bf16.mxu0 %v11793_v13 }
 0x504   : > { %11255 = vmatmul.mubr.msk.f32.gmra.mrb[18].mxu0 %vm578_vm1, %v13898_v19 }
 0x505   : > { %11257 = vmatprep.mubr.msk.f32.mxu0 %vm578_vm1, %v13902_v17  ;;  %11796 = vmatpush3.bf16.msra.mxu0 %v11793_v13 }
 0x506   : > { %11798 = vmatprep.subr.bf16.mxu0 %v13896_v20 }
 0x508   : > { %11258 = vmatmul.mubr.msk.f32.gmra.mrb[20].mxu0 %vm578_vm1, %v13907_v22 }
 0x509   : > { %11260 = vmatprep.mubr.msk.f32.mxu0 %vm578_vm1, %v13911_v25 }
 0x50c   : > { %11261 = vmatmul.mubr.msk.f32.gmra.mrb[22].mxu0 %vm578_vm1, %v13915_v46 }
 0x50d   : > { %11263 = vmatprep.mubr.msk.f32.mxu0 %vm578_vm1, %v13919_v51 }
 0x510   : > { %11264 = vmatmul.mubr.msk.f32.gmra.mrb[24].mxu0 %vm578_vm1, %v13923_v24 }
 0x511   : > { %11266 = vmatprep.mubr.msk.f32.mxu0 %vm578_vm1, %v13927_v26 }
 0x514   : > { %11267 = vmatmul.mubr.msk.f32.gmra.mrb[26].mxu0 %vm578_vm1, %v13931_v62 }
 0x515   : > { %11269 = vmatprep.mubr.msk.f32.mxu0 %vm578_vm1, %v13935_v18 }
 0x518   : > { %11270 = vmatmul.mubr.msk.f32.gmra.mrb[28].mxu0 %vm578_vm1, %v13939_v27 }
 0x519   : > { %11272 = vmatprep.mubr.msk.f32.mxu0 %vm578_vm1, %v13943_v32 }
 0x51c   : > { %11273 = vmatmul.mubr.msk.f32.gmra.mrb[30].mxu0 %vm578_vm1, %v13947_v36 }
 0x51d   : > { %11275 = vmatprep.mubr.msk.f32.mxu0 %vm578_vm1, %v13951_v28 }
 0x520   : > { %11276 = vmatmul.mubr.msk.f32.gmra.mrb[32].mxu0 %vm578_vm1, %v13955_v23 }
 0x521   : > { %11278 = vmatprep.mubr.msk.f32.mxu0 %vm578_vm1, %v5896_v37 }
 0x524   : > { %11279 = vmatmul.mubr.msk.f32.gmra.mrb[34].mxu0 %vm578_vm1, %v13960_v61 }
 0x525   : > { %11281 = vmatprep.mubr.msk.f32.mxu0 %vm578_vm1, %v13964_v49 }
 0x528   : > { %11282 = vmatmul.mubr.msk.f32.gmra.mrb[36].mxu0 %vm578_vm1, %v13968_v41 }
 0x529   : > { %11284 = vmatprep.mubr.msk.f32.mxu0 %vm578_vm1, %v5900_v30 }
 0x52c   : > { %11285 = vmatmul.mubr.msk.f32.gmra.mrb[38].mxu0 %vm578_vm1, %v5901_v44 }
 0x52d   : > { %11287 = vmatprep.mubr.msk.f32.mxu0 %vm578_vm1, %v5902_v45 }
 0x530   : > { %11288 = vmatmul.mubr.msk.f32.gmra.mrb[40].mxu0 %vm578_vm1, %v5903_v53 }
 0x531   : > { %11290 = vmatprep.mubr.msk.f32.mxu0 %vm578_vm1, %v5904_v16 }
 0x534   : > { %11291 = vmatmul.mubr.msk.f32.gmra.mrb[42].mxu0 %vm578_vm1, %v5905_v4 }
 0x535   : > { %11293 = vmatprep.mubr.msk.f32.mxu0 %vm578_vm1, %v5906_v57 }
 0x538   : > { %11294 = vmatmul.mubr.msk.f32.gmra.mrb[44].mxu0 %vm578_vm1, %v5907_v50 }
 0x539   : > { %11296 = vmatprep.mubr.msk.f32.mxu0 %vm578_vm1, %v5908_v29 }
 0x53c   : > { %11297 = vmatmul.mubr.msk.f32.gmra.mrb[46].mxu0 %vm578_vm1, %v5909_v48 }
 0x53d   : > { %11299 = vmatprep.mubr.msk.f32.mxu0 %vm578_vm1, %v5910_v60 }
 0x540   : > { %11300 = vmatmul.mubr.msk.f32.gmra.mrb[48].mxu0 %vm578_vm1, %v5911_v52 }
 0x541   : > { %11302 = vmatprep.mubr.msk.f32.mxu0 %vm578_vm1, %v5912_v40 }
 0x544   : > { %11303 = vmatmul.mubr.msk.f32.gmra.mrb[50].mxu0 %vm578_vm1, %v5913_v58 }
 0x545   : > { %11313 = vmatprep.mubr.msk.f32.mxu0 %vm578_vm1, %v13891_v6  ;;  %v6743_v6 = vld [vmem:[#allocation3 + $0x3b] sm:$0xff] }
 0x548   : > { %11314 = vmatmul.mubr.msk.f32.vlgmr.msra.gmra.mrb[16].mxu0 %vm578_vm1, %v13898_v19  ;;  %v6744_v19 = vld [vmem:[#allocation3 + $0x43] sm:$0xff] }
 0x549   : > { %11800 = vmatpush3.bf16.msra.mxu0 %v13896_v20  ;;  %11316 = vmatprep.mubr.msk.f32.mxu0 %vm578_vm1, %v13902_v17 }
 0x54a   : > { %11802 = vmatprep.subr.bf16.mxu0 %v11801_v35 }
 0x54c   : > { %11317 = vmatmul.mubr.msk.f32.gmra.mrb[18].mxu0 %vm578_vm1, %v13907_v22  ;;  %v6745_v22 = vld [vmem:[#allocation3 + $0x4b] sm:$0xff] }
 0x54d   : > { %11319 = vmatprep.mubr.msk.f32.mxu0 %vm578_vm1, %v13911_v25  ;;  %11804 = vmatpush3.bf16.msra.mxu0 %v11801_v35 }
 0x54e   : > { %11806 = vmatprep.subr.bf16.mxu0 %v11805_v2 }
 0x550   : > { %11320 = vmatmul.mubr.msk.f32.gmra.mrb[20].mxu0 %vm578_vm1, %v13915_v46  ;;  %v6746_v46 = vld [vmem:[#allocation3 + $0x53] sm:$0xff] }
 0x551   : > { %11322 = vmatprep.mubr.msk.f32.mxu0 %vm578_vm1, %v13919_v51  ;;  %v6747_v51 = vld [vmem:[#allocation3 + $0x5b] sm:$0xff] }
 0x553   : > { %v864_v34 = vpop.permute.xlu1 %863 }
 0x554   : > { %11323 = vmatmul.mubr.msk.f32.gmra.mrb[22].mxu0 %vm578_vm1, %v13923_v24  ;;  %v6748_v24 = vld [vmem:[#allocation3 + $0x63] sm:$0xff]  ;;  %950 = vst.msk [vmem:[#allocation3 + $0x140] sm:$0xff] %vm909_vm4, %v864_v34 }
 0x555   : > { %11325 = vmatprep.mubr.msk.f32.mxu0 %vm578_vm1, %v13927_v26  ;;  %v6749_v26 = vld [vmem:[#allocation3 + $0x6b] sm:$0xff]  ;;  %959 = vst.msk [vmem:[#allocation3 + $0x13b] sm:$0xff] %vm953_vm5, %v12441_v31  ;;  %960 = vst.msk [vmem:[#allocation3 + $0x143] sm:$0xff] %vm953_vm5, %v12441_v31  ;;  %v8035_v34 = vld [vmem:[#allocation3 + $0x5d] sm:$0xff] }
 0x556   : > { %v14172_v31 = vld [vmem:[#allocation3 + $0x4c] sm:$0xff] }
 0x558   : > { %11326 = vmatmul.mubr.msk.f32.gmra.mrb[24].mxu0 %vm578_vm1, %v13931_v62  ;;  %v6750_v62 = vld [vmem:[#allocation3 + $0x73] sm:$0xff] }
 0x559   : > { %11328 = vmatprep.mubr.msk.f32.mxu0 %vm578_vm1, %v13935_v18  ;;  %v6751_v18 = vld [vmem:[#allocation3 + $0x7b] sm:$0xff] }
 0x55c   : > { %11329 = vmatmul.mubr.msk.f32.gmra.mrb[26].mxu0 %vm578_vm1, %v13939_v27  ;;  %v6752_v27 = vld [vmem:[#allocation3 + $0x83] sm:$0xff] }
 0x55d   : > { %11331 = vmatprep.mubr.msk.f32.mxu0 %vm578_vm1, %v13943_v32  ;;  %v6753_v32 = vld [vmem:[#allocation3 + $0x8b] sm:$0xff] }
 0x560   : > { %11332 = vmatmul.mubr.msk.f32.gmra.mrb[28].mxu0 %vm578_vm1, %v13947_v36  ;;  %v6754_v36 = vld [vmem:[#allocation3 + $0x93] sm:$0xff] }
 0x561   : > { %11334 = vmatprep.mubr.msk.f32.mxu0 %vm578_vm1, %v13951_v28  ;;  %v6755_v28 = vld [vmem:[#allocation3 + $0x9b] sm:$0xff] }
 0x564   : > { %11335 = vmatmul.mubr.msk.f32.gmra.mrb[30].mxu0 %vm578_vm1, %v13955_v23  ;;  %v6756_v23 = vld [vmem:[#allocation3 + $0xa3] sm:$0xff] }
 0x565   : > { %11337 = vmatprep.mubr.msk.f32.mxu0 %vm578_vm1, %v5896_v37  ;;  %v6757_v37 = vld [vmem:[#allocation3 + $0xab] sm:$0xff] }
 0x568   : > { %11338 = vmatmul.mubr.msk.f32.gmra.mrb[32].mxu0 %vm578_vm1, %v13960_v61  ;;  %v6758_v61 = vld [vmem:[#allocation3 + $0xb3] sm:$0xff] }
 0x569   : > { %11340 = vmatprep.mubr.msk.f32.mxu0 %vm578_vm1, %v13964_v49  ;;  %v6759_v49 = vld [vmem:[#allocation3 + $0xbb] sm:$0xff] }
 0x56c   : > { %11341 = vmatmul.mubr.msk.f32.gmra.mrb[34].mxu0 %vm578_vm1, %v13968_v41  ;;  %v6760_v41 = vld [vmem:[#allocation3 + $0xc3] sm:$0xff] }
 0x56d   : > { %11343 = vmatprep.mubr.msk.f32.mxu0 %vm578_vm1, %v5900_v30  ;;  %v6761_v30 = vld [vmem:[#allocation3 + $0xcb] sm:$0xff] }
 0x570   : > { %11344 = vmatmul.mubr.msk.f32.gmra.mrb[36].mxu0 %vm578_vm1, %v5901_v44  ;;  %v6762_v44 = vld [vmem:[#allocation3 + $0xd3] sm:$0xff] }
 0x571   : > { %11346 = vmatprep.mubr.msk.f32.mxu0 %vm578_vm1, %v5902_v45  ;;  %v6763_v45 = vld [vmem:[#allocation3 + $0xdb] sm:$0xff] }
 0x574   : > { %11347 = vmatmul.mubr.msk.f32.gmra.mrb[38].mxu0 %vm578_vm1, %v5903_v53  ;;  %v6764_v53 = vld [vmem:[#allocation3 + $0xe3] sm:$0xff] }
 0x575   : > { %11349 = vmatprep.mubr.msk.f32.mxu0 %vm578_vm1, %v5904_v16  ;;  %v6765_v16 = vld [vmem:[#allocation3 + $0xeb] sm:$0xff] }
 0x578   : > { %11350 = vmatmul.mubr.msk.f32.gmra.mrb[40].mxu0 %vm578_vm1, %v5905_v4  ;;  %v6766_v4 = vld [vmem:[#allocation3 + $0xf3] sm:$0xff] }
 0x579   : > { %11352 = vmatprep.mubr.msk.f32.mxu0 %vm578_vm1, %v5906_v57  ;;  %v6767_v57 = vld [vmem:[#allocation3 + $0xfb] sm:$0xff] }
 0x57c   : > { %11353 = vmatmul.mubr.msk.f32.gmra.mrb[42].mxu0 %vm578_vm1, %v5907_v50  ;;  %v6768_v50 = vld [vmem:[#allocation3 + $0x103] sm:$0xff] }
 0x57d   : > { %11355 = vmatprep.mubr.msk.f32.mxu0 %vm578_vm1, %v5908_v29  ;;  %v6769_v29 = vld [vmem:[#allocation3 + $0x10b] sm:$0xff] }
 0x580   : > { %11356 = vmatmul.mubr.msk.f32.gmra.mrb[44].mxu0 %vm578_vm1, %v5909_v48  ;;  %v6770_v48 = vld [vmem:[#allocation3 + $0x113] sm:$0xff] }
 0x581   : > { %11358 = vmatprep.mubr.msk.f32.mxu0 %vm578_vm1, %v5910_v60  ;;  %v6771_v60 = vld [vmem:[#allocation3 + $0x11b] sm:$0xff] }
 0x584   : > { %11359 = vmatmul.mubr.msk.f32.gmra.mrb[46].mxu0 %vm578_vm1, %v5911_v52  ;;  %v6772_v52 = vld [vmem:[#allocation3 + $0x123] sm:$0xff] }
 0x585   : > { %11361 = vmatprep.mubr.msk.f32.mxu0 %vm578_vm1, %v5912_v40  ;;  %v6773_v40 = vld [vmem:[#allocation3 + $0x12b] sm:$0xff] }
 0x588   : > { %11362 = vmatmul.mubr.msk.f32.gmra.mrb[48].mxu0 %vm578_vm1, %v5913_v58  ;;  %v9655_v58 = vld [vmem:[%s14515_s6 + $0xd0] sm:$0xff] }
 0x589   : > { %11364 = vmatprep.mubr.msk.f32.mxu0 %vm578_vm1, %v6342_v56  ;;  %v11817_v35 = vpack.c.bf16 %v9656_v1, %v9655_v58  ;;  %v866_v56 = vpop.permute.xlu0 %865  ;;  %v8028_v58 = vld [vmem:[#allocation3 + $0x25] sm:$0xff] }
 0x58a   : > { %v8036_v56 = vld [vmem:[#allocation3 + $0x65] sm:$0xff] }
 0x58b   : > { %v14057_v7 = vpop.f32.mrb[36].mxu1 }
 0x58c   : > { %v14065_v5 = vpop.f32.mrb[37].mxu1  ;;  %11365 = vmatmul.mubr.msk.f32.gmra.mrb[50].mxu0 %vm578_vm1, %v6343_v3 }
 0x58d   : > { %11375 = vmatprep.mubr.msk.f32.mxu0 %vm578_vm1, %v6738_v8  ;;  %v14164_v8 = vld [vmem:[#allocation3 + $0x3c] sm:$0xff] }
 0x58f   : > { %v14069_v54 = vpop.f32.mrb[38].mxu1 }
 0x590   : > { %v14077_v15 = vpop.f32.mrb[39].mxu1  ;;  %11376 = vmatmul.mubr.msk.f32.vlgmr.msra.gmra.mrb[16].mxu0 %vm578_vm1, %v6739_v0  ;;  %v14176_v0 = vld [vmem:[#allocation3 + $0x54] sm:$0xff] }
 0x591   : > { %11808 = vmatpush3.bf16.msra.mxu0 %v11805_v2  ;;  %11378 = vmatprep.mubr.msk.f32.mxu0 %vm578_vm1, %v6740_v59  ;;  %v9694_v2 = vld [vmem:[%s14515_s6 + $0xe8] sm:$0xff]  ;;  %v14188_v59 = vld [vmem:[#allocation3 + $0x6c] sm:$0xff] }
 0x592   : > { %11810 = vmatprep.subr.bf16.mxu0 %v11809_v47  ;;  %v14149_v3 = vpack.c.bf16 %v9694_v2, %v9693_v63  ;;  %v8032_v63 = vld [vmem:[#allocation3 + $0x45] sm:$0xff]  ;;  %v8033_v2 = vld [vmem:[#allocation3 + $0x4d] sm:$0xff] }
 0x593   : > { %v14083_v10 = vpop.f32.mrb[40].mxu1 }
 0x594   : > { %v14085_v13 = vpop.f32.mrb[41].mxu1  ;;  %11379 = vmatmul.mubr.msk.f32.gmra.mrb[18].mxu0 %vm578_vm1, %v6741_v21  ;;  %v14196_v21 = vld [vmem:[#allocation3 + $0x7c] sm:$0xff] }
 0x595   : > { %11381 = vmatprep.mubr.msk.f32.mxu0 %vm578_vm1, %v6742_v14  ;;  %11812 = vmatpush3.bf16.msra.mxu0 %v11809_v47  ;;  %v14168_v47 = vld [vmem:[#allocation3 + $0x44] sm:$0xff] }
 0x596   : > { %11814 = vmatprep.subr.bf16.mxu0 %v14081_v9  ;;  %v14200_v14 = vld [vmem:[#allocation3 + $0x84] sm:$0xff] }
 0x597   : > { %v14090_v12 = vpop.f32.mrb[42].mxu1 }
 0x598   : > { %v14092_v20 = vpop.f32.mrb[43].mxu1  ;;  %11382 = vmatmul.mubr.msk.f32.gmra.mrb[20].mxu0 %vm578_vm1, %v6743_v6  ;;  %v14204_v6 = vld [vmem:[#allocation3 + $0x8c] sm:$0xff] }
 0x599   : > { %11384 = vmatprep.mubr.msk.f32.mxu0 %vm578_vm1, %v6744_v19  ;;  %v14208_v19 = vld [vmem:[#allocation3 + $0x94] sm:$0xff] }
 0x59b   : > { %v14096_v17 = vpop.f32.mrb[44].mxu1 }
 0x59c   : > { %v14098_v25 = vpop.f32.mrb[45].mxu1  ;;  %11385 = vmatmul.mubr.msk.f32.gmra.mrb[22].mxu0 %vm578_vm1, %v6745_v22  ;;  %v14212_v22 = vld [vmem:[#allocation3 + $0x9c] sm:$0xff] }
 0x59d   : > { %11387 = vmatprep.mubr.msk.f32.mxu0 %vm578_vm1, %v6746_v46  ;;  %v7186_v46 = vld [vmem:[#allocation3 + $0xa4] sm:$0xff] }
 0x5a0   : > { %11388 = vmatmul.mubr.msk.f32.gmra.mrb[24].mxu0 %vm578_vm1, %v6747_v51  ;;  %v7187_v51 = vld [vmem:[#allocation3 + $0xac] sm:$0xff] }
 0x5a1   : > { %11390 = vmatprep.mubr.msk.f32.mxu0 %vm578_vm1, %v6748_v24  ;;  %v7188_v24 = vld [vmem:[#allocation3 + $0xb4] sm:$0xff] }
 0x5a4   : > { %11391 = vmatmul.mubr.msk.f32.gmra.mrb[26].mxu0 %vm578_vm1, %v6749_v26  ;;  %v7189_v26 = vld [vmem:[#allocation3 + $0xbc] sm:$0xff] }
 0x5a5   : > { %11393 = vmatprep.mubr.msk.f32.mxu0 %vm578_vm1, %v6750_v62  ;;  %v7190_v62 = vld [vmem:[#allocation3 + $0xc4] sm:$0xff] }
 0x5a8   : > { %11394 = vmatmul.mubr.msk.f32.gmra.mrb[28].mxu0 %vm578_vm1, %v6751_v18  ;;  %v7191_v18 = vld [vmem:[#allocation3 + $0xcc] sm:$0xff] }
 0x5a9   : > { %11396 = vmatprep.mubr.msk.f32.mxu0 %vm578_vm1, %v6752_v27  ;;  %v7192_v27 = vld [vmem:[#allocation3 + $0xd4] sm:$0xff] }
 0x5ac   : > { %11397 = vmatmul.mubr.msk.f32.gmra.mrb[30].mxu0 %vm578_vm1, %v6753_v32  ;;  %v7193_v32 = vld [vmem:[#allocation3 + $0xdc] sm:$0xff] }
 0x5ad   : > { %11399 = vmatprep.mubr.msk.f32.mxu0 %vm578_vm1, %v6754_v36  ;;  %v7194_v36 = vld [vmem:[#allocation3 + $0xe4] sm:$0xff] }
 0x5b0   : > { %11400 = vmatmul.mubr.msk.f32.gmra.mrb[32].mxu0 %vm578_vm1, %v6755_v28  ;;  %v7195_v28 = vld [vmem:[#allocation3 + $0xec] sm:$0xff] }
 0x5b1   : > { %11402 = vmatprep.mubr.msk.f32.mxu0 %vm578_vm1, %v6756_v23  ;;  %v7196_v23 = vld [vmem:[#allocation3 + $0xf4] sm:$0xff] }
 0x5b4   : > { %11403 = vmatmul.mubr.msk.f32.gmra.mrb[34].mxu0 %vm578_vm1, %v6757_v37  ;;  %v7197_v37 = vld [vmem:[#allocation3 + $0xfc] sm:$0xff] }
 0x5b5   : > { %11405 = vmatprep.mubr.msk.f32.mxu0 %vm578_vm1, %v6758_v61  ;;  %v7198_v61 = vld [vmem:[#allocation3 + $0x104] sm:$0xff] }
 0x5b8   : > { %11406 = vmatmul.mubr.msk.f32.gmra.mrb[36].mxu0 %vm578_vm1, %v6759_v49  ;;  %v7199_v49 = vld [vmem:[#allocation3 + $0x10c] sm:$0xff] }
 0x5b9   : > { %11408 = vmatprep.mubr.msk.f32.mxu0 %vm578_vm1, %v6760_v41  ;;  %v7200_v41 = vld [vmem:[#allocation3 + $0x114] sm:$0xff] }
 0x5bc   : > { %11409 = vmatmul.mubr.msk.f32.gmra.mrb[38].mxu0 %vm578_vm1, %v6761_v30  ;;  %v7201_v30 = vld [vmem:[#allocation3 + $0x11c] sm:$0xff] }
 0x5bd   : > { %11411 = vmatprep.mubr.msk.f32.mxu0 %vm578_vm1, %v6762_v44  ;;  %v7202_v44 = vld [vmem:[#allocation3 + $0x124] sm:$0xff] }
 0x5c0   : > { %11412 = vmatmul.mubr.msk.f32.gmra.mrb[40].mxu0 %vm578_vm1, %v6763_v45  ;;  %v7203_v45 = vld [vmem:[#allocation3 + $0x12c] sm:$0xff] }
 0x5c1   : > { %11414 = vmatprep.mubr.msk.f32.mxu0 %vm578_vm1, %v6764_v53  ;;  %v9695_v53 = vld [vmem:[%s14515_s6 + $0xf0] sm:$0xff] }
 0x5c4   : > { %11415 = vmatmul.mubr.msk.f32.gmra.mrb[42].mxu0 %vm578_vm1, %v6765_v16  ;;  %v9696_v16 = vld [vmem:[%s14515_s6 + $0xf8] sm:$0xff] }
 0x5c5   : > { %11417 = vmatprep.mubr.msk.f32.mxu0 %vm578_vm1, %v6766_v4  ;;  %v11825_v4 = vpack.c.bf16 %v9696_v16, %v9695_v53  ;;  %v8465_v53 = vld [vmem:[#allocation3 + $0x5e] sm:$0xff]  ;;  %v8466_v16 = vld [vmem:[#allocation3 + $0x66] sm:$0xff] }
 0x5c8   : > { %11418 = vmatmul.mubr.msk.f32.gmra.mrb[44].mxu0 %vm578_vm1, %v6767_v57  ;;  %v9733_v57 = vld [vmem:[%s14515_s6 + $0x100] sm:$0xff] }
 0x5c9   : > { %11420 = vmatprep.mubr.msk.f32.mxu0 %vm578_vm1, %v6768_v50  ;;  %v9734_v50 = vld [vmem:[%s14515_s6 + $0x108] sm:$0xff] }
 0x5cc   : > { %11421 = vmatmul.mubr.msk.f32.gmra.mrb[46].mxu0 %vm578_vm1, %v6769_v29  ;;  %v11829_v29 = vpack.c.bf16 %v9734_v50, %v9733_v57  ;;  %v8468_v57 = vld [vmem:[#allocation3 + $0x76] sm:$0xff]  ;;  %v8469_v50 = vld [vmem:[#allocation3 + $0x7e] sm:$0xff] }
 0x5cd   : > { %11423 = vmatprep.mubr.msk.f32.mxu0 %vm578_vm1, %v6770_v48  ;;  %v7632_v48 = vld [vmem:[#allocation3 + $0x134] sm:$0xff] }
 0x5d0   : > { %11424 = vmatmul.mubr.msk.f32.gmra.mrb[48].mxu0 %vm578_vm1, %v6771_v60  ;;  %v7633_v60 = vld [vmem:[#allocation3 + $0x13c] sm:$0xff] }
 0x5d1   : > { %11426 = vmatprep.mubr.msk.f32.mxu0 %vm578_vm1, %v6772_v52  ;;  %v9735_v52 = vld [vmem:[%s14515_s6 + $0x110] sm:$0xff] }
 0x5d4   : > { %11427 = vmatmul.mubr.msk.f32.gmra.mrb[50].mxu0 %vm578_vm1, %v6773_v40  ;;  %v9736_v40 = vld [vmem:[%s14515_s6 + $0x118] sm:$0xff] }
 0x5d5   : > { %11437 = vmatprep.mubr.msk.f32.mxu0 %vm578_vm1, %v7168_v33  ;;  %v11833_v1 = vpack.c.bf16 %v9736_v40, %v9735_v52  ;;  %v8029_v33 = vld [vmem:[#allocation3 + $0x2d] sm:$0xff]  ;;  %v8473_v52 = vld [vmem:[#allocation3 + $0x9e] sm:$0xff] }
 0x5d6   : > { %v8474_v40 = vld [vmem:[#allocation3 + $0xa6] sm:$0xff] }
 0x5d8   : > { %11438 = vmatmul.mubr.msk.f32.vlgmr.msra.gmra.mrb[16].mxu0 %vm578_vm1, %v7169_v38  ;;  %v8031_v38 = vld [vmem:[#allocation3 + $0x3d] sm:$0xff] }
 0x5d9   : > { %11816 = vmatpush3.bf16.msra.mxu0 %v14081_v9  ;;  %11440 = vmatprep.mubr.msk.f32.mxu0 %vm578_vm1, %v14143_v39  ;;  %v14192_v9 = vld [vmem:[#allocation3 + $0x74] sm:$0xff] }
 0x5da   : > { %11818 = vmatprep.subr.bf16.mxu0 %v11817_v35 }
 0x5dc   : > { %11441 = vmatmul.mubr.msk.f32.gmra.mrb[18].mxu0 %vm578_vm1, %v14153_v42 }
 0x5dd   : > { %11443 = vmatprep.mubr.msk.f32.mxu0 %vm578_vm1, %v14159_v43  ;;  %11820 = vmatpush3.bf16.msra.mxu0 %v11817_v35  ;;  %v8030_v35 = vld [vmem:[#allocation3 + $0x35] sm:$0xff] }
 0x5de   : > { %11822 = vmatprep.subr.bf16.mxu0 %v14149_v3 }
 0x5e0   : > { %11444 = vmatmul.mubr.msk.f32.gmra.mrb[20].mxu0 %vm578_vm1, %v14164_v8 }
 0x5e1   : > { %11446 = vmatprep.mubr.msk.f32.mxu0 %vm578_vm1, %v14168_v47 }
 0x5e4   : > { %11447 = vmatmul.mubr.msk.f32.gmra.mrb[22].mxu0 %vm578_vm1, %v14172_v31 }
 0x5e5   : > { %11449 = vmatprep.mubr.msk.f32.mxu0 %vm578_vm1, %v14176_v0 }
 0x5e8   : > { %11450 = vmatmul.mubr.msk.f32.gmra.mrb[24].mxu0 %vm578_vm1, %v14180_v55 }
 0x5e9   : > { %11452 = vmatprep.mubr.msk.f32.mxu0 %vm578_vm1, %v14184_v11 }
 0x5ec   : > { %11453 = vmatmul.mubr.msk.f32.gmra.mrb[26].mxu0 %vm578_vm1, %v14188_v59 }
 0x5ed   : > { %11455 = vmatprep.mubr.msk.f32.mxu0 %vm578_vm1, %v14192_v9 }
 0x5f0   : > { %11456 = vmatmul.mubr.msk.f32.gmra.mrb[28].mxu0 %vm578_vm1, %v14196_v21 }
 0x5f1   : > { %11458 = vmatprep.mubr.msk.f32.mxu0 %vm578_vm1, %v14200_v14 }
 0x5f4   : > { %11459 = vmatmul.mubr.msk.f32.gmra.mrb[30].mxu0 %vm578_vm1, %v14204_v6 }
 0x5f5   : > { %11461 = vmatprep.mubr.msk.f32.mxu0 %vm578_vm1, %v14208_v19 }
 0x5f8   : > { %11462 = vmatmul.mubr.msk.f32.gmra.mrb[32].mxu0 %vm578_vm1, %v14212_v22 }
 0x5f9   : > { %11464 = vmatprep.mubr.msk.f32.mxu0 %vm578_vm1, %v7186_v46 }
 0x5fc   : > { %11465 = vmatmul.mubr.msk.f32.gmra.mrb[34].mxu0 %vm578_vm1, %v7187_v51 }
 0x5fd   : > { %11467 = vmatprep.mubr.msk.f32.mxu0 %vm578_vm1, %v7188_v24 }
 0x600   : > { %11468 = vmatmul.mubr.msk.f32.gmra.mrb[36].mxu0 %vm578_vm1, %v7189_v26 }
 0x601   : > { %11470 = vmatprep.mubr.msk.f32.mxu0 %vm578_vm1, %v7190_v62 }
 0x604   : > { %11471 = vmatmul.mubr.msk.f32.gmra.mrb[38].mxu0 %vm578_vm1, %v7191_v18 }
 0x605   : > { %11473 = vmatprep.mubr.msk.f32.mxu0 %vm578_vm1, %v7192_v27 }
 0x608   : > { %11474 = vmatmul.mubr.msk.f32.gmra.mrb[40].mxu0 %vm578_vm1, %v7193_v32 }
 0x609   : > { %11476 = vmatprep.mubr.msk.f32.mxu0 %vm578_vm1, %v7194_v36 }
 0x60c   : > { %11477 = vmatmul.mubr.msk.f32.gmra.mrb[42].mxu0 %vm578_vm1, %v7195_v28 }
 0x60d   : > { %11479 = vmatprep.mubr.msk.f32.mxu0 %vm578_vm1, %v7196_v23 }
 0x610   : > { %11480 = vmatmul.mubr.msk.f32.gmra.mrb[44].mxu0 %vm578_vm1, %v7197_v37 }
 0x611   : > { %11482 = vmatprep.mubr.msk.f32.mxu0 %vm578_vm1, %v7198_v61 }
 0x614   : > { %11483 = vmatmul.mubr.msk.f32.gmra.mrb[46].mxu0 %vm578_vm1, %v7199_v49 }
 0x615   : > { %11485 = vmatprep.mubr.msk.f32.mxu0 %vm578_vm1, %v7200_v41 }
 0x618   : > { %11486 = vmatmul.mubr.msk.f32.gmra.mrb[48].mxu0 %vm578_vm1, %v7201_v30 }
 0x619   : > { %11488 = vmatprep.mubr.msk.f32.mxu0 %vm578_vm1, %v7202_v44 }
 0x61c   : > { %11489 = vmatmul.mubr.msk.f32.gmra.mrb[50].mxu0 %vm578_vm1, %v7203_v45 }
 0x61d   : > { %11499 = vmatprep.mubr.msk.f32.mxu0 %vm578_vm1, %v14143_v39  ;;  %v8034_v39 = vld [vmem:[#allocation3 + $0x55] sm:$0xff] }
 0x620   : > { %11500 = vmatmul.mubr.msk.f32.vlgmr.msra.gmra.mrb[16].mxu0 %vm578_vm1, %v14153_v42  ;;  %v8038_v42 = vld [vmem:[#allocation3 + $0x75] sm:$0xff] }
 0x621   : > { %11824 = vmatpush3.bf16.msra.mxu0 %v14149_v3  ;;  %11502 = vmatprep.mubr.msk.f32.mxu0 %vm578_vm1, %v14159_v43  ;;  %v8037_v3 = vld [vmem:[#allocation3 + $0x6d] sm:$0xff]  ;;  %v8039_v43 = vld [vmem:[#allocation3 + $0x7d] sm:$0xff] }
 0x622   : > { %11826 = vmatprep.subr.bf16.mxu0 %v11825_v4 }
 0x624   : > { %11503 = vmatmul.mubr.msk.f32.gmra.mrb[18].mxu0 %vm578_vm1, %v14164_v8  ;;  %v8040_v8 = vld [vmem:[#allocation3 + $0x85] sm:$0xff] }
 0x625   : > { %11505 = vmatprep.mubr.msk.f32.mxu0 %vm578_vm1, %v14168_v47  ;;  %11828 = vmatpush3.bf16.msra.mxu0 %v11825_v4  ;;  %v8041_v47 = vld [vmem:[#allocation3 + $0x8d] sm:$0xff] }
 0x626   : > { %11830 = vmatprep.subr.bf16.mxu0 %v11829_v29  ;;  %v8467_v4 = vld [vmem:[#allocation3 + $0x6e] sm:$0xff] }
 0x628   : > { %11506 = vmatmul.mubr.msk.f32.gmra.mrb[20].mxu0 %vm578_vm1, %v14172_v31  ;;  %v8042_v31 = vld [vmem:[#allocation3 + $0x95] sm:$0xff] }
 0x629   : > { %11508 = vmatprep.mubr.msk.f32.mxu0 %vm578_vm1, %v14176_v0  ;;  %v8043_v0 = vld [vmem:[#allocation3 + $0x9d] sm:$0xff] }
 0x62c   : > { %11509 = vmatmul.mubr.msk.f32.gmra.mrb[22].mxu0 %vm578_vm1, %v14180_v55  ;;  %v8044_v55 = vld [vmem:[#allocation3 + $0xa5] sm:$0xff] }
 0x62d   : > { %11511 = vmatprep.mubr.msk.f32.mxu0 %vm578_vm1, %v14184_v11  ;;  %v8045_v11 = vld [vmem:[#allocation3 + $0xad] sm:$0xff] }
 0x630   : > { %11512 = vmatmul.mubr.msk.f32.gmra.mrb[24].mxu0 %vm578_vm1, %v14188_v59  ;;  %v8046_v59 = vld [vmem:[#allocation3 + $0xb5] sm:$0xff] }
 0x631   : > { %11514 = vmatprep.mubr.msk.f32.mxu0 %vm578_vm1, %v14192_v9  ;;  %v8047_v9 = vld [vmem:[#allocation3 + $0xbd] sm:$0xff] }
 0x634   : > { %11515 = vmatmul.mubr.msk.f32.gmra.mrb[26].mxu0 %vm578_vm1, %v14196_v21  ;;  %v8048_v21 = vld [vmem:[#allocation3 + $0xc5] sm:$0xff] }
 0x635   : > { %11517 = vmatprep.mubr.msk.f32.mxu0 %vm578_vm1, %v14200_v14  ;;  %v8049_v14 = vld [vmem:[#allocation3 + $0xcd] sm:$0xff] }
 0x638   : > { %11518 = vmatmul.mubr.msk.f32.gmra.mrb[28].mxu0 %vm578_vm1, %v14204_v6  ;;  %v8050_v6 = vld [vmem:[#allocation3 + $0xd5] sm:$0xff] }
 0x639   : > { %11520 = vmatprep.mubr.msk.f32.mxu0 %vm578_vm1, %v14208_v19  ;;  %v8051_v19 = vld [vmem:[#allocation3 + $0xdd] sm:$0xff] }
 0x63c   : > { %11521 = vmatmul.mubr.msk.f32.gmra.mrb[30].mxu0 %vm578_vm1, %v14212_v22  ;;  %v8052_v22 = vld [vmem:[#allocation3 + $0xe5] sm:$0xff] }
 0x63d   : > { %11523 = vmatprep.mubr.msk.f32.mxu0 %vm578_vm1, %v7186_v46  ;;  %v8053_v46 = vld [vmem:[#allocation3 + $0xed] sm:$0xff] }
 0x640   : > { %11524 = vmatmul.mubr.msk.f32.gmra.mrb[32].mxu0 %vm578_vm1, %v7187_v51  ;;  %v8054_v51 = vld [vmem:[#allocation3 + $0xf5] sm:$0xff] }
 0x641   : > { %11526 = vmatprep.mubr.msk.f32.mxu0 %vm578_vm1, %v7188_v24  ;;  %v8055_v24 = vld [vmem:[#allocation3 + $0xfd] sm:$0xff] }
 0x644   : > { %11527 = vmatmul.mubr.msk.f32.gmra.mrb[34].mxu0 %vm578_vm1, %v7189_v26  ;;  %v8056_v26 = vld [vmem:[#allocation3 + $0x105] sm:$0xff] }
 0x645   : > { %11529 = vmatprep.mubr.msk.f32.mxu0 %vm578_vm1, %v7190_v62  ;;  %v8057_v62 = vld [vmem:[#allocation3 + $0x10d] sm:$0xff] }
 0x648   : > { %11530 = vmatmul.mubr.msk.f32.gmra.mrb[36].mxu0 %vm578_vm1, %v7191_v18  ;;  %v8058_v18 = vld [vmem:[#allocation3 + $0x115] sm:$0xff] }
 0x649   : > { %11532 = vmatprep.mubr.msk.f32.mxu0 %vm578_vm1, %v7192_v27  ;;  %v8059_v27 = vld [vmem:[#allocation3 + $0x11d] sm:$0xff] }
 0x64c   : > { %11533 = vmatmul.mubr.msk.f32.gmra.mrb[38].mxu0 %vm578_vm1, %v7193_v32  ;;  %v8060_v32 = vld [vmem:[#allocation3 + $0x125] sm:$0xff] }
 0x64d   : > { %11535 = vmatprep.mubr.msk.f32.mxu0 %vm578_vm1, %v7194_v36  ;;  %v8062_v36 = vld [vmem:[#allocation3 + $0x135] sm:$0xff] }
 0x650   : > { %11536 = vmatmul.mubr.msk.f32.gmra.mrb[40].mxu0 %vm578_vm1, %v7195_v28  ;;  %v8061_v28 = vld [vmem:[#allocation3 + $0x12d] sm:$0xff] }
 0x651   : > { %11538 = vmatprep.mubr.msk.f32.mxu0 %vm578_vm1, %v7196_v23  ;;  %v8063_v23 = vld [vmem:[#allocation3 + $0x13d] sm:$0xff] }
 0x654   : > { %11539 = vmatmul.mubr.msk.f32.gmra.mrb[42].mxu0 %vm578_vm1, %v7197_v37  ;;  %v8458_v37 = vld [vmem:[#allocation3 + $0x26] sm:$0xff] }
 0x655   : > { %11541 = vmatprep.mubr.msk.f32.mxu0 %vm578_vm1, %v7198_v61  ;;  %v8459_v61 = vld [vmem:[#allocation3 + $0x2e] sm:$0xff] }
 0x658   : > { %11542 = vmatmul.mubr.msk.f32.gmra.mrb[44].mxu0 %vm578_vm1, %v7199_v49  ;;  %v8460_v49 = vld [vmem:[#allocation3 + $0x36] sm:$0xff] }
 0x659   : > { %11544 = vmatprep.mubr.msk.f32.mxu0 %vm578_vm1, %v7200_v41  ;;  %v8461_v41 = vld [vmem:[#allocation3 + $0x3e] sm:$0xff] }
 0x65c   : > { %11545 = vmatmul.mubr.msk.f32.gmra.mrb[46].mxu0 %vm578_vm1, %v7201_v30  ;;  %v8462_v30 = vld [vmem:[#allocation3 + $0x46] sm:$0xff] }
 0x65d   : > { %11547 = vmatprep.mubr.msk.f32.mxu0 %vm578_vm1, %v7202_v44  ;;  %v8463_v44 = vld [vmem:[#allocation3 + $0x4e] sm:$0xff] }
 0x660   : > { %11548 = vmatmul.mubr.msk.f32.gmra.mrb[48].mxu0 %vm578_vm1, %v7203_v45  ;;  %v8464_v45 = vld [vmem:[#allocation3 + $0x56] sm:$0xff] }
 0x661   : > { %11550 = vmatprep.mubr.msk.f32.mxu0 %vm578_vm1, %v7632_v48  ;;  %v8471_v48 = vld [vmem:[#allocation3 + $0x8e] sm:$0xff] }
 0x664   : > { %11551 = vmatmul.mubr.msk.f32.gmra.mrb[50].mxu0 %vm578_vm1, %v7633_v60  ;;  %v8472_v60 = vld [vmem:[#allocation3 + $0x96] sm:$0xff] }
 0x665   : > { %11561 = vmatprep.mubr.msk.f32.mxu0 %vm578_vm1, %v8028_v58  ;;  %v8475_v58 = vld [vmem:[#allocation3 + $0xae] sm:$0xff] }
 0x668   : > { %11562 = vmatmul.mubr.msk.f32.vlgmr.msra.gmra.mrb[16].mxu0 %vm578_vm1, %v8029_v33  ;;  %v8477_v33 = vld [vmem:[#allocation3 + $0xbe] sm:$0xff] }
 0x669   : > { %11832 = vmatpush3.bf16.msra.mxu0 %v11829_v29  ;;  %11564 = vmatprep.mubr.msk.f32.mxu0 %vm578_vm1, %v8030_v35  ;;  %v8470_v29 = vld [vmem:[#allocation3 + $0x86] sm:$0xff] }
 0x66a   : > { %11834 = vmatprep.subr.bf16.mxu0 %v11833_v1  ;;  %v8478_v35 = vld [vmem:[#allocation3 + $0xc6] sm:$0xff] }
 0x66c   : > { %11565 = vmatmul.mubr.msk.f32.gmra.mrb[18].mxu0 %vm578_vm1, %v8031_v38  ;;  %v8479_v38 = vld [vmem:[#allocation3 + $0xce] sm:$0xff] }
 0x66d   : > { %11567 = vmatprep.mubr.msk.f32.mxu0 %vm578_vm1, %v8032_v63  ;;  %11836 = vmatpush3.bf16.msra.mxu0 %v11833_v1  ;;  %v8476_v1 = vld [vmem:[#allocation3 + $0xb6] sm:$0xff] }
 0x66e   : > { %v8480_v63 = vld [vmem:[#allocation3 + $0xd6] sm:$0xff] }
 0x670   : > { %11568 = vmatmul.mubr.msk.f32.gmra.mrb[20].mxu0 %vm578_vm1, %v8033_v2  ;;  %v8481_v2 = vld [vmem:[#allocation3 + $0xde] sm:$0xff] }
 0x671   : > { %11570 = vmatprep.mubr.msk.f32.mxu0 %vm578_vm1, %v8034_v39  ;;  %v8482_v39 = vld [vmem:[#allocation3 + $0xe6] sm:$0xff] }
 0x674   : > { %11571 = vmatmul.mubr.msk.f32.gmra.mrb[22].mxu0 %vm578_vm1, %v8035_v34  ;;  %v8483_v34 = vld [vmem:[#allocation3 + $0xee] sm:$0xff] }
 0x675   : > { %11573 = vmatprep.mubr.msk.f32.mxu0 %vm578_vm1, %v8036_v56  ;;  %v8484_v56 = vld [vmem:[#allocation3 + $0xf6] sm:$0xff] }
 0x678   : > { %11574 = vmatmul.mubr.msk.f32.gmra.mrb[24].mxu0 %vm578_vm1, %v8037_v3  ;;  %v8485_v3 = vld [vmem:[#allocation3 + $0xfe] sm:$0xff] }
 0x679   : > { %11576 = vmatprep.mubr.msk.f32.mxu0 %vm578_vm1, %v8038_v42  ;;  %v8486_v42 = vld [vmem:[#allocation3 + $0x106] sm:$0xff] }
 0x67c   : > { %11577 = vmatmul.mubr.msk.f32.gmra.mrb[26].mxu0 %vm578_vm1, %v8039_v43  ;;  %v8487_v43 = vld [vmem:[#allocation3 + $0x10e] sm:$0xff] }
 0x67d   : > { %11579 = vmatprep.mubr.msk.f32.mxu0 %vm578_vm1, %v8040_v8  ;;  %v8488_v8 = vld [vmem:[#allocation3 + $0x116] sm:$0xff] }
 0x680   : > { %11580 = vmatmul.mubr.msk.f32.gmra.mrb[28].mxu0 %vm578_vm1, %v8041_v47  ;;  %v8489_v47 = vld [vmem:[#allocation3 + $0x11e] sm:$0xff] }
 0x681   : > { %11582 = vmatprep.mubr.msk.f32.mxu0 %vm578_vm1, %v8042_v31  ;;  %v8490_v31 = vld [vmem:[#allocation3 + $0x126] sm:$0xff] }
 0x684   : > { %11583 = vmatmul.mubr.msk.f32.gmra.mrb[30].mxu0 %vm578_vm1, %v8043_v0  ;;  %v8492_v0 = vld [vmem:[#allocation3 + $0x136] sm:$0xff] }
 0x685   : > { %11585 = vmatprep.mubr.msk.f32.mxu0 %vm578_vm1, %v8044_v55  ;;  %v8491_v55 = vld [vmem:[#allocation3 + $0x12e] sm:$0xff] }
 0x688   : > { %11586 = vmatmul.mubr.msk.f32.gmra.mrb[32].mxu0 %vm578_vm1, %v8045_v11  ;;  %v8493_v11 = vld [vmem:[#allocation3 + $0x13e] sm:$0xff] }
 0x689   : > { %11588 = vmatprep.mubr.msk.f32.mxu0 %vm578_vm1, %v8046_v59  ;;  %v14381_v59 = vld [vmem:[%s14516_s7] ss:$0 sm:$0xff] }
 0x68c   : > { %11589 = vmatmul.mubr.msk.f32.gmra.mrb[34].mxu0 %vm578_vm1, %v8047_v9 }
 0x68d   : > { %11591 = vmatprep.mubr.msk.f32.mxu0 %vm578_vm1, %v8048_v21 }
 0x690   : > { %11592 = vmatmul.mubr.msk.f32.gmra.mrb[36].mxu0 %vm578_vm1, %v8049_v14 }
 0x691   : > { %11594 = vmatprep.mubr.msk.f32.mxu0 %vm578_vm1, %v8050_v6 }
 0x694   : > { %11595 = vmatmul.mubr.msk.f32.gmra.mrb[38].mxu0 %vm578_vm1, %v8051_v19 }
 0x695   : > { %11597 = vmatprep.mubr.msk.f32.mxu0 %vm578_vm1, %v8052_v22 }
 0x698   : > { %11598 = vmatmul.mubr.msk.f32.gmra.mrb[40].mxu0 %vm578_vm1, %v8053_v46 }
 0x699   : > { %11600 = vmatprep.mubr.msk.f32.mxu0 %vm578_vm1, %v8054_v51 }
 0x69c   : > { %11601 = vmatmul.mubr.msk.f32.gmra.mrb[42].mxu0 %vm578_vm1, %v8055_v24 }
 0x69d   : > { %11603 = vmatprep.mubr.msk.f32.mxu0 %vm578_vm1, %v8056_v26 }
 0x6a0   : > { %11604 = vmatmul.mubr.msk.f32.gmra.mrb[44].mxu0 %vm578_vm1, %v8057_v62 }
 0x6a1   : > { %11606 = vmatprep.mubr.msk.f32.mxu0 %vm578_vm1, %v8058_v18 }
 0x6a4   : > { %11607 = vmatmul.mubr.msk.f32.gmra.mrb[46].mxu0 %vm578_vm1, %v8059_v27 }
 0x6a5   : > { %11609 = vmatprep.mubr.msk.f32.mxu0 %vm578_vm1, %v8060_v32 }
 0x6a8   : > { %11610 = vmatmul.mubr.msk.f32.gmra.mrb[48].mxu0 %vm578_vm1, %v8061_v28 }
 0x6a9   : > { %11612 = vmatprep.mubr.msk.f32.mxu0 %vm578_vm1, %v8062_v36 }
 0x6ac   : > { %11613 = vmatmul.mubr.msk.f32.gmra.mrb[50].mxu0 %vm578_vm1, %v8063_v23 }
 0x6ad   : > { %11623 = vmatprep.mubr.msk.f32.mxu0 %vm578_vm1, %v8458_v37 }
 0x6b0   : > { %11624 = vmatmul.mubr.msk.f32.vlgmr.msra.gmra.mrb[16].mxu0 %vm578_vm1, %v8459_v61 }
 0x6b1   : > { %11626 = vmatprep.mubr.msk.f32.mxu0 %vm578_vm1, %v8460_v49 }
 0x6b4   : > { %11627 = vmatmul.mubr.msk.f32.gmra.mrb[18].mxu0 %vm578_vm1, %v8461_v41 }
 0x6b5   : > { %11629 = vmatprep.mubr.msk.f32.mxu0 %vm578_vm1, %v8462_v30 }
 0x6b8   : > { %11630 = vmatmul.mubr.msk.f32.gmra.mrb[20].mxu0 %vm578_vm1, %v8463_v44 }
 0x6b9   : > { %11632 = vmatprep.mubr.msk.f32.mxu0 %vm578_vm1, %v8464_v45 }
 0x6bc   : > { %11633 = vmatmul.mubr.msk.f32.gmra.mrb[22].mxu0 %vm578_vm1, %v8465_v53 }
 0x6bd   : > { %11635 = vmatprep.mubr.msk.f32.mxu0 %vm578_vm1, %v8466_v16 }
 0x6c0   : > { %11636 = vmatmul.mubr.msk.f32.gmra.mrb[24].mxu0 %vm578_vm1, %v8467_v4 }
 0x6c1   : > { %11638 = vmatprep.mubr.msk.f32.mxu0 %vm578_vm1, %v8468_v57 }
 0x6c4   : > { %11639 = vmatmul.mubr.msk.f32.gmra.mrb[26].mxu0 %vm578_vm1, %v8469_v50 }
 0x6c5   : > { %11641 = vmatprep.mubr.msk.f32.mxu0 %vm578_vm1, %v8470_v29 }
 0x6c8   : > { %11642 = vmatmul.mubr.msk.f32.gmra.mrb[28].mxu0 %vm578_vm1, %v8471_v48 }
 0x6c9   : > { %11644 = vmatprep.mubr.msk.f32.mxu0 %vm578_vm1, %v8472_v60 }
 0x6cc   : > { %11645 = vmatmul.mubr.msk.f32.gmra.mrb[30].mxu0 %vm578_vm1, %v8473_v52 }
 0x6cd   : > { %11647 = vmatprep.mubr.msk.f32.mxu0 %vm578_vm1, %v8474_v40 }
 0x6d0   : > { %11648 = vmatmul.mubr.msk.f32.gmra.mrb[32].mxu0 %vm578_vm1, %v8475_v58 }
 0x6d1   : > { %11650 = vmatprep.mubr.msk.f32.mxu0 %vm578_vm1, %v8476_v1 }
 0x6d4   : > { %11651 = vmatmul.mubr.msk.f32.gmra.mrb[34].mxu0 %vm578_vm1, %v8477_v33 }
 0x6d5   : > { %11653 = vmatprep.mubr.msk.f32.mxu0 %vm578_vm1, %v8478_v35 }
 0x6d8   : > { %11654 = vmatmul.mubr.msk.f32.gmra.mrb[36].mxu0 %vm578_vm1, %v8479_v38 }
 0x6d9   : > { %11656 = vmatprep.mubr.msk.f32.mxu0 %vm578_vm1, %v8480_v63 }
 0x6dc   : > { %11657 = vmatmul.mubr.msk.f32.gmra.mrb[38].mxu0 %vm578_vm1, %v8481_v2 }
 0x6dd   : > { %11659 = vmatprep.mubr.msk.f32.mxu0 %vm578_vm1, %v8482_v39 }
 0x6e0   : > { %11660 = vmatmul.mubr.msk.f32.gmra.mrb[40].mxu0 %vm578_vm1, %v8483_v34 }
 0x6e1   : > { %11662 = vmatprep.mubr.msk.f32.mxu0 %vm578_vm1, %v8484_v56 }
 0x6e4   : > { %11663 = vmatmul.mubr.msk.f32.gmra.mrb[42].mxu0 %vm578_vm1, %v8485_v3 }
 0x6e5   : > { %11665 = vmatprep.mubr.msk.f32.mxu0 %vm578_vm1, %v8486_v42 }
 0x6e8   : > { %11666 = vmatmul.mubr.msk.f32.gmra.mrb[44].mxu0 %vm578_vm1, %v8487_v43 }
 0x6e9   : > { %11668 = vmatprep.mubr.msk.f32.mxu0 %vm578_vm1, %v8488_v8 }
 0x6ec   : > { %11669 = vmatmul.mubr.msk.f32.gmra.mrb[46].mxu0 %vm578_vm1, %v8489_v47 }
 0x6ed   : > { %11671 = vmatprep.mubr.msk.f32.mxu0 %vm578_vm1, %v8490_v31 }
 0x6f0   : > { %11672 = vmatmul.mubr.msk.f32.gmra.mrb[48].mxu0 %vm578_vm1, %v8491_v55 }
 0x6f1   : > { %11674 = vmatprep.mubr.msk.f32.mxu0 %vm578_vm1, %v8492_v0 }
 0x6f4   : > { %11675 = vmatmul.mubr.msk.f32.gmra.mrb[50].mxu0 %vm578_vm1, %v8493_v11 }
 0x783   : > { %v11625_v9 = vpop.f32.mrb[16].mxu0 }
 0x784   : > { %v8896_v21 = vadd.f32 %v11625_v9, %v14381_v59  ;;  %v8673_v14 = vpop.f32.mrb[17].mxu0 }
 0x785   : > { %v8895_v6 = vadd.f32 %v14381_v59, %v8673_v14 }
 0x786   : > { %8932 = vst.msk [vmem:[%s14386_s29 + $0x8] sm:$0xff] %vm953_vm5, %v8896_v21 }
 0x787   : > { %8931 = vst.msk [vmem:[%s14386_s29] sm:$0xff] %vm953_vm5, %v8895_v6  ;;  %v11628_v19 = vpop.f32.mrb[18].mxu0 }
 0x788   : > { %v8898_v22 = vadd.f32 %v11628_v19, %v14381_v59  ;;  %v8683_v46 = vpop.f32.mrb[19].mxu0 }
 0x789   : > { %v8897_v51 = vadd.f32 %v14381_v59, %v8683_v46 }
 0x78a   : > { %8934 = vst.msk [vmem:[%s14386_s29 + $0x18] sm:$0xff] %vm953_vm5, %v8898_v22 }
 0x78b   : > { %8933 = vst.msk [vmem:[%s14386_s29 + $0x10] sm:$0xff] %vm953_vm5, %v8897_v51  ;;  %v11631_v24 = vpop.f32.mrb[20].mxu0 }
 0x78c   : > { %v8900_v26 = vadd.f32 %v11631_v24, %v14381_v59  ;;  %v8693_v62 = vpop.f32.mrb[21].mxu0 }
 0x78d   : > { %v8899_v18 = vadd.f32 %v14381_v59, %v8693_v62 }
 0x78e   : > { %8936 = vst.msk [vmem:[%s14386_s29 + $0x28] sm:$0xff] %vm953_vm5, %v8900_v26 }
 0x78f   : > { %8935 = vst.msk [vmem:[%s14386_s29 + $0x20] sm:$0xff] %vm953_vm5, %v8899_v18  ;;  %v11634_v27 = vpop.f32.mrb[22].mxu0 }
 0x790   : > { %v8902_v32 = vadd.f32 %v11634_v27, %v14381_v59  ;;  %v8703_v36 = vpop.f32.mrb[23].mxu0 }
 0x791   : > { %v8901_v28 = vadd.f32 %v14381_v59, %v8703_v36 }
 0x792   : > { %8938 = vst.msk [vmem:[%s14386_s29 + $0x38] sm:$0xff] %vm953_vm5, %v8902_v32 }
 0x793   : > { %8937 = vst.msk [vmem:[%s14386_s29 + $0x30] sm:$0xff] %vm953_vm5, %v8901_v28  ;;  %v11637_v23 = vpop.f32.mrb[24].mxu0 }
 0x794   : > { %v8904_v37 = vadd.f32 %v11637_v23, %v14381_v59  ;;  %v8713_v61 = vpop.f32.mrb[25].mxu0 }
 0x795   : > { %v8903_v49 = vadd.f32 %v14381_v59, %v8713_v61 }
 0x796   : > { %8940 = vst.msk [vmem:[%s14386_s29 + $0x48] sm:$0xff] %vm953_vm5, %v8904_v37 }
 0x797   : > { %8939 = vst.msk [vmem:[%s14386_s29 + $0x40] sm:$0xff] %vm953_vm5, %v8903_v49  ;;  %v11640_v41 = vpop.f32.mrb[26].mxu0 }
 0x798   : > { %v8906_v30 = vadd.f32 %v11640_v41, %v14381_v59  ;;  %v8723_v44 = vpop.f32.mrb[27].mxu0 }
 0x799   : > { %v8905_v45 = vadd.f32 %v14381_v59, %v8723_v44 }
 0x79a   : > { %8942 = vst.msk [vmem:[%s14386_s29 + $0x58] sm:$0xff] %vm953_vm5, %v8906_v30 }
 0x79b   : > { %8941 = vst.msk [vmem:[%s14386_s29 + $0x50] sm:$0xff] %vm953_vm5, %v8905_v45  ;;  %v11643_v53 = vpop.f32.mrb[28].mxu0 }
 0x79c   : > { %v8908_v16 = vadd.f32 %v11643_v53, %v14381_v59  ;;  %v8733_v4 = vpop.f32.mrb[29].mxu0 }
 0x79d   : > { %v8907_v57 = vadd.f32 %v14381_v59, %v8733_v4 }
 0x79e   : > { %8944 = vst.msk [vmem:[%s14386_s29 + $0x68] sm:$0xff] %vm953_vm5, %v8908_v16 }
 0x79f   : > { %8943 = vst.msk [vmem:[%s14386_s29 + $0x60] sm:$0xff] %vm953_vm5, %v8907_v57  ;;  %v11646_v50 = vpop.f32.mrb[30].mxu0 }
 0x7a0   : > { %v8910_v29 = vadd.f32 %v11646_v50, %v14381_v59  ;;  %v8743_v48 = vpop.f32.mrb[31].mxu0 }
 0x7a1   : > { %v8909_v60 = vadd.f32 %v14381_v59, %v8743_v48 }
 0x7a2   : > { %8946 = vst.msk [vmem:[%s14386_s29 + $0x78] sm:$0xff] %vm953_vm5, %v8910_v29 }
 0x7a3   : > { %8945 = vst.msk [vmem:[%s14386_s29 + $0x70] sm:$0xff] %vm953_vm5, %v8909_v60  ;;  %v11649_v52 = vpop.f32.mrb[32].mxu0 }
 0x7a4   : > { %v8912_v40 = vadd.f32 %v11649_v52, %v14381_v59  ;;  %v8753_v58 = vpop.f32.mrb[33].mxu0 }
 0x7a5   : > { %v8911_v1 = vadd.f32 %v14381_v59, %v8753_v58 }
 0x7a6   : > { %8948 = vst.msk [vmem:[%s14386_s29 + $0x88] sm:$0xff] %vm953_vm5, %v8912_v40 }
 0x7a7   : > { %8947 = vst.msk [vmem:[%s14386_s29 + $0x80] sm:$0xff] %vm953_vm5, %v8911_v1  ;;  %v11652_v33 = vpop.f32.mrb[34].mxu0 }
 0x7a8   : > { %v8914_v35 = vadd.f32 %v11652_v33, %v14381_v59  ;;  %v8763_v38 = vpop.f32.mrb[35].mxu0 }
 0x7a9   : > { %v8913_v63 = vadd.f32 %v14381_v59, %v8763_v38 }
 0x7aa   : > { %8950 = vst.msk [vmem:[%s14386_s29 + $0x98] sm:$0xff] %vm953_vm5, %v8914_v35 }
 0x7ab   : > { %8949 = vst.msk [vmem:[%s14386_s29 + $0x90] sm:$0xff] %vm953_vm5, %v8913_v63  ;;  %v11655_v2 = vpop.f32.mrb[36].mxu0 }
 0x7ac   : > { %v8916_v39 = vadd.f32 %v11655_v2, %v14381_v59  ;;  %v8773_v34 = vpop.f32.mrb[37].mxu0 }
 0x7ad   : > { %v8915_v56 = vadd.f32 %v14381_v59, %v8773_v34 }
 0x7ae   : > { %8952 = vst.msk [vmem:[%s14386_s29 + $0xa8] sm:$0xff] %vm953_vm5, %v8916_v39 }
 0x7af   : > { %8951 = vst.msk [vmem:[%s14386_s29 + $0xa0] sm:$0xff] %vm953_vm5, %v8915_v56  ;;  %v11658_v3 = vpop.f32.mrb[38].mxu0 }
 0x7b0   : > { %v8918_v42 = vadd.f32 %v11658_v3, %v14381_v59  ;;  %v8783_v43 = vpop.f32.mrb[39].mxu0 }
 0x7b1   : > { %v8917_v8 = vadd.f32 %v14381_v59, %v8783_v43 }
 0x7b2   : > { %8954 = vst.msk [vmem:[%s14386_s29 + $0xb8] sm:$0xff] %vm953_vm5, %v8918_v42 }
 0x7b3   : > { %8953 = vst.msk [vmem:[%s14386_s29 + $0xb0] sm:$0xff] %vm953_vm5, %v8917_v8  ;;  %v11661_v47 = vpop.f32.mrb[40].mxu0 }
 0x7b4   : > { %v8920_v31 = vadd.f32 %v11661_v47, %v14381_v59  ;;  %v8793_v0 = vpop.f32.mrb[41].mxu0 }
 0x7b5   : > { %v8919_v55 = vadd.f32 %v14381_v59, %v8793_v0 }
 0x7b6   : > { %8956 = vst.msk [vmem:[%s14386_s29 + $0xc8] sm:$0xff] %vm953_vm5, %v8920_v31 }
 0x7b7   : > { %8955 = vst.msk [vmem:[%s14386_s29 + $0xc0] sm:$0xff] %vm953_vm5, %v8919_v55  ;;  %v11664_v11 = vpop.f32.mrb[42].mxu0 }
 0x7b8   : > { %v11841_v9 = vadd.f32 %v11664_v11, %v14057_v7  ;;  %v8803_v21 = vpop.f32.mrb[43].mxu0 }
 0x7b9   : > { %v11842_v14 = vadd.f32 %v8803_v21, %v14065_v5 }
 0x7ba   : > { %v8922_v6 = vadd.f32 %v11841_v9, %v14381_v59 }
 0x7bb   : > { %v8921_v19 = vadd.f32 %v11842_v14, %v14381_v59  ;;  %v11667_v22 = vpop.f32.mrb[44].mxu0 }
 0x7bc   : > { %8958 = vst.msk [vmem:[%s14386_s29 + $0xd8] sm:$0xff] %vm953_vm5, %v8922_v6  ;;  %v11843_v46 = vadd.f32 %v11667_v22, %v14069_v54  ;;  %v8813_v51 = vpop.f32.mrb[45].mxu0 }
 0x7bd   : > { %8957 = vst.msk [vmem:[%s14386_s29 + $0xd0] sm:$0xff] %vm953_vm5, %v8921_v19  ;;  %v11844_v7 = vadd.f32 %v8813_v51, %v14077_v15 }
 0x7be   : > { %v8924_v24 = vadd.f32 %v11843_v46, %v14381_v59 }
 0x7bf   : > { %v8923_v5 = vadd.f32 %v11844_v7, %v14381_v59  ;;  %v11670_v26 = vpop.f32.mrb[46].mxu0 }
 0x7c0   : > { %8960 = vst.msk [vmem:[%s14386_s29 + $0xe8] sm:$0xff] %vm953_vm5, %v8924_v24  ;;  %v11845_v62 = vadd.f32 %v11670_v26, %v14083_v10  ;;  %v8823_v18 = vpop.f32.mrb[47].mxu0 }
 0x7c1   : > { %8959 = vst.msk [vmem:[%s14386_s29 + $0xe0] sm:$0xff] %vm953_vm5, %v8923_v5  ;;  %v11846_v54 = vadd.f32 %v8823_v18, %v14085_v13 }
 0x7c2   : > { %v8926_v27 = vadd.f32 %v11845_v62, %v14381_v59 }
 0x7c3   : > { %v8925_v15 = vadd.f32 %v11846_v54, %v14381_v59  ;;  %v11673_v32 = vpop.f32.mrb[48].mxu0 }
 0x7c4   : > { %8962 = vst.msk [vmem:[%s14386_s29 + $0xf8] sm:$0xff] %vm953_vm5, %v8926_v27  ;;  %v11847_v36 = vadd.f32 %v11673_v32, %v14090_v12  ;;  %v8833_v28 = vpop.f32.mrb[49].mxu0 }
 0x7c5   : > { %8961 = vst.msk [vmem:[%s14386_s29 + $0xf0] sm:$0xff] %vm953_vm5, %v8925_v15  ;;  %v11848_v10 = vadd.f32 %v8833_v28, %v14092_v20 }
 0x7c6   : > { %v8928_v23 = vadd.f32 %v11847_v36, %v14381_v59 }
 0x7c7   : > { %v8927_v13 = vadd.f32 %v11848_v10, %v14381_v59  ;;  %v11676_v37 = vpop.f32.mrb[50].mxu0 }
 0x7c8   : > { %8964 = vst.msk [vmem:[%s14386_s29 + $0x108] sm:$0xff] %vm953_vm5, %v8928_v23  ;;  %v11849_v61 = vadd.f32 %v11676_v37, %v14096_v17  ;;  %v8843_v49 = vpop.f32.mrb[51].mxu0 }
 0x7c9   : > { %8963 = vst.msk [vmem:[%s14386_s29 + $0x100] sm:$0xff] %vm953_vm5, %v8927_v13  ;;  %v11850_v41 = vadd.f32 %v8843_v49, %v14098_v25 }
 0x7ca   : > { %v8930_v12 = vadd.f32 %v11849_v61, %v14381_v59 }
 0x7cb   : > { %v8929_v30 = vadd.f32 %v11850_v41, %v14381_v59 }
 0x7cc   : > { %8966 = vst.msk [vmem:[%s14386_s29 + $0x118] sm:$0xff] %vm953_vm5, %v8930_v12 }
 0x7cd   : > { %8965 = vst.msk [vmem:[%s14386_s29 + $0x110] sm:$0xff] %vm953_vm5, %v8929_v30 }
 0x7ce PF: > { %s19_s30 = sadd.s32 1, %s12439_s30  }
 0x7cf   : > { %p16_p4 = scmp.ge.s32.totalorder %s19_s30, 4  }
 0x7d1   :  { %18 = sbr.rel (!%p16_p4) target bundleno = 1 (0x1), region = 105 }

</bundles_post_ra>
